<compile_context>
chip_gen: v5e
topology: v5e:2x2
jax: 0.10.0
libtpu: 0.0.40
codegen_flags: <defaults>
</compile_context>

<pallas_src>
import functools

import jax
import jax.numpy as jnp
from jax.experimental import pallas as pl
from jax.experimental.pallas import tpu as pltpu

BN_EPS = 1e-5
LANE = 128
VMEM_LIMIT = 32 * 1024 * 1024      # safe on v5e (16 MiB scoped default) / v6e / v7x


# ----------------------------- small helpers ---------------------------------

def _rup(n, m=LANE):
    return ((n + m - 1) // m) * m


def _pad_axis(a, axis, target):
    if a.shape[axis] == target:
        return a
    pad = [(0, 0)] * a.ndim
    pad[axis] = (0, target - a.shape[axis])
    return jnp.pad(a, pad)


def _pick_row_tile(m, cap=512):
    """Largest row tile that divides m, is a multiple of 8 and <= cap (else the full m)."""
    if m <= cap:
        return m
    for t in range(cap - cap % 8, 7, -8):
        if m % t == 0:
            return t
    return m


# ----------------------------- Pallas kernels --------------------------------

def _mm_stats_kernel(x_ref, w_ref, isc_ref, ish_ref, rsc_ref, y_ref, st_ref, *, relu_in):
    """One (sample, row-tile) step of a 1x1 conv: y = f(x) @ w, plus BN partial stats.

    f(x) = relu(x*isc + ish) * rsc   when relu_in (conv3: folds BN2 + ReLU + SE gate)
         = x * rsc                   otherwise    (rsc is all-ones for plain convs)
    """
    x = x_ref[0]                                         # (tm, K) f32
    if relu_in:
        x = jnp.maximum(x * isc_ref[...] + ish_ref[...], 0.0)
    x = x * rsc_ref[0]                                   # (1, K) broadcast
    y = jnp.dot(x.astype(jnp.bfloat16), w_ref[...],
                preferred_element_type=jnp.float32)      # bf16 MXU, f32 accumulate
    y_ref[0] = y
    st_ref[0, 0, 0:1, :] = jnp.sum(y, axis=0, keepdims=True)
    st_ref[0, 0, 1:2, :] = jnp.sum(y * y, axis=0, keepdims=True)


def _conv2_kernel(x_ref, s1_ref, t1_ref, w_ref, y_ref, st_ref, *, stride, Ho, Wo, G, cpg):
    """Grouped 3x3 conv (stride, pad=1) for one sample, taps gathered in VMEM.

    Input is the *raw* conv1 output in a stride-phase-split, spatially padded layout
    (stride*stride, 1, Hq, Wq, Cp); BN1 + ReLU is applied on the fly (s1, t1).
    Output: raw conv2 result (1, Ho*Wo, Cp) + per-sample BN2 partial stats.
    """
    Cp = y_ref.shape[-1]
    Mo = Ho * Wo
    s1 = s1_ref[...]                                     # (1, Cp)
    t1 = t1_ref[...]

    # Normalize + ReLU each stride-phase plane once (spatial padding value was chosen so
    # the border maps to exactly 0 after this transform).
    planes = []
    for ph in range(stride):
        for pw in range(stride):
            pidx = ph * stride + pw
            plane = x_ref[pidx, 0]                       # (Hq, Wq, Cp)
            planes.append(jnp.maximum(plane * s1 + t1, 0.0))

    acc = jnp.zeros((Mo, Cp), jnp.float32)
    for kh in range(3):
        for kw in range(3):
            ph, h0 = kh % stride, kh // stride
            pw, w0 = kw % stride, kw // stride
            a = planes[ph * stride + pw][h0:h0 + Ho, w0:w0 + Wo, :]   # (Ho, Wo, Cp)
            a = a.reshape(Mo, Cp)
            t = kh * 3 + kw
            for g in range(G):
                lhs = a[:, g * cpg:(g + 1) * cpg].astype(jnp.bfloat16)   # (Mo, cpg)
                # w_ref[t, g]: (cpg, Cp), group-g output columns pre-placed, rest zero.
                acc = acc + jnp.dot(lhs, w_ref[t, g],
                                    preferred_element_type=jnp.float32)
    y_ref[0] = acc
    st_ref[0, 0:1, :] = jnp.sum(acc, axis=0, keepdims=True)
    st_ref[0, 1:2, :] = jnp.sum(acc * acc, axis=0, keepdims=True)


def _se_kernel(y2_ref, s2_ref, t2_ref, w1_ref, b1_ref, w2_ref, b2_ref, o_ref):
    """SqueezeExcitation gate for one sample: sigmoid(fc2(relu(fc1(mean_hw(a2)))))."""
    a = jnp.maximum(y2_ref[0] * s2_ref[...] + t2_ref[...], 0.0)        # (Mo, Cp)
    m = jnp.mean(a, axis=0, keepdims=True)                             # (1, Cp)
    z = jnp.dot(m.astype(jnp.bfloat16), w1_ref[...],
                preferred_element_type=jnp.float32) + b1_ref[...]
    z = jnp.maximum(z, 0.0)
    z = jnp.dot(z.astype(jnp.bfloat16), w2_ref[...],
                preferred_element_type=jnp.float32) + b2_ref[...]
    o_ref[0] = jax.nn.sigmoid(z)                                       # (1, Cp)


def _final_kernel(y3_ref, s3_ref, t3_ref, sc_ref, ss_ref, sh_ref, o_ref):
    """out = relu(BN3(y3) + BN_d(shortcut))  (shortcut scale/shift = 1/0 for identity)."""
    y = y3_ref[0] * s3_ref[...] + t3_ref[...]
    sc = sc_ref[0] * ss_ref[...] + sh_ref[...]
    o_ref[0] = jnp.maximum(y + sc, 0.0)


# ----------------------------- kernel wrappers --------------------------------

def conv1x1_raw(x3, w, in_scale=None, in_shift=None, row_scale=None):
    """x3: (N, M, K) f32 ; w: (K, Co) bf16.  Returns raw y (N, M, Co) and BN partial stats."""
    N, M, K = x3.shape
    Co = w.shape[1]
    tm = _pick_row_tile(M)
    nt = M // tm

    relu_in = in_scale is not None
    if in_scale is None:
        in_scale = jnp.ones((1, K), jnp.float32)
        in_shift = jnp.zeros((1, K), jnp.float32)
    if row_scale is None:
        row_scale = jnp.ones((1, 1, K), jnp.float32)
        rs_map = lambda n, j: (0, 0, 0)
    else:
        rs_map = lambda n, j: (n, 0, 0)

    kern = functools.partial(_mm_stats_kernel, relu_in=relu_in)
    y, st = pl.pallas_call(
        kern,
        grid=(N, nt),
        in_specs=[
            pl.BlockSpec((1, tm, K), lambda n, j: (n, j, 0)),
            pl.BlockSpec((K, Co), lambda n, j: (0, 0)),
            pl.BlockSpec((1, K), lambda n, j: (0, 0)),
            pl.BlockSpec((1, K), lambda n, j: (0, 0)),
            pl.BlockSpec((1, 1, K), rs_map),
        ],
        out_specs=(
            pl.BlockSpec((1, tm, Co), lambda n, j: (n, j, 0)),
            pl.BlockSpec((1, 1, 2, Co), lambda n, j: (n, j, 0, 0)),
        ),
        out_shape=(
            jax.ShapeDtypeStruct((N, M, Co), jnp.float32),
            jax.ShapeDtypeStruct((N, nt, 2, Co), jnp.float32),
        ),
        compiler_params=pltpu.CompilerParams(
            dimension_semantics=("parallel", "parallel"),
            vmem_limit_bytes=VMEM_LIMIT),
    )(x3, w, in_scale, in_shift, row_scale)
    return y, st


def conv2_grouped(y1_3d, H, W, s1, t1, w2p, stride):
    """Grouped 3x3 conv with stride & padding=1, consuming the RAW conv1 output.

    BN1 + ReLU (s1, t1) is applied inside the kernel; the spatial zero-padding of the
    *post-BN* activation is emulated by padding the raw tensor with the per-channel value
    p = -t1/s1 (maps to exactly 0 after the affine+ReLU; requires gamma1 != 0, true here).
    """
    N, M, Cp = y1_3d.shape
    G, cpg = w2p.shape[1], w2p.shape[2]
    Ho = (H + 2 - 3) // stride + 1
    Wo = (W + 2 - 3) // stride + 1
    Mo = Ho * Wo

    safe = jnp.where(s1 == 0.0, 1.0, s1)
    padv = jnp.where(s1 == 0.0, 0.0, -t1 / safe)                 # (1, Cp)

    Hq = -(-(H + 2) // stride)
    Wq = -(-(W + 2) // stride)
    Hp2, Wp2 = Hq * stride, Wq * stride
    base = jnp.broadcast_to(padv.reshape(1, 1, 1, Cp), (N, Hp2, Wp2, Cp))
    xpad = base.at[:, 1:1 + H, 1:1 + W, :].set(y1_3d.reshape(N, H, W, Cp))
    # stride-phase split: xph[ph*stride+pw, n, hq, wq, c] = xpad[n, stride*hq+ph, stride*wq+pw, c]
    xph = (xpad.reshape(N, Hq, stride, Wq, stride, Cp)
               .transpose(2, 4, 0, 1, 3, 5)
               .reshape(stride * stride, N, Hq, Wq, Cp))

    kern = functools.partial(_conv2_kernel, stride=stride, Ho=Ho, Wo=Wo, G=G, cpg=cpg)
    # TODO(synk): tile Ho inside the conv2 kernel (and pipeline the phase planes) for
    # large spatial extents; a whole-sample spatial block is assumed to fit VMEM here.
    y2, st = pl.pallas_call(
        kern,
        grid=(N,),
        in_specs=[
            pl.BlockSpec((stride * stride, 1, Hq, Wq, Cp), lambda n: (0, n, 0, 0, 0)),
            pl.BlockSpec((1, Cp), lambda n: (0, 0)),
            pl.BlockSpec((1, Cp), lambda n: (0, 0)),
            pl.BlockSpec(w2p.shape, lambda n: (0, 0, 0, 0)),
        ],
        out_specs=(
            pl.BlockSpec((1, Mo, Cp), lambda n: (n, 0, 0)),
            pl.BlockSpec((1, 2, Cp), lambda n: (n, 0, 0)),
        ),
        out_shape=(
            jax.ShapeDtypeStruct((N, Mo, Cp), jnp.float32),
            jax.ShapeDtypeStruct((N, 2, Cp), jnp.float32),
        ),
        compiler_params=pltpu.CompilerParams(
            dimension_semantics=("parallel",), vmem_limit_bytes=VMEM_LIMIT),
    )(xph, s1, t1, w2p)
    return y2, st, Ho, Wo


def se_gate(y2, s2, t2, w1, b1, w2, b2):
    """Per-(sample, channel) SE gate; reads y2 once, returns (N, 1, Cp)."""
    N, Mo, Cp = y2.shape
    Sq = w1.shape[1]
    return pl.pallas_call(
        _se_kernel,
        grid=(N,),
        in_specs=[
            pl.BlockSpec((1, Mo, Cp), lambda n: (n, 0, 0)),
            pl.BlockSpec((1, Cp), lambda n: (0, 0)),
            pl.BlockSpec((1, Cp), lambda n: (0, 0)),
            pl.BlockSpec((Cp, Sq), lambda n: (0, 0)),
            pl.BlockSpec((1, Sq), lambda n: (0, 0)),
            pl.BlockSpec((Sq, Cp), lambda n: (0, 0)),
            pl.BlockSpec((1, Cp), lambda n: (0, 0)),
        ],
        out_specs=pl.BlockSpec((1, 1, Cp), lambda n: (n, 0, 0)),
        out_shape=jax.ShapeDtypeStruct((N, 1, Cp), jnp.float32),
        compiler_params=pltpu.CompilerParams(
            dimension_semantics=("parallel",), vmem_limit_bytes=VMEM_LIMIT),
    )(y2, s2, t2, w1, b1, w2, b2)


def finalize(y3, s3, t3, sc, scs, sct):
    """out = relu(BN3(y3) + shortcut), shortcut = sc*scs + sct."""
    N, Mo, Cp = y3.shape
    tm = _pick_row_tile(Mo)
    nt = Mo // tm
    return pl.pallas_call(
        _final_kernel,
        grid=(N, nt),
        in_specs=[
            pl.BlockSpec((1, tm, Cp), lambda n, j: (n, j, 0)),
            pl.BlockSpec((1, Cp), lambda n, j: (0, 0)),
            pl.BlockSpec((1, Cp), lambda n, j: (0, 0)),
            pl.BlockSpec((1, tm, Cp), lambda n, j: (n, j, 0)),
            pl.BlockSpec((1, Cp), lambda n, j: (0, 0)),
            pl.BlockSpec((1, Cp), lambda n, j: (0, 0)),
        ],
        out_specs=pl.BlockSpec((1, tm, Cp), lambda n, j: (n, j, 0)),
        out_shape=jax.ShapeDtypeStruct((N, Mo, Cp), jnp.float32),
        compiler_params=pltpu.CompilerParams(
            dimension_semantics=("parallel", "parallel"),
            vmem_limit_bytes=VMEM_LIMIT),
    )(y3, s3, t3, sc, scs, sct)


# ----------------------------- BN folding (JAX glue) ---------------------------

def fold_bn(stats, gamma, beta, count):
    """stats (..., 2, C) partial [sum, sumsq] -> per-channel (scale, shift), shapes (1, C)."""
    s = stats.reshape(-1, 2, stats.shape[-1]).sum(axis=0)
    mean = s[0] / count
    var = jnp.maximum(s[1] / count - mean * mean, 0.0)     # biased var, training-mode BN
    scale = gamma[0] * jax.lax.rsqrt(var + BN_EPS)
    shift = beta[0] - mean * scale
    return scale.reshape(1, -1), shift.reshape(1, -1)


# ----------------------------- parameter construction -------------------------

def init_bottleneck_params(key, in_c, out_c, group_width, se_ratio, with_downsample):
    G = out_c // group_width
    cpg = copg = group_width
    squeeze_c = int(in_c * se_ratio)
    Cin_p, Cp, Sq_p = _rup(in_c), _rup(out_c), _rup(max(squeeze_c, 1))
    ks = jax.random.split(key, 16)

    def bn(kg, kb, c, cpad):
        g = 1.0 + 0.1 * jax.random.normal(kg, (c,), jnp.float32)
        b = 0.1 * jax.random.normal(kb, (c,), jnp.float32)
        return (_pad_axis(g, 0, cpad).reshape(1, cpad),      # padded gamma = 0 -> padded
                _pad_axis(b, 0, cpad).reshape(1, cpad))       # channels stay exactly 0

    p = {}
    w1 = jax.random.normal(ks[0], (in_c, out_c), jnp.float32) * 0.1
    p['w1'] = _pad_axis(_pad_axis(w1, 0, Cin_p), 1, Cp).astype(jnp.bfloat16)
    p['g1'], p['b1'] = bn(ks[1], ks[2], out_c, Cp)

    # grouped 3x3 weight, packed per (tap, group); output columns placed in padded lanes
    w2 = jax.random.normal(ks[3], (out_c, cpg, 3, 3), jnp.float32) * 0.1
    w2p = jnp.zeros((9, G, cpg, Cp), jnp.float32)
    for g in range(G):
        blk = w2[g * copg:(g + 1) * copg]                          # (copg, cpg, 3, 3)
        bt = jnp.transpose(blk, (2, 3, 1, 0)).reshape(9, cpg, copg)
        w2p = w2p.at[:, g, :, g * copg:(g + 1) * copg].set(bt)
    p['w2'] = w2p.astype(jnp.bfloat16)
    p['g2'], p['b2'] = bn(ks[4], ks[5], out_c, Cp)

    sew1 = jax.random.normal(ks[6], (out_c, squeeze_c), jnp.float32) * 0.1
    p['se_w1'] = _pad_axis(_pad_axis(sew1, 0, Cp), 1, Sq_p).astype(jnp.bfloat16)
    p['se_b1'] = _pad_axis(0.1 * jax.random.normal(ks[7], (squeeze_c,), jnp.float32),
                           0, Sq_p).reshape(1, Sq_p)
    sew2 = jax.random.normal(ks[8], (squeeze_c, out_c), jnp.float32) * 0.1
    p['se_w2'] = _pad_axis(_pad_axis(sew2, 0, Sq_p), 1, Cp).astype(jnp.bfloat16)
    p['se_b2'] = _pad_axis(0.1 * jax.random.normal(ks[9], (out_c,), jnp.float32),
                           0, Cp).reshape(1, Cp)

    w3 = jax.random.normal(ks[10], (out_c, out_c), jnp.float32) * 0.1
    p['w3'] = _pad_axis(_pad_axis(w3, 0, Cp), 1, Cp).astype(jnp.bfloat16)
    p['g3'], p['b3'] = bn(ks[11], ks[12], out_c, Cp)

    if with_downsample:
        wd = jax.random.normal(ks[13], (in_c, out_c), jnp.float32) * 0.1
        p['wd'] = _pad_axis(_pad_axis(wd, 0, Cin_p), 1, Cp).astype(jnp.bfloat16)
        p['gd'], p['bd'] = bn(ks[14], ks[15], out_c, Cp)
    return p


def init_regstage_params(key, in_c, out_c, depth, group_width, se_ratio):
    params = []
    keys = jax.random.split(key, depth)          # per-block keys (fixes shared-key bug)
    for i in range(depth):
        block_in_c = in_c if i == 0 else out_c
        stride = 2 if i == 0 else 1
        with_ds = (block_in_c != out_c) or (stride != 1)
        params.append(init_bottleneck_params(keys[i], block_in_c, out_c,
                                             group_width, se_ratio, with_ds))
    return params


# ----------------------------- forward passes ---------------------------------

def bottleneck_forward(x3, H, W, p, stride):
    """x3: (N, H*W, Cin_p) f32 channels-last.  Returns (out (N, Ho*Wo, Cp), Ho, Wo)."""
    N, M, Cin_p = x3.shape
    Cp = p['w1'].shape[1]

    # conv1 (1x1) -> raw output + BN1 stats
    y1, st1 = conv1x1_raw(x3, p['w1'])
    s1, t1 = fold_bn(st1, p['g1'], p['b1'], N * M)

    # conv2 (3x3 grouped, stride): BN1+ReLU applied in-kernel, taps gathered in VMEM
    y2, st2, Ho, Wo = conv2_grouped(y1, H, W, s1, t1, p['w2'], stride)
    Mo = Ho * Wo
    s2, t2 = fold_bn(st2, p['g2'], p['b2'], N * Mo)

    # SqueezeExcitation gate (per sample, per channel) — applied inside conv3 below
    gate = se_gate(y2, s2, t2, p['se_w1'], p['se_b1'], p['se_w2'], p['se_b2'])

    # shortcut branch
    if 'wd' in p:
        xs = x3.reshape(N, H, W, Cin_p)[:, ::stride, ::stride, :].reshape(N, Mo, Cin_p)
        yd, std = conv1x1_raw(xs, p['wd'])
        sd, td = fold_bn(std, p['gd'], p['bd'], N * Mo)
        sc, scs, sct = yd, sd, td
    else:
        sc = x3
        scs = jnp.ones((1, Cp), jnp.float32)
        sct = jnp.zeros((1, Cp), jnp.float32)

    # conv3 (1x1): BN2+ReLU+SE gate folded into the input transform of the matmul
    y3, st3 = conv1x1_raw(y2, p['w3'], in_scale=s2, in_shift=t2, row_scale=gate)
    s3, t3 = fold_bn(st3, p['g3'], p['b3'], N * Mo)

    # BN3 + shortcut(BN_d) + add + final ReLU, one fused elementwise pass
    out = finalize(y3, s3, t3, sc, scs, sct)
    return out, Ho, Wo


def regstage_forward(x_nchw, stage_params, out_c):
    N, Cin, H, W = x_nchw.shape
    Cin_p = _rup(Cin)
    x = jnp.transpose(x_nchw, (0, 2, 3, 1)).astype(jnp.float32)   # NCHW -> NHWC
    x = _pad_axis(x, 3, Cin_p)
    x3 = x.reshape(N, H * W, Cin_p)
    for i, p in enumerate(stage_params):
        stride = 2 if i == 0 else 1
        x3, H, W = bottleneck_forward(x3, H, W, p, stride)
    Cp = x3.shape[-1]
    out = x3.reshape(N, H, W, Cp)[..., :out_c]                    # drop channel padding
    return jnp.transpose(out, (0, 3, 1, 2))                       # NHWC -> NCHW


# ----------------------------- main --------------------------------------------

if __name__ == "__main__":
    in_c, out_c, depth, group_width, se_ratio = 8, 16, 2, 8, 0.25
    key = jax.random.PRNGKey(0)
    k_x, k_p = jax.random.split(key)

    x = jax.random.normal(k_x, (2, in_c, 16, 16), jnp.float32)     # NCHW like PyTorch
    params = init_regstage_params(k_p, in_c, out_c, depth, group_width, se_ratio)

    fwd = jax.jit(functools.partial(regstage_forward, out_c=out_c))
    out = jax.block_until_ready(fwd(x, params))
    assert out.shape == (2, out_c, 8, 8), out.shape                # stride-2 first block
    assert bool(jnp.all(jnp.isfinite(out)))
    print("KERNEL_OK")
</pallas_src>

<mosaic_0001>
module attributes {stable_mosaic.version = 11 : i64} {
  func.func @_mm_stats_kernel(%arg0: i32, %arg1: i32, %arg2: memref<1x256x128xf32, #tpu.memory_space<vmem>>, %arg3: memref<128x128xbf16, #tpu.memory_space<vmem>>, %arg4: memref<1x128xf32, #tpu.memory_space<vmem>>, %arg5: memref<1x128xf32, #tpu.memory_space<vmem>>, %arg6: memref<1x1x128xf32, #tpu.memory_space<vmem>>, %arg7: memref<1x256x128xf32, #tpu.memory_space<vmem>>, %arg8: memref<1x1x2x128xf32, #tpu.memory_space<vmem>>) attributes {dimension_semantics = [#tpu.dimension_semantics<parallel>, #tpu.dimension_semantics<parallel>], iteration_bounds = array<i64: 2, 1>, scalar_prefetch = 0 : i64, scratch_operands = 0 : i64, tpu.core_type = #tpu.core_type<tc>, window_params = [{transform_indices = @transform_0, window_bounds = array<i64: 1, 256, 128>}, {pipeline_mode = #tpu.pipeline_mode<synchronous>, transform_indices = @transform_1, window_bounds = array<i64: 128, 128>}, {pipeline_mode = #tpu.pipeline_mode<synchronous>, transform_indices = @transform_2, window_bounds = array<i64: 1, 128>}, {pipeline_mode = #tpu.pipeline_mode<synchronous>, transform_indices = @transform_3, window_bounds = array<i64: 1, 128>}, {pipeline_mode = #tpu.pipeline_mode<synchronous>, transform_indices = @transform_4, window_bounds = array<i64: 1, 1, 128>}, {transform_indices = @transform_5, window_bounds = array<i64: 1, 256, 128>}, {transform_indices = @transform_6, window_bounds = array<i64: 1, 1, 2, 128>}]} {
    %c0 = arith.constant 0 : index
    %c0_0 = arith.constant 0 : index
    %c0_1 = arith.constant 0 : index
    %0 = vector.load %arg2[%c0, %c0_0, %c0_1] : memref<1x256x128xf32, #tpu.memory_space<vmem>>, vector<1x256x128xf32>
    %1 = vector.shape_cast %0 : vector<1x256x128xf32> to vector<256x128xf32>
    %c0_2 = arith.constant 0 : index
    %c0_3 = arith.constant 0 : index
    %c0_4 = arith.constant 0 : index
    %2 = vector.load %arg6[%c0_2, %c0_3, %c0_4] : memref<1x1x128xf32, #tpu.memory_space<vmem>>, vector<1x1x128xf32>
    %3 = vector.shape_cast %2 : vector<1x1x128xf32> to vector<1x128xf32>
    %4 = vector.broadcast %3 : vector<1x128xf32> to vector<256x128xf32>
    %5 = arith.mulf %1, %4 : vector<256x128xf32>
    %6 = arith.truncf %5 : vector<256x128xf32> to vector<256x128xbf16>
    %c0_5 = arith.constant 0 : index
    %c0_6 = arith.constant 0 : index
    %7 = vector.load %arg3[%c0_5, %c0_6] : memref<128x128xbf16, #tpu.memory_space<vmem>>, vector<128x128xbf16>
    %cst = arith.constant dense<0.000000e+00> : vector<256x128xf32>
    %8 = tpu.matmul %6, %7, %cst {dimension_numbers = #tpu.dot_dimension_numbers<[1], [0], [0], [1], [0, 0, 1, 1], [], []>} : vector<256x128xbf16>, vector<128x128xbf16>, vector<256x128xf32> -> vector<256x128xf32>
    %c0_7 = arith.constant 0 : index
    %c0_8 = arith.constant 0 : index
    %c0_9 = arith.constant 0 : index
    %9 = vector.load %arg7[%c0_7, %c0_8, %c0_9] : memref<1x256x128xf32, #tpu.memory_space<vmem>>, vector<1x256x128xf32>
    %10 = vector.shape_cast %9 : vector<1x256x128xf32> to vector<256x128xf32>
    %11 = vector.shape_cast %8 : vector<256x128xf32> to vector<1x256x128xf32>
    tpu.vector_store %arg7[%c0_7, %c0_8, %c0_9], %11 {strides = array<i32>} : memref<1x256x128xf32, #tpu.memory_space<vmem>>, vector<1x256x128xf32>,
    %cst_10 = arith.constant dense<0.000000e+00> : vector<128xf32>
    %12 = vector.multi_reduction <add>, %8, %cst_10 [0] : vector<256x128xf32> to vector<128xf32>
    %13 = vector.shape_cast %12 : vector<128xf32> to vector<1x128xf32>
    %c0_11 = arith.constant 0 : index
    %c0_12 = arith.constant 0 : index
    %c0_13 = arith.constant 0 : index
    %c0_14 = arith.constant 0 : index
    %14 = vector.load %arg8[%c0_11, %c0_12, %c0_13, %c0_14] : memref<1x1x2x128xf32, #tpu.memory_space<vmem>>, vector<1x1x1x128xf32>
    %15 = vector.shape_cast %14 : vector<1x1x1x128xf32> to vector<1x128xf32>
    %16 = vector.shape_cast %13 : vector<1x128xf32> to vector<1x1x1x128xf32>
    tpu.vector_store %arg8[%c0_11, %c0_12, %c0_13, %c0_14], %16 {strides = array<i32>} : memref<1x1x2x128xf32, #tpu.memory_space<vmem>>, vector<1x1x1x128xf32>,
    %17 = arith.mulf %8, %8 : vector<256x128xf32>
    %cst_15 = arith.constant dense<0.000000e+00> : vector<128xf32>
    %18 = vector.multi_reduction <add>, %17, %cst_15 [0] : vector<256x128xf32> to vector<128xf32>
    %19 = vector.shape_cast %18 : vector<128xf32> to vector<1x128xf32>
    %c0_16 = arith.constant 0 : index
    %c0_17 = arith.constant 0 : index
    %c1 = arith.constant 1 : index
    %c0_18 = arith.constant 0 : index
    %20 = vector.load %arg8[%c0_16, %c0_17, %c1, %c0_18] : memref<1x1x2x128xf32, #tpu.memory_space<vmem>>, vector<1x1x1x128xf32>
    %21 = vector.shape_cast %20 : vector<1x1x1x128xf32> to vector<1x128xf32>
    %22 = vector.shape_cast %19 : vector<1x128xf32> to vector<1x1x1x128xf32>
    tpu.vector_store %arg8[%c0_16, %c0_17, %c1, %c0_18], %22 {strides = array<i32>} : memref<1x1x2x128xf32, #tpu.memory_space<vmem>>, vector<1x1x1x128xf32>,
    return
  }
  func.func @transform_0(%arg0: i32, %arg1: i32) -> (i32, i32, i32) {
    %c0_i32 = arith.constant 0 : i32
    %c0_i32_0 = arith.constant 0 : i32
    return %arg0, %arg1, %c0_i32 : i32, i32, i32
  }
  func.func @transform_1(%arg0: i32, %arg1: i32) -> (i32, i32) {
    %c0_i32 = arith.constant 0 : i32
    %c0_i32_0 = arith.constant 0 : i32
    %c0_i32_1 = arith.constant 0 : i32
    return %c0_i32, %c0_i32_0 : i32, i32
  }
  func.func @transform_2(%arg0: i32, %arg1: i32) -> (i32, i32) {
    %c0_i32 = arith.constant 0 : i32
    %c0_i32_0 = arith.constant 0 : i32
    %c0_i32_1 = arith.constant 0 : i32
    return %c0_i32, %c0_i32_0 : i32, i32
  }
  func.func @transform_3(%arg0: i32, %arg1: i32) -> (i32, i32) {
    %c0_i32 = arith.constant 0 : i32
    %c0_i32_0 = arith.constant 0 : i32
    %c0_i32_1 = arith.constant 0 : i32
    return %c0_i32, %c0_i32_0 : i32, i32
  }
  func.func @transform_4(%arg0: i32, %arg1: i32) -> (i32, i32, i32) {
    %c0_i32 = arith.constant 0 : i32
    %c0_i32_0 = arith.constant 0 : i32
    %c0_i32_1 = arith.constant 0 : i32
    %c0_i32_2 = arith.constant 0 : i32
    return %c0_i32, %c0_i32_0, %c0_i32_1 : i32, i32, i32
  }
  func.func @transform_5(%arg0: i32, %arg1: i32) -> (i32, i32, i32) {
    %c0_i32 = arith.constant 0 : i32
    %c0_i32_0 = arith.constant 0 : i32
    return %arg0, %arg1, %c0_i32 : i32, i32, i32
  }
  func.func @transform_6(%arg0: i32, %arg1: i32) -> (i32, i32, i32, i32) {
    %c0_i32 = arith.constant 0 : i32
    %c0_i32_0 = arith.constant 0 : i32
    %c0_i32_1 = arith.constant 0 : i32
    return %arg0, %arg1, %c0_i32, %c0_i32_0 : i32, i32, i32, i32
  }
}

module attributes {stable_mosaic.version = 11 : i64} {
  func.func @_conv2_kernel(%arg0: i32, %arg1: memref<4x1x9x9x128xf32, #tpu.memory_space<vmem>>, %arg2: memref<1x128xf32, #tpu.memory_space<vmem>>, %arg3: memref<1x128xf32, #tpu.memory_space<vmem>>, %arg4: memref<9x2x8x128xbf16, #tpu.memory_space<vmem>>, %arg5: memref<1x64x128xf32, #tpu.memory_space<vmem>>, %arg6: memref<1x2x128xf32, #tpu.memory_space<vmem>>) attributes {dimension_semantics = [#tpu.dimension_semantics<parallel>], iteration_bounds = array<i64: 2>, scalar_prefetch = 0 : i64, scratch_operands = 0 : i64, tpu.core_type = #tpu.core_type<tc>, window_params = [{transform_indices = @transform_0, window_bounds = array<i64: 4, 1, 9, 9, 128>}, {pipeline_mode = #tpu.pipeline_mode<synchronous>, transform_indices = @transform_1, window_bounds = array<i64: 1, 128>}, {pipeline_mode = #tpu.pipeline_mode<synchronous>, transform_indices = @transform_2, window_bounds = array<i64: 1, 128>}, {pipeline_mode = #tpu.pipeline_mode<synchronous>, transform_indices = @transform_3, window_bounds = array<i64: 9, 2, 8, 128>}, {transform_indices = @transform_4, window_bounds = array<i64: 1, 64, 128>}, {transform_indices = @transform_5, window_bounds = array<i64: 1, 2, 128>}]} {
    %c0 = arith.constant 0 : index
    %c0_0 = arith.constant 0 : index
    %0 = vector.load %arg2[%c0, %c0_0] : memref<1x128xf32, #tpu.memory_space<vmem>>, vector<1x128xf32>
    %c0_1 = arith.constant 0 : index
    %c0_2 = arith.constant 0 : index
    %1 = vector.load %arg3[%c0_1, %c0_2] : memref<1x128xf32, #tpu.memory_space<vmem>>, vector<1x128xf32>
    %c0_3 = arith.constant 0 : index
    %c0_4 = arith.constant 0 : index
    %c0_5 = arith.constant 0 : index
    %c0_6 = arith.constant 0 : index
    %c0_7 = arith.constant 0 : index
    %2 = vector.load %arg1[%c0_3, %c0_4, %c0_5, %c0_6, %c0_7] : memref<4x1x9x9x128xf32, #tpu.memory_space<vmem>>, vector<1x1x9x9x128xf32>
    %3 = vector.shape_cast %2 : vector<1x1x9x9x128xf32> to vector<9x9x128xf32>
    %4 = vector.shape_cast %0 : vector<1x128xf32> to vector<1x1x128xf32>
    %5 = vector.broadcast %4 : vector<1x1x128xf32> to vector<9x9x128xf32>
    %6 = arith.mulf %3, %5 : vector<9x9x128xf32>
    %7 = vector.shape_cast %1 : vector<1x128xf32> to vector<1x1x128xf32>
    %8 = vector.broadcast %7 : vector<1x1x128xf32> to vector<9x9x128xf32>
    %9 = arith.addf %6, %8 : vector<9x9x128xf32>
    %cst = arith.constant 0.000000e+00 : f32
    %10 = vector.broadcast %cst : f32 to vector<9x9x128xf32>
    %11 = arith.maximumf %9, %10 : vector<9x9x128xf32>
    %c1 = arith.constant 1 : index
    %c0_8 = arith.constant 0 : index
    %c0_9 = arith.constant 0 : index
    %c0_10 = arith.constant 0 : index
    %c0_11 = arith.constant 0 : index
    %12 = vector.load %arg1[%c1, %c0_8, %c0_9, %c0_10, %c0_11] : memref<4x1x9x9x128xf32, #tpu.memory_space<vmem>>, vector<1x1x9x9x128xf32>
    %13 = vector.shape_cast %12 : vector<1x1x9x9x128xf32> to vector<9x9x128xf32>
    %14 = vector.shape_cast %0 : vector<1x128xf32> to vector<1x1x128xf32>
    %15 = vector.broadcast %14 : vector<1x1x128xf32> to vector<9x9x128xf32>
    %16 = arith.mulf %13, %15 : vector<9x9x128xf32>
    %17 = vector.shape_cast %1 : vector<1x128xf32> to vector<1x1x128xf32>
    %18 = vector.broadcast %17 : vector<1x1x128xf32> to vector<9x9x128xf32>
    %19 = arith.addf %16, %18 : vector<9x9x128xf32>
    %cst_12 = arith.constant 0.000000e+00 : f32
    %20 = vector.broadcast %cst_12 : f32 to vector<9x9x128xf32>
    %21 = arith.maximumf %19, %20 : vector<9x9x128xf32>
    %c2 = arith.constant 2 : index
    %c0_13 = arith.constant 0 : index
    %c0_14 = arith.constant 0 : index
    %c0_15 = arith.constant 0 : index
    %c0_16 = arith.constant 0 : index
    %22 = vector.load %arg1[%c2, %c0_13, %c0_14, %c0_15, %c0_16] : memref<4x1x9x9x128xf32, #tpu.memory_space<vmem>>, vector<1x1x9x9x128xf32>
    %23 = vector.shape_cast %22 : vector<1x1x9x9x128xf32> to vector<9x9x128xf32>
    %24 = vector.shape_cast %0 : vector<1x128xf32> to vector<1x1x128xf32>
    %25 = vector.broadcast %24 : vector<1x1x128xf32> to vector<9x9x128xf32>
    %26 = arith.mulf %23, %25 : vector<9x9x128xf32>
    %27 = vector.shape_cast %1 : vector<1x128xf32> to vector<1x1x128xf32>
    %28 = vector.broadcast %27 : vector<1x1x128xf32> to vector<9x9x128xf32>
    %29 = arith.addf %26, %28 : vector<9x9x128xf32>
    %cst_17 = arith.constant 0.000000e+00 : f32
    %30 = vector.broadcast %cst_17 : f32 to vector<9x9x128xf32>
    %31 = arith.maximumf %29, %30 : vector<9x9x128xf32>
    %c3 = arith.constant 3 : index
    %c0_18 = arith.constant 0 : index
    %c0_19 = arith.constant 0 : index
    %c0_20 = arith.constant 0 : index
    %c0_21 = arith.constant 0 : index
    %32 = vector.load %arg1[%c3, %c0_18, %c0_19, %c0_20, %c0_21] : memref<4x1x9x9x128xf32, #tpu.memory_space<vmem>>, vector<1x1x9x9x128xf32>
    %33 = vector.shape_cast %32 : vector<1x1x9x9x128xf32> to vector<9x9x128xf32>
    %34 = vector.shape_cast %0 : vector<1x128xf32> to vector<1x1x128xf32>
    %35 = vector.broadcast %34 : vector<1x1x128xf32> to vector<9x9x128xf32>
    %36 = arith.mulf %33, %35 : vector<9x9x128xf32>
    %37 = vector.shape_cast %1 : vector<1x128xf32> to vector<1x1x128xf32>
    %38 = vector.broadcast %37 : vector<1x1x128xf32> to vector<9x9x128xf32>
    %39 = arith.addf %36, %38 : vector<9x9x128xf32>
    %cst_22 = arith.constant 0.000000e+00 : f32
    %40 = vector.broadcast %cst_22 : f32 to vector<9x9x128xf32>
    %41 = arith.maximumf %39, %40 : vector<9x9x128xf32>
    %cst_23 = arith.constant 0.000000e+00 : f32
    %42 = vector.broadcast %cst_23 : f32 to vector<64x128xf32>
    %43 = vector.extract_strided_slice %11 {offsets = [0, 0, 0], sizes = [8, 8, 128], strides = [1, 1, 1]} : vector<9x9x128xf32> to vector<8x8x128xf32>
    %44 = vector.shape_cast %43 : vector<8x8x128xf32> to vector<64x128xf32>
    %45 = vector.extract_strided_slice %44 {offsets = [0, 0], sizes = [64, 8], strides = [1, 1]} : vector<64x128xf32> to vector<64x8xf32>
    %46 = arith.truncf %45 : vector<64x8xf32> to vector<64x8xbf16>
    %c0_24 = arith.constant 0 : index
    %c0_25 = arith.constant 0 : index
    %c0_26 = arith.constant 0 : index
    %c0_27 = arith.constant 0 : index
    %47 = vector.load %arg4[%c0_24, %c0_25, %c0_26, %c0_27] : memref<9x2x8x128xbf16, #tpu.memory_space<vmem>>, vector<1x1x8x128xbf16>
    %48 = vector.shape_cast %47 : vector<1x1x8x128xbf16> to vector<8x128xbf16>
    %cst_28 = arith.constant dense<0.000000e+00> : vector<64x128xf32>
    %49 = tpu.matmul %46, %48, %cst_28 {dimension_numbers = #tpu.dot_dimension_numbers<[1], [0], [0], [1], [0, 0, 1, 1], [], []>} : vector<64x8xbf16>, vector<8x128xbf16>, vector<64x128xf32> -> vector<64x128xf32>
    %50 = arith.addf %42, %49 : vector<64x128xf32>
    %51 = vector.extract_strided_slice %44 {offsets = [0, 8], sizes = [64, 8], strides = [1, 1]} : vector<64x128xf32> to vector<64x8xf32>
    %52 = arith.truncf %51 : vector<64x8xf32> to vector<64x8xbf16>
    %c0_29 = arith.constant 0 : index
    %c1_30 = arith.constant 1 : index
    %c0_31 = arith.constant 0 : index
    %c0_32 = arith.constant 0 : index
    %53 = vector.load %arg4[%c0_29, %c1_30, %c0_31, %c0_32] : memref<9x2x8x128xbf16, #tpu.memory_space<vmem>>, vector<1x1x8x128xbf16>
    %54 = vector.shape_cast %53 : vector<1x1x8x128xbf16> to vector<8x128xbf16>
    %cst_33 = arith.constant dense<0.000000e+00> : vector<64x128xf32>
    %55 = tpu.matmul %52, %54, %cst_33 {dimension_numbers = #tpu.dot_dimension_numbers<[1], [0], [0], [1], [0, 0, 1, 1], [], []>} : vector<64x8xbf16>, vector<8x128xbf16>, vector<64x128xf32> -> vector<64x128xf32>
    %56 = arith.addf %50, %55 : vector<64x128xf32>
    %57 = vector.extract_strided_slice %21 {offsets = [0, 0, 0], sizes = [8, 8, 128], strides = [1, 1, 1]} : vector<9x9x128xf32> to vector<8x8x128xf32>
    %58 = vector.shape_cast %57 : vector<8x8x128xf32> to vector<64x128xf32>
    %59 = vector.extract_strided_slice %58 {offsets = [0, 0], sizes = [64, 8], strides = [1, 1]} : vector<64x128xf32> to vector<64x8xf32>
    %60 = arith.truncf %59 : vector<64x8xf32> to vector<64x8xbf16>
    %c1_34 = arith.constant 1 : index
    %c0_35 = arith.constant 0 : index
    %c0_36 = arith.constant 0 : index
    %c0_37 = arith.constant 0 : index
    %61 = vector.load %arg4[%c1_34, %c0_35, %c0_36, %c0_37] : memref<9x2x8x128xbf16, #tpu.memory_space<vmem>>, vector<1x1x8x128xbf16>
    %62 = vector.shape_cast %61 : vector<1x1x8x128xbf16> to vector<8x128xbf16>
    %cst_38 = arith.constant dense<0.000000e+00> : vector<64x128xf32>
    %63 = tpu.matmul %60, %62, %cst_38 {dimension_numbers = #tpu.dot_dimension_numbers<[1], [0], [0], [1], [0, 0, 1, 1], [], []>} : vector<64x8xbf16>, vector<8x128xbf16>, vector<64x128xf32> -> vector<64x128xf32>
    %64 = arith.addf %56, %63 : vector<64x128xf32>
    %65 = vector.extract_strided_slice %58 {offsets = [0, 8], sizes = [64, 8], strides = [1, 1]} : vector<64x128xf32> to vector<64x8xf32>
    %66 = arith.truncf %65 : vector<64x8xf32> to vector<64x8xbf16>
    %c1_39 = arith.constant 1 : index
    %c1_40 = arith.constant 1 : index
    %c0_41 = arith.constant 0 : index
    %c0_42 = arith.constant 0 : index
    %67 = vector.load %arg4[%c1_39, %c1_40, %c0_41, %c0_42] : memref<9x2x8x128xbf16, #tpu.memory_space<vmem>>, vector<1x1x8x128xbf16>
    %68 = vector.shape_cast %67 : vector<1x1x8x128xbf16> to vector<8x128xbf16>
    %cst_43 = arith.constant dense<0.000000e+00> : vector<64x128xf32>
    %69 = tpu.matmul %66, %68, %cst_43 {dimension_numbers = #tpu.dot_dimension_numbers<[1], [0], [0], [1], [0, 0, 1, 1], [], []>} : vector<64x8xbf16>, vector<8x128xbf16>, vector<64x128xf32> -> vector<64x128xf32>
    %70 = arith.addf %64, %69 : vector<64x128xf32>
    %71 = vector.extract_strided_slice %11 {offsets = [0, 1, 0], sizes = [8, 8, 128], strides = [1, 1, 1]} : vector<9x9x128xf32> to vector<8x8x128xf32>
    %72 = vector.shape_cast %71 : vector<8x8x128xf32> to vector<64x128xf32>
    %73 = vector.extract_strided_slice %72 {offsets = [0, 0], sizes = [64, 8], strides = [1, 1]} : vector<64x128xf32> to vector<64x8xf32>
    %74 = arith.truncf %73 : vector<64x8xf32> to vector<64x8xbf16>
    %c2_44 = arith.constant 2 : index
    %c0_45 = arith.constant 0 : index
    %c0_46 = arith.constant 0 : index
    %c0_47 = arith.constant 0 : index
    %75 = vector.load %arg4[%c2_44, %c0_45, %c0_46, %c0_47] : memref<9x2x8x128xbf16, #tpu.memory_space<vmem>>, vector<1x1x8x128xbf16>
    %76 = vector.shape_cast %75 : vector<1x1x8x128xbf16> to vector<8x128xbf16>
    %cst_48 = arith.constant dense<0.000000e+00> : vector<64x128xf32>
    %77 = tpu.matmul %74, %76, %cst_48 {dimension_numbers = #tpu.dot_dimension_numbers<[1], [0], [0], [1], [0, 0, 1, 1], [], []>} : vector<64x8xbf16>, vector<8x128xbf16>, vector<64x128xf32> -> vector<64x128xf32>
    %78 = arith.addf %70, %77 : vector<64x128xf32>
    %79 = vector.extract_strided_slice %72 {offsets = [0, 8], sizes = [64, 8], strides = [1, 1]} : vector<64x128xf32> to vector<64x8xf32>
    %80 = arith.truncf %79 : vector<64x8xf32> to vector<64x8xbf16>
    %c2_49 = arith.constant 2 : index
    %c1_50 = arith.constant 1 : index
    %c0_51 = arith.constant 0 : index
    %c0_52 = arith.constant 0 : index
    %81 = vector.load %arg4[%c2_49, %c1_50, %c0_51, %c0_52] : memref<9x2x8x128xbf16, #tpu.memory_space<vmem>>, vector<1x1x8x128xbf16>
    %82 = vector.shape_cast %81 : vector<1x1x8x128xbf16> to vector<8x128xbf16>
    %cst_53 = arith.constant dense<0.000000e+00> : vector<64x128xf32>
    %83 = tpu.matmul %80, %82, %cst_53 {dimension_numbers = #tpu.dot_dimension_numbers<[1], [0], [0], [1], [0, 0, 1, 1], [], []>} : vector<64x8xbf16>, vector<8x128xbf16>, vector<64x128xf32> -> vector<64x128xf32>
    %84 = arith.addf %78, %83 : vector<64x128xf32>
    %85 = vector.extract_strided_slice %31 {offsets = [0, 0, 0], sizes = [8, 8, 128], strides = [1, 1, 1]} : vector<9x9x128xf32> to vector<8x8x128xf32>
    %86 = vector.shape_cast %85 : vector<8x8x128xf32> to vector<64x128xf32>
    %87 = vector.extract_strided_slice %86 {offsets = [0, 0], sizes = [64, 8], strides = [1, 1]} : vector<64x128xf32> to vector<64x8xf32>
    %88 = arith.truncf %87 : vector<64x8xf32> to vector<64x8xbf16>
    %c3_54 = arith.constant 3 : index
    %c0_55 = arith.constant 0 : index
    %c0_56 = arith.constant 0 : index
    %c0_57 = arith.constant 0 : index
    %89 = vector.load %arg4[%c3_54, %c0_55, %c0_56, %c0_57] : memref<9x2x8x128xbf16, #tpu.memory_space<vmem>>, vector<1x1x8x128xbf16>
    %90 = vector.shape_cast %89 : vector<1x1x8x128xbf16> to vector<8x128xbf16>
    %cst_58 = arith.constant dense<0.000000e+00> : vector<64x128xf32>
    %91 = tpu.matmul %88, %90, %cst_58 {dimension_numbers = #tpu.dot_dimension_numbers<[1], [0], [0], [1], [0, 0, 1, 1], [], []>} : vector<64x8xbf16>, vector<8x128xbf16>, vector<64x128xf32> -> vector<64x128xf32>
    %92 = arith.addf %84, %91 : vector<64x128xf32>
    %93 = vector.extract_strided_slice %86 {offsets = [0, 8], sizes = [64, 8], strides = [1, 1]} : vector<64x128xf32> to vector<64x8xf32>
    %94 = arith.truncf %93 : vector<64x8xf32> to vector<64x8xbf16>
    %c3_59 = arith.constant 3 : index
    %c1_60 = arith.constant 1 : index
    %c0_61 = arith.constant 0 : index
    %c0_62 = arith.constant 0 : index
    %95 = vector.load %arg4[%c3_59, %c1_60, %c0_61, %c0_62] : memref<9x2x8x128xbf16, #tpu.memory_space<vmem>>, vector<1x1x8x128xbf16>
    %96 = vector.shape_cast %95 : vector<1x1x8x128xbf16> to vector<8x128xbf16>
    %cst_63 = arith.constant dense<0.000000e+00> : vector<64x128xf32>
    %97 = tpu.matmul %94, %96, %cst_63 {dimension_numbers = #tpu.dot_dimension_numbers<[1], [0], [0], [1], [0, 0, 1, 1], [], []>} : vector<64x8xbf16>, vector<8x128xbf16>, vector<64x128xf32> -> vector<64x128xf32>
    %98 = arith.addf %92, %97 : vector<64x128xf32>
    %99 = vector.extract_strided_slice %41 {offsets = [0, 0, 0], sizes = [8, 8, 128], strides = [1, 1, 1]} : vector<9x9x128xf32> to vector<8x8x128xf32>
    %100 = vector.shape_cast %99 : vector<8x8x128xf32> to vector<64x128xf32>
    %101 = vector.extract_strided_slice %100 {offsets = [0, 0], sizes = [64, 8], strides = [1, 1]} : vector<64x128xf32> to vector<64x8xf32>
    %102 = arith.truncf %101 : vector<64x8xf32> to vector<64x8xbf16>
    %c4 = arith.constant 4 : index
    %c0_64 = arith.constant 0 : index
    %c0_65 = arith.constant 0 : index
    %c0_66 = arith.constant 0 : index
    %103 = vector.load %arg4[%c4, %c0_64, %c0_65, %c0_66] : memref<9x2x8x128xbf16, #tpu.memory_space<vmem>>, vector<1x1x8x128xbf16>
    %104 = vector.shape_cast %103 : vector<1x1x8x128xbf16> to vector<8x128xbf16>
    %cst_67 = arith.constant dense<0.000000e+00> : vector<64x128xf32>
    %105 = tpu.matmul %102, %104, %cst_67 {dimension_numbers = #tpu.dot_dimension_numbers<[1], [0], [0], [1], [0, 0, 1, 1], [], []>} : vector<64x8xbf16>, vector<8x128xbf16>, vector<64x128xf32> -> vector<64x128xf32>
    %106 = arith.addf %98, %105 : vector<64x128xf32>
    %107 = vector.extract_strided_slice %100 {offsets = [0, 8], sizes = [64, 8], strides = [1, 1]} : vector<64x128xf32> to vector<64x8xf32>
    %108 = arith.truncf %107 : vector<64x8xf32> to vector<64x8xbf16>
    %c4_68 = arith.constant 4 : index
    %c1_69 = arith.constant 1 : index
    %c0_70 = arith.constant 0 : index
    %c0_71 = arith.constant 0 : index
    %109 = vector.load %arg4[%c4_68, %c1_69, %c0_70, %c0_71] : memref<9x2x8x128xbf16, #tpu.memory_space<vmem>>, vector<1x1x8x128xbf16>
    %110 = vector.shape_cast %109 : vector<1x1x8x128xbf16> to vector<8x128xbf16>
    %cst_72 = arith.constant dense<0.000000e+00> : vector<64x128xf32>
    %111 = tpu.matmul %108, %110, %cst_72 {dimension_numbers = #tpu.dot_dimension_numbers<[1], [0], [0], [1], [0, 0, 1, 1], [], []>} : vector<64x8xbf16>, vector<8x128xbf16>, vector<64x128xf32> -> vector<64x128xf32>
    %112 = arith.addf %106, %111 : vector<64x128xf32>
    %113 = vector.extract_strided_slice %31 {offsets = [0, 1, 0], sizes = [8, 8, 128], strides = [1, 1, 1]} : vector<9x9x128xf32> to vector<8x8x128xf32>
    %114 = vector.shape_cast %113 : vector<8x8x128xf32> to vector<64x128xf32>
    %115 = vector.extract_strided_slice %114 {offsets = [0, 0], sizes = [64, 8], strides = [1, 1]} : vector<64x128xf32> to vector<64x8xf32>
    %116 = arith.truncf %115 : vector<64x8xf32> to vector<64x8xbf16>
    %c5 = arith.constant 5 : index
    %c0_73 = arith.constant 0 : index
    %c0_74 = arith.constant 0 : index
    %c0_75 = arith.constant 0 : index
    %117 = vector.load %arg4[%c5, %c0_73, %c0_74, %c0_75] : memref<9x2x8x128xbf16, #tpu.memory_space<vmem>>, vector<1x1x8x128xbf16>
    %118 = vector.shape_cast %117 : vector<1x1x8x128xbf16> to vector<8x128xbf16>
    %cst_76 = arith.constant dense<0.000000e+00> : vector<64x128xf32>
    %119 = tpu.matmul %116, %118, %cst_76 {dimension_numbers = #tpu.dot_dimension_numbers<[1], [0], [0], [1], [0, 0, 1, 1], [], []>} : vector<64x8xbf16>, vector<8x128xbf16>, vector<64x128xf32> -> vector<64x128xf32>
    %120 = arith.addf %112, %119 : vector<64x128xf32>
    %121 = vector.extract_strided_slice %114 {offsets = [0, 8], sizes = [64, 8], strides = [1, 1]} : vector<64x128xf32> to vector<64x8xf32>
    %122 = arith.truncf %121 : vector<64x8xf32> to vector<64x8xbf16>
    %c5_77 = arith.constant 5 : index
    %c1_78 = arith.constant 1 : index
    %c0_79 = arith.constant 0 : index
    %c0_80 = arith.constant 0 : index
    %123 = vector.load %arg4[%c5_77, %c1_78, %c0_79, %c0_80] : memref<9x2x8x128xbf16, #tpu.memory_space<vmem>>, vector<1x1x8x128xbf16>
    %124 = vector.shape_cast %123 : vector<1x1x8x128xbf16> to vector<8x128xbf16>
    %cst_81 = arith.constant dense<0.000000e+00> : vector<64x128xf32>
    %125 = tpu.matmul %122, %124, %cst_81 {dimension_numbers = #tpu.dot_dimension_numbers<[1], [0], [0], [1], [0, 0, 1, 1], [], []>} : vector<64x8xbf16>, vector<8x128xbf16>, vector<64x128xf32> -> vector<64x128xf32>
    %126 = arith.addf %120, %125 : vector<64x128xf32>
    %127 = vector.extract_strided_slice %11 {offsets = [1, 0, 0], sizes = [8, 8, 128], strides = [1, 1, 1]} : vector<9x9x128xf32> to vector<8x8x128xf32>
    %128 = vector.shape_cast %127 : vector<8x8x128xf32> to vector<64x128xf32>
    %129 = vector.extract_strided_slice %128 {offsets = [0, 0], sizes = [64, 8], strides = [1, 1]} : vector<64x128xf32> to vector<64x8xf32>
    %130 = arith.truncf %129 : vector<64x8xf32> to vector<64x8xbf16>
    %c6 = arith.constant 6 : index
    %c0_82 = arith.constant 0 : index
    %c0_83 = arith.constant 0 : index
    %c0_84 = arith.constant 0 : index
    %131 = vector.load %arg4[%c6, %c0_82, %c0_83, %c0_84] : memref<9x2x8x128xbf16, #tpu.memory_space<vmem>>, vector<1x1x8x128xbf16>
    %132 = vector.shape_cast %131 : vector<1x1x8x128xbf16> to vector<8x128xbf16>
    %cst_85 = arith.constant dense<0.000000e+00> : vector<64x128xf32>
    %133 = tpu.matmul %130, %132, %cst_85 {dimension_numbers = #tpu.dot_dimension_numbers<[1], [0], [0], [1], [0, 0, 1, 1], [], []>} : vector<64x8xbf16>, vector<8x128xbf16>, vector<64x128xf32> -> vector<64x128xf32>
    %134 = arith.addf %126, %133 : vector<64x128xf32>
    %135 = vector.extract_strided_slice %128 {offsets = [0, 8], sizes = [64, 8], strides = [1, 1]} : vector<64x128xf32> to vector<64x8xf32>
    %136 = arith.truncf %135 : vector<64x8xf32> to vector<64x8xbf16>
    %c6_86 = arith.constant 6 : index
    %c1_87 = arith.constant 1 : index
    %c0_88 = arith.constant 0 : index
    %c0_89 = arith.constant 0 : index
    %137 = vector.load %arg4[%c6_86, %c1_87, %c0_88, %c0_89] : memref<9x2x8x128xbf16, #tpu.memory_space<vmem>>, vector<1x1x8x128xbf16>
    %138 = vector.shape_cast %137 : vector<1x1x8x128xbf16> to vector<8x128xbf16>
    %cst_90 = arith.constant dense<0.000000e+00> : vector<64x128xf32>
    %139 = tpu.matmul %136, %138, %cst_90 {dimension_numbers = #tpu.dot_dimension_numbers<[1], [0], [0], [1], [0, 0, 1, 1], [], []>} : vector<64x8xbf16>, vector<8x128xbf16>, vector<64x128xf32> -> vector<64x128xf32>
    %140 = arith.addf %134, %139 : vector<64x128xf32>
    %141 = vector.extract_strided_slice %21 {offsets = [1, 0, 0], sizes = [8, 8, 128], strides = [1, 1, 1]} : vector<9x9x128xf32> to vector<8x8x128xf32>
    %142 = vector.shape_cast %141 : vector<8x8x128xf32> to vector<64x128xf32>
    %143 = vector.extract_strided_slice %142 {offsets = [0, 0], sizes = [64, 8], strides = [1, 1]} : vector<64x128xf32> to vector<64x8xf32>
    %144 = arith.truncf %143 : vector<64x8xf32> to vector<64x8xbf16>
    %c7 = arith.constant 7 : index
    %c0_91 = arith.constant 0 : index
    %c0_92 = arith.constant 0 : index
    %c0_93 = arith.constant 0 : index
    %145 = vector.load %arg4[%c7, %c0_91, %c0_92, %c0_93] : memref<9x2x8x128xbf16, #tpu.memory_space<vmem>>, vector<1x1x8x128xbf16>
    %146 = vector.shape_cast %145 : vector<1x1x8x128xbf16> to vector<8x128xbf16>
    %cst_94 = arith.constant dense<0.000000e+00> : vector<64x128xf32>
    %147 = tpu.matmul %144, %146, %cst_94 {dimension_numbers = #tpu.dot_dimension_numbers<[1], [0], [0], [1], [0, 0, 1, 1], [], []>} : vector<64x8xbf16>, vector<8x128xbf16>, vector<64x128xf32> -> vector<64x128xf32>
    %148 = arith.addf %140, %147 : vector<64x128xf32>
    %149 = vector.extract_strided_slice %142 {offsets = [0, 8], sizes = [64, 8], strides = [1, 1]} : vector<64x128xf32> to vector<64x8xf32>
    %150 = arith.truncf %149 : vector<64x8xf32> to vector<64x8xbf16>
    %c7_95 = arith.constant 7 : index
    %c1_96 = arith.constant 1 : index
    %c0_97 = arith.constant 0 : index
    %c0_98 = arith.constant 0 : index
    %151 = vector.load %arg4[%c7_95, %c1_96, %c0_97, %c0_98] : memref<9x2x8x128xbf16, #tpu.memory_space<vmem>>, vector<1x1x8x128xbf16>
    %152 = vector.shape_cast %151 : vector<1x1x8x128xbf16> to vector<8x128xbf16>
    %cst_99 = arith.constant dense<0.000000e+00> : vector<64x128xf32>
    %153 = tpu.matmul %150, %152, %cst_99 {dimension_numbers = #tpu.dot_dimension_numbers<[1], [0], [0], [1], [0, 0, 1, 1], [], []>} : vector<64x8xbf16>, vector<8x128xbf16>, vector<64x128xf32> -> vector<64x128xf32>
    %154 = arith.addf %148, %153 : vector<64x128xf32>
    %155 = vector.extract_strided_slice %11 {offsets = [1, 1, 0], sizes = [8, 8, 128], strides = [1, 1, 1]} : vector<9x9x128xf32> to vector<8x8x128xf32>
    %156 = vector.shape_cast %155 : vector<8x8x128xf32> to vector<64x128xf32>
    %157 = vector.extract_strided_slice %156 {offsets = [0, 0], sizes = [64, 8], strides = [1, 1]} : vector<64x128xf32> to vector<64x8xf32>
    %158 = arith.truncf %157 : vector<64x8xf32> to vector<64x8xbf16>
    %c8 = arith.constant 8 : index
    %c0_100 = arith.constant 0 : index
    %c0_101 = arith.constant 0 : index
    %c0_102 = arith.constant 0 : index
    %159 = vector.load %arg4[%c8, %c0_100, %c0_101, %c0_102] : memref<9x2x8x128xbf16, #tpu.memory_space<vmem>>, vector<1x1x8x128xbf16>
    %160 = vector.shape_cast %159 : vector<1x1x8x128xbf16> to vector<8x128xbf16>
    %cst_103 = arith.constant dense<0.000000e+00> : vector<64x128xf32>
    %161 = tpu.matmul %158, %160, %cst_103 {dimension_numbers = #tpu.dot_dimension_numbers<[1], [0], [0], [1], [0, 0, 1, 1], [], []>} : vector<64x8xbf16>, vector<8x128xbf16>, vector<64x128xf32> -> vector<64x128xf32>
    %162 = arith.addf %154, %161 : vector<64x128xf32>
    %163 = vector.extract_strided_slice %156 {offsets = [0, 8], sizes = [64, 8], strides = [1, 1]} : vector<64x128xf32> to vector<64x8xf32>
    %164 = arith.truncf %163 : vector<64x8xf32> to vector<64x8xbf16>
    %c8_104 = arith.constant 8 : index
    %c1_105 = arith.constant 1 : index
    %c0_106 = arith.constant 0 : index
    %c0_107 = arith.constant 0 : index
    %165 = vector.load %arg4[%c8_104, %c1_105, %c0_106, %c0_107] : memref<9x2x8x128xbf16, #tpu.memory_space<vmem>>, vector<1x1x8x128xbf16>
    %166 = vector.shape_cast %165 : vector<1x1x8x128xbf16> to vector<8x128xbf16>
    %cst_108 = arith.constant dense<0.000000e+00> : vector<64x128xf32>
    %167 = tpu.matmul %164, %166, %cst_108 {dimension_numbers = #tpu.dot_dimension_numbers<[1], [0], [0], [1], [0, 0, 1, 1], [], []>} : vector<64x8xbf16>, vector<8x128xbf16>, vector<64x128xf32> -> vector<64x128xf32>
    %168 = arith.addf %162, %167 : vector<64x128xf32>
    %c0_109 = arith.constant 0 : index
    %c0_110 = arith.constant 0 : index
    %c0_111 = arith.constant 0 : index
    %169 = vector.load %arg5[%c0_109, %c0_110, %c0_111] : memref<1x64x128xf32, #tpu.memory_space<vmem>>, vector<1x64x128xf32>
    %170 = vector.shape_cast %169 : vector<1x64x128xf32> to vector<64x128xf32>
    %171 = vector.shape_cast %168 : vector<64x128xf32> to vector<1x64x128xf32>
    tpu.vector_store %arg5[%c0_109, %c0_110, %c0_111], %171 {strides = array<i32>} : memref<1x64x128xf32, #tpu.memory_space<vmem>>, vector<1x64x128xf32>,
    %cst_112 = arith.constant dense<0.000000e+00> : vector<128xf32>
    %172 = vector.multi_reduction <add>, %168, %cst_112 [0] : vector<64x128xf32> to vector<128xf32>
    %173 = vector.shape_cast %172 : vector<128xf32> to vector<1x128xf32>
    %c0_113 = arith.constant 0 : index
    %c0_114 = arith.constant 0 : index
    %c0_115 = arith.constant 0 : index
    %174 = vector.load %arg6[%c0_113, %c0_114, %c0_115] : memref<1x2x128xf32, #tpu.memory_space<vmem>>, vector<1x1x128xf32>
    %175 = vector.shape_cast %174 : vector<1x1x128xf32> to vector<1x128xf32>
    %176 = vector.shape_cast %173 : vector<1x128xf32> to vector<1x1x128xf32>
    tpu.vector_store %arg6[%c0_113, %c0_114, %c0_115], %176 {strides = array<i32>} : memref<1x2x128xf32, #tpu.memory_space<vmem>>, vector<1x1x128xf32>,
    %177 = arith.mulf %168, %168 : vector<64x128xf32>
    %cst_116 = arith.constant dense<0.000000e+00> : vector<128xf32>
    %178 = vector.multi_reduction <add>, %177, %cst_116 [0] : vector<64x128xf32> to vector<128xf32>
    %179 = vector.shape_cast %178 : vector<128xf32> to vector<1x128xf32>
    %c0_117 = arith.constant 0 : index
    %c1_118 = arith.constant 1 : index
    %c0_119 = arith.constant 0 : index
    %180 = vector.load %arg6[%c0_117, %c1_118, %c0_119] : memref<1x2x128xf32, #tpu.memory_space<vmem>>, vector<1x1x128xf32>
    %181 = vector.shape_cast %180 : vector<1x1x128xf32> to vector<1x128xf32>
    %182 = vector.shape_cast %179 : vector<1x128xf32> to vector<1x1x128xf32>
    tpu.vector_store %arg6[%c0_117, %c1_118, %c0_119], %182 {strides = array<i32>} : memref<1x2x128xf32, #tpu.memory_space<vmem>>, vector<1x1x128xf32>,
    return
  }
  func.func @transform_0(%arg0: i32) -> (i32, i32, i32, i32, i32) {
    %c0_i32 = arith.constant 0 : i32
    %c0_i32_0 = arith.constant 0 : i32
    %c0_i32_1 = arith.constant 0 : i32
    %c0_i32_2 = arith.constant 0 : i32
    %c0_i32_3 = arith.constant 0 : i32
    return %c0_i32, %arg0, %c0_i32_0, %c0_i32_1, %c0_i32_2 : i32, i32, i32, i32, i32
  }
  func.func @transform_1(%arg0: i32) -> (i32, i32) {
    %c0_i32 = arith.constant 0 : i32
    %c0_i32_0 = arith.constant 0 : i32
    %c0_i32_1 = arith.constant 0 : i32
    return %c0_i32, %c0_i32_0 : i32, i32
  }
  func.func @transform_2(%arg0: i32) -> (i32, i32) {
    %c0_i32 = arith.constant 0 : i32
    %c0_i32_0 = arith.constant 0 : i32
    %c0_i32_1 = arith.constant 0 : i32
    return %c0_i32, %c0_i32_0 : i32, i32
  }
  func.func @transform_3(%arg0: i32) -> (i32, i32, i32, i32) {
    %c0_i32 = arith.constant 0 : i32
    %c0_i32_0 = arith.constant 0 : i32
    %c0_i32_1 = arith.constant 0 : i32
    %c0_i32_2 = arith.constant 0 : i32
    %c0_i32_3 = arith.constant 0 : i32
    return %c0_i32, %c0_i32_0, %c0_i32_1, %c0_i32_2 : i32, i32, i32, i32
  }
  func.func @transform_4(%arg0: i32) -> (i32, i32, i32) {
    %c0_i32 = arith.constant 0 : i32
    %c0_i32_0 = arith.constant 0 : i32
    %c0_i32_1 = arith.constant 0 : i32
    return %arg0, %c0_i32, %c0_i32_0 : i32, i32, i32
  }
  func.func @transform_5(%arg0: i32) -> (i32, i32, i32) {
    %c0_i32 = arith.constant 0 : i32
    %c0_i32_0 = arith.constant 0 : i32
    %c0_i32_1 = arith.constant 0 : i32
    return %arg0, %c0_i32, %c0_i32_0 : i32, i32, i32
  }
}

module attributes {stable_mosaic.version = 11 : i64} {
  func.func @_se_kernel(%arg0: i32, %arg1: memref<1x64x128xf32, #tpu.memory_space<vmem>>, %arg2: memref<1x128xf32, #tpu.memory_space<vmem>>, %arg3: memref<1x128xf32, #tpu.memory_space<vmem>>, %arg4: memref<128x128xbf16, #tpu.memory_space<vmem>>, %arg5: memref<1x128xf32, #tpu.memory_space<vmem>>, %arg6: memref<128x128xbf16, #tpu.memory_space<vmem>>, %arg7: memref<1x128xf32, #tpu.memory_space<vmem>>, %arg8: memref<1x1x128xf32, #tpu.memory_space<vmem>>) attributes {dimension_semantics = [#tpu.dimension_semantics<parallel>], iteration_bounds = array<i64: 2>, scalar_prefetch = 0 : i64, scratch_operands = 0 : i64, tpu.core_type = #tpu.core_type<tc>, window_params = [{transform_indices = @transform_0, window_bounds = array<i64: 1, 64, 128>}, {pipeline_mode = #tpu.pipeline_mode<synchronous>, transform_indices = @transform_1, window_bounds = array<i64: 1, 128>}, {pipeline_mode = #tpu.pipeline_mode<synchronous>, transform_indices = @transform_2, window_bounds = array<i64: 1, 128>}, {pipeline_mode = #tpu.pipeline_mode<synchronous>, transform_indices = @transform_3, window_bounds = array<i64: 128, 128>}, {pipeline_mode = #tpu.pipeline_mode<synchronous>, transform_indices = @transform_4, window_bounds = array<i64: 1, 128>}, {pipeline_mode = #tpu.pipeline_mode<synchronous>, transform_indices = @transform_5, window_bounds = array<i64: 128, 128>}, {pipeline_mode = #tpu.pipeline_mode<synchronous>, transform_indices = @transform_6, window_bounds = array<i64: 1, 128>}, {transform_indices = @transform_7, window_bounds = array<i64: 1, 1, 128>}]} {
    %c0 = arith.constant 0 : index
    %c0_0 = arith.constant 0 : index
    %c0_1 = arith.constant 0 : index
    %0 = vector.load %arg1[%c0, %c0_0, %c0_1] : memref<1x64x128xf32, #tpu.memory_space<vmem>>, vector<1x64x128xf32>
    %1 = vector.shape_cast %0 : vector<1x64x128xf32> to vector<64x128xf32>
    %c0_2 = arith.constant 0 : index
    %c0_3 = arith.constant 0 : index
    %2 = vector.load %arg2[%c0_2, %c0_3] : memref<1x128xf32, #tpu.memory_space<vmem>>, vector<1x128xf32>
    %3 = vector.broadcast %2 : vector<1x128xf32> to vector<64x128xf32>
    %4 = arith.mulf %1, %3 : vector<64x128xf32>
    %c0_4 = arith.constant 0 : index
    %c0_5 = arith.constant 0 : index
    %5 = vector.load %arg3[%c0_4, %c0_5] : memref<1x128xf32, #tpu.memory_space<vmem>>, vector<1x128xf32>
    %6 = vector.broadcast %5 : vector<1x128xf32> to vector<64x128xf32>
    %7 = arith.addf %4, %6 : vector<64x128xf32>
    %cst = arith.constant 0.000000e+00 : f32
    %8 = vector.broadcast %cst : f32 to vector<64x128xf32>
    %9 = arith.maximumf %7, %8 : vector<64x128xf32>
    %cst_6 = arith.constant dense<0.000000e+00> : vector<128xf32>
    %10 = vector.multi_reduction <add>, %9, %cst_6 [0] : vector<64x128xf32> to vector<128xf32>
    %11 = vector.shape_cast %10 : vector<128xf32> to vector<1x128xf32>
    %cst_7 = arith.constant 6.400000e+01 : f32
    %12 = vector.broadcast %cst_7 : f32 to vector<1x128xf32>
    %13 = arith.divf %11, %12 : vector<1x128xf32>
    %14 = arith.truncf %13 : vector<1x128xf32> to vector<1x128xbf16>
    %c0_8 = arith.constant 0 : index
    %c0_9 = arith.constant 0 : index
    %15 = vector.load %arg4[%c0_8, %c0_9] : memref<128x128xbf16, #tpu.memory_space<vmem>>, vector<128x128xbf16>
    %cst_10 = arith.constant dense<0.000000e+00> : vector<1x128xf32>
    %16 = tpu.matmul %14, %15, %cst_10 {dimension_numbers = #tpu.dot_dimension_numbers<[1], [0], [0], [1], [0, 0, 1, 1], [], []>} : vector<1x128xbf16>, vector<128x128xbf16>, vector<1x128xf32> -> vector<1x128xf32>
    %c0_11 = arith.constant 0 : index
    %c0_12 = arith.constant 0 : index
    %17 = vector.load %arg5[%c0_11, %c0_12] : memref<1x128xf32, #tpu.memory_space<vmem>>, vector<1x128xf32>
    %18 = arith.addf %16, %17 : vector<1x128xf32>
    %cst_13 = arith.constant 0.000000e+00 : f32
    %19 = vector.broadcast %cst_13 : f32 to vector<1x128xf32>
    %20 = arith.maximumf %18, %19 : vector<1x128xf32>
    %21 = arith.truncf %20 : vector<1x128xf32> to vector<1x128xbf16>
    %c0_14 = arith.constant 0 : index
    %c0_15 = arith.constant 0 : index
    %22 = vector.load %arg6[%c0_14, %c0_15] : memref<128x128xbf16, #tpu.memory_space<vmem>>, vector<128x128xbf16>
    %cst_16 = arith.constant dense<0.000000e+00> : vector<1x128xf32>
    %23 = tpu.matmul %21, %22, %cst_16 {dimension_numbers = #tpu.dot_dimension_numbers<[1], [0], [0], [1], [0, 0, 1, 1], [], []>} : vector<1x128xbf16>, vector<128x128xbf16>, vector<1x128xf32> -> vector<1x128xf32>
    %c0_17 = arith.constant 0 : index
    %c0_18 = arith.constant 0 : index
    %24 = vector.load %arg7[%c0_17, %c0_18] : memref<1x128xf32, #tpu.memory_space<vmem>>, vector<1x128xf32>
    %25 = arith.addf %23, %24 : vector<1x128xf32>
    %26 = arith.negf %25 : vector<1x128xf32>
    %27 = math.exp %26 : vector<1x128xf32>
    %cst_19 = arith.constant 1.000000e+00 : f32
    %28 = vector.broadcast %cst_19 : f32 to vector<1x128xf32>
    %29 = arith.addf %28, %27 : vector<1x128xf32>
    %30 = arith.divf %28, %29 : vector<1x128xf32>
    %c0_20 = arith.constant 0 : index
    %c0_21 = arith.constant 0 : index
    %c0_22 = arith.constant 0 : index
    %31 = vector.load %arg8[%c0_20, %c0_21, %c0_22] : memref<1x1x128xf32, #tpu.memory_space<vmem>>, vector<1x1x128xf32>
    %32 = vector.shape_cast %31 : vector<1x1x128xf32> to vector<1x128xf32>
    %33 = vector.shape_cast %30 : vector<1x128xf32> to vector<1x1x128xf32>
    tpu.vector_store %arg8[%c0_20, %c0_21, %c0_22], %33 {strides = array<i32>} : memref<1x1x128xf32, #tpu.memory_space<vmem>>, vector<1x1x128xf32>,
    return
  }
  func.func @transform_0(%arg0: i32) -> (i32, i32, i32) {
    %c0_i32 = arith.constant 0 : i32
    %c0_i32_0 = arith.constant 0 : i32
    %c0_i32_1 = arith.constant 0 : i32
    return %arg0, %c0_i32, %c0_i32_0 : i32, i32, i32
  }
  func.func @transform_1(%arg0: i32) -> (i32, i32) {
    %c0_i32 = arith.constant 0 : i32
    %c0_i32_0 = arith.constant 0 : i32
    %c0_i32_1 = arith.constant 0 : i32
    return %c0_i32, %c0_i32_0 : i32, i32
  }
  func.func @transform_2(%arg0: i32) -> (i32, i32) {
    %c0_i32 = arith.constant 0 : i32
    %c0_i32_0 = arith.constant 0 : i32
    %c0_i32_1 = arith.constant 0 : i32
    return %c0_i32, %c0_i32_0 : i32, i32
  }
  func.func @transform_3(%arg0: i32) -> (i32, i32) {
    %c0_i32 = arith.constant 0 : i32
    %c0_i32_0 = arith.constant 0 : i32
    %c0_i32_1 = arith.constant 0 : i32
    return %c0_i32, %c0_i32_0 : i32, i32
  }
  func.func @transform_4(%arg0: i32) -> (i32, i32) {
    %c0_i32 = arith.constant 0 : i32
    %c0_i32_0 = arith.constant 0 : i32
    %c0_i32_1 = arith.constant 0 : i32
    return %c0_i32, %c0_i32_0 : i32, i32
  }
  func.func @transform_5(%arg0: i32) -> (i32, i32) {
    %c0_i32 = arith.constant 0 : i32
    %c0_i32_0 = arith.constant 0 : i32
    %c0_i32_1 = arith.constant 0 : i32
    return %c0_i32, %c0_i32_0 : i32, i32
  }
  func.func @transform_6(%arg0: i32) -> (i32, i32) {
    %c0_i32 = arith.constant 0 : i32
    %c0_i32_0 = arith.constant 0 : i32
    %c0_i32_1 = arith.constant 0 : i32
    return %c0_i32, %c0_i32_0 : i32, i32
  }
  func.func @transform_7(%arg0: i32) -> (i32, i32, i32) {
    %c0_i32 = arith.constant 0 : i32
    %c0_i32_0 = arith.constant 0 : i32
    %c0_i32_1 = arith.constant 0 : i32
    return %arg0, %c0_i32, %c0_i32_0 : i32, i32, i32
  }
}

module attributes {stable_mosaic.version = 11 : i64} {
  func.func @_mm_stats_kernel(%arg0: i32, %arg1: i32, %arg2: memref<1x64x128xf32, #tpu.memory_space<vmem>>, %arg3: memref<128x128xbf16, #tpu.memory_space<vmem>>, %arg4: memref<1x128xf32, #tpu.memory_space<vmem>>, %arg5: memref<1x128xf32, #tpu.memory_space<vmem>>, %arg6: memref<1x1x128xf32, #tpu.memory_space<vmem>>, %arg7: memref<1x64x128xf32, #tpu.memory_space<vmem>>, %arg8: memref<1x1x2x128xf32, #tpu.memory_space<vmem>>) attributes {dimension_semantics = [#tpu.dimension_semantics<parallel>, #tpu.dimension_semantics<parallel>], iteration_bounds = array<i64: 2, 1>, scalar_prefetch = 0 : i64, scratch_operands = 0 : i64, tpu.core_type = #tpu.core_type<tc>, window_params = [{transform_indices = @transform_0, window_bounds = array<i64: 1, 64, 128>}, {pipeline_mode = #tpu.pipeline_mode<synchronous>, transform_indices = @transform_1, window_bounds = array<i64: 128, 128>}, {pipeline_mode = #tpu.pipeline_mode<synchronous>, transform_indices = @transform_2, window_bounds = array<i64: 1, 128>}, {pipeline_mode = #tpu.pipeline_mode<synchronous>, transform_indices = @transform_3, window_bounds = array<i64: 1, 128>}, {transform_indices = @transform_4, window_bounds = array<i64: 1, 1, 128>}, {transform_indices = @transform_5, window_bounds = array<i64: 1, 64, 128>}, {transform_indices = @transform_6, window_bounds = array<i64: 1, 1, 2, 128>}]} {
    %c0 = arith.constant 0 : index
    %c0_0 = arith.constant 0 : index
    %c0_1 = arith.constant 0 : index
    %0 = vector.load %arg2[%c0, %c0_0, %c0_1] : memref<1x64x128xf32, #tpu.memory_space<vmem>>, vector<1x64x128xf32>
    %1 = vector.shape_cast %0 : vector<1x64x128xf32> to vector<64x128xf32>
    %c0_2 = arith.constant 0 : index
    %c0_3 = arith.constant 0 : index
    %2 = vector.load %arg4[%c0_2, %c0_3] : memref<1x128xf32, #tpu.memory_space<vmem>>, vector<1x128xf32>
    %3 = vector.broadcast %2 : vector<1x128xf32> to vector<64x128xf32>
    %4 = arith.mulf %1, %3 : vector<64x128xf32>
    %c0_4 = arith.constant 0 : index
    %c0_5 = arith.constant 0 : index
    %5 = vector.load %arg5[%c0_4, %c0_5] : memref<1x128xf32, #tpu.memory_space<vmem>>, vector<1x128xf32>
    %6 = vector.broadcast %5 : vector<1x128xf32> to vector<64x128xf32>
    %7 = arith.addf %4, %6 : vector<64x128xf32>
    %cst = arith.constant 0.000000e+00 : f32
    %8 = vector.broadcast %cst : f32 to vector<64x128xf32>
    %9 = arith.maximumf %7, %8 : vector<64x128xf32>
    %c0_6 = arith.constant 0 : index
    %c0_7 = arith.constant 0 : index
    %c0_8 = arith.constant 0 : index
    %10 = vector.load %arg6[%c0_6, %c0_7, %c0_8] : memref<1x1x128xf32, #tpu.memory_space<vmem>>, vector<1x1x128xf32>
    %11 = vector.shape_cast %10 : vector<1x1x128xf32> to vector<1x128xf32>
    %12 = vector.broadcast %11 : vector<1x128xf32> to vector<64x128xf32>
    %13 = arith.mulf %9, %12 : vector<64x128xf32>
    %14 = arith.truncf %13 : vector<64x128xf32> to vector<64x128xbf16>
    %c0_9 = arith.constant 0 : index
    %c0_10 = arith.constant 0 : index
    %15 = vector.load %arg3[%c0_9, %c0_10] : memref<128x128xbf16, #tpu.memory_space<vmem>>, vector<128x128xbf16>
    %cst_11 = arith.constant dense<0.000000e+00> : vector<64x128xf32>
    %16 = tpu.matmul %14, %15, %cst_11 {dimension_numbers = #tpu.dot_dimension_numbers<[1], [0], [0], [1], [0, 0, 1, 1], [], []>} : vector<64x128xbf16>, vector<128x128xbf16>, vector<64x128xf32> -> vector<64x128xf32>
    %c0_12 = arith.constant 0 : index
    %c0_13 = arith.constant 0 : index
    %c0_14 = arith.constant 0 : index
    %17 = vector.load %arg7[%c0_12, %c0_13, %c0_14] : memref<1x64x128xf32, #tpu.memory_space<vmem>>, vector<1x64x128xf32>
    %18 = vector.shape_cast %17 : vector<1x64x128xf32> to vector<64x128xf32>
    %19 = vector.shape_cast %16 : vector<64x128xf32> to vector<1x64x128xf32>
    tpu.vector_store %arg7[%c0_12, %c0_13, %c0_14], %19 {strides = array<i32>} : memref<1x64x128xf32, #tpu.memory_space<vmem>>, vector<1x64x128xf32>,
    %cst_15 = arith.constant dense<0.000000e+00> : vector<128xf32>
    %20 = vector.multi_reduction <add>, %16, %cst_15 [0] : vector<64x128xf32> to vector<128xf32>
    %21 = vector.shape_cast %20 : vector<128xf32> to vector<1x128xf32>
    %c0_16 = arith.constant 0 : index
    %c0_17 = arith.constant 0 : index
    %c0_18 = arith.constant 0 : index
    %c0_19 = arith.constant 0 : index
    %22 = vector.load %arg8[%c0_16, %c0_17, %c0_18, %c0_19] : memref<1x1x2x128xf32, #tpu.memory_space<vmem>>, vector<1x1x1x128xf32>
    %23 = vector.shape_cast %22 : vector<1x1x1x128xf32> to vector<1x128xf32>
    %24 = vector.shape_cast %21 : vector<1x128xf32> to vector<1x1x1x128xf32>
    tpu.vector_store %arg8[%c0_16, %c0_17, %c0_18, %c0_19], %24 {strides = array<i32>} : memref<1x1x2x128xf32, #tpu.memory_space<vmem>>, vector<1x1x1x128xf32>,
    %25 = arith.mulf %16, %16 : vector<64x128xf32>
    %cst_20 = arith.constant dense<0.000000e+00> : vector<128xf32>
    %26 = vector.multi_reduction <add>, %25, %cst_20 [0] : vector<64x128xf32> to vector<128xf32>
    %27 = vector.shape_cast %26 : vector<128xf32> to vector<1x128xf32>
    %c0_21 = arith.constant 0 : index
    %c0_22 = arith.constant 0 : index
    %c1 = arith.constant 1 : index
    %c0_23 = arith.constant 0 : index
    %28 = vector.load %arg8[%c0_21, %c0_22, %c1, %c0_23] : memref<1x1x2x128xf32, #tpu.memory_space<vmem>>, vector<1x1x1x128xf32>
    %29 = vector.shape_cast %28 : vector<1x1x1x128xf32> to vector<1x128xf32>
    %30 = vector.shape_cast %27 : vector<1x128xf32> to vector<1x1x1x128xf32>
    tpu.vector_store %arg8[%c0_21, %c0_22, %c1, %c0_23], %30 {strides = array<i32>} : memref<1x1x2x128xf32, #tpu.memory_space<vmem>>, vector<1x1x1x128xf32>,
    return
  }
  func.func @transform_0(%arg0: i32, %arg1: i32) -> (i32, i32, i32) {
    %c0_i32 = arith.constant 0 : i32
    %c0_i32_0 = arith.constant 0 : i32
    return %arg0, %arg1, %c0_i32 : i32, i32, i32
  }
  func.func @transform_1(%arg0: i32, %arg1: i32) -> (i32, i32) {
    %c0_i32 = arith.constant 0 : i32
    %c0_i32_0 = arith.constant 0 : i32
    %c0_i32_1 = arith.constant 0 : i32
    return %c0_i32, %c0_i32_0 : i32, i32
  }
  func.func @transform_2(%arg0: i32, %arg1: i32) -> (i32, i32) {
    %c0_i32 = arith.constant 0 : i32
    %c0_i32_0 = arith.constant 0 : i32
    %c0_i32_1 = arith.constant 0 : i32
    return %c0_i32, %c0_i32_0 : i32, i32
  }
  func.func @transform_3(%arg0: i32, %arg1: i32) -> (i32, i32) {
    %c0_i32 = arith.constant 0 : i32
    %c0_i32_0 = arith.constant 0 : i32
    %c0_i32_1 = arith.constant 0 : i32
    return %c0_i32, %c0_i32_0 : i32, i32
  }
  func.func @transform_4(%arg0: i32, %arg1: i32) -> (i32, i32, i32) {
    %c0_i32 = arith.constant 0 : i32
    %c0_i32_0 = arith.constant 0 : i32
    %c0_i32_1 = arith.constant 0 : i32
    return %arg0, %c0_i32, %c0_i32_0 : i32, i32, i32
  }
  func.func @transform_5(%arg0: i32, %arg1: i32) -> (i32, i32, i32) {
    %c0_i32 = arith.constant 0 : i32
    %c0_i32_0 = arith.constant 0 : i32
    return %arg0, %arg1, %c0_i32 : i32, i32, i32
  }
  func.func @transform_6(%arg0: i32, %arg1: i32) -> (i32, i32, i32, i32) {
    %c0_i32 = arith.constant 0 : i32
    %c0_i32_0 = arith.constant 0 : i32
    %c0_i32_1 = arith.constant 0 : i32
    return %arg0, %arg1, %c0_i32, %c0_i32_0 : i32, i32, i32, i32
  }
}

module attributes {stable_mosaic.version = 11 : i64} {
  func.func @_final_kernel(%arg0: i32, %arg1: i32, %arg2: memref<1x64x128xf32, #tpu.memory_space<vmem>>, %arg3: memref<1x128xf32, #tpu.memory_space<vmem>>, %arg4: memref<1x128xf32, #tpu.memory_space<vmem>>, %arg5: memref<1x64x128xf32, #tpu.memory_space<vmem>>, %arg6: memref<1x128xf32, #tpu.memory_space<vmem>>, %arg7: memref<1x128xf32, #tpu.memory_space<vmem>>, %arg8: memref<1x64x128xf32, #tpu.memory_space<vmem>>) attributes {dimension_semantics = [#tpu.dimension_semantics<parallel>, #tpu.dimension_semantics<parallel>], iteration_bounds = array<i64: 2, 1>, scalar_prefetch = 0 : i64, scratch_operands = 0 : i64, tpu.core_type = #tpu.core_type<tc>, window_params = [{transform_indices = @transform_0, window_bounds = array<i64: 1, 64, 128>}, {pipeline_mode = #tpu.pipeline_mode<synchronous>, transform_indices = @transform_1, window_bounds = array<i64: 1, 128>}, {pipeline_mode = #tpu.pipeline_mode<synchronous>, transform_indices = @transform_2, window_bounds = array<i64: 1, 128>}, {transform_indices = @transform_3, window_bounds = array<i64: 1, 64, 128>}, {pipeline_mode = #tpu.pipeline_mode<synchronous>, transform_indices = @transform_4, window_bounds = array<i64: 1, 128>}, {pipeline_mode = #tpu.pipeline_mode<synchronous>, transform_indices = @transform_5, window_bounds = array<i64: 1, 128>}, {transform_indices = @transform_6, window_bounds = array<i64: 1, 64, 128>}]} {
    %c0 = arith.constant 0 : index
    %c0_0 = arith.constant 0 : index
    %c0_1 = arith.constant 0 : index
    %0 = vector.load %arg2[%c0, %c0_0, %c0_1] : memref<1x64x128xf32, #tpu.memory_space<vmem>>, vector<1x64x128xf32>
    %1 = vector.shape_cast %0 : vector<1x64x128xf32> to vector<64x128xf32>
    %c0_2 = arith.constant 0 : index
    %c0_3 = arith.constant 0 : index
    %2 = vector.load %arg3[%c0_2, %c0_3] : memref<1x128xf32, #tpu.memory_space<vmem>>, vector<1x128xf32>
    %3 = vector.broadcast %2 : vector<1x128xf32> to vector<64x128xf32>
    %4 = arith.mulf %1, %3 : vector<64x128xf32>
    %c0_4 = arith.constant 0 : index
    %c0_5 = arith.constant 0 : index
    %5 = vector.load %arg4[%c0_4, %c0_5] : memref<1x128xf32, #tpu.memory_space<vmem>>, vector<1x128xf32>
    %6 = vector.broadcast %5 : vector<1x128xf32> to vector<64x128xf32>
    %7 = arith.addf %4, %6 : vector<64x128xf32>
    %c0_6 = arith.constant 0 : index
    %c0_7 = arith.constant 0 : index
    %c0_8 = arith.constant 0 : index
    %8 = vector.load %arg5[%c0_6, %c0_7, %c0_8] : memref<1x64x128xf32, #tpu.memory_space<vmem>>, vector<1x64x128xf32>
    %9 = vector.shape_cast %8 : vector<1x64x128xf32> to vector<64x128xf32>
    %c0_9 = arith.constant 0 : index
    %c0_10 = arith.constant 0 : index
    %10 = vector.load %arg6[%c0_9, %c0_10] : memref<1x128xf32, #tpu.memory_space<vmem>>, vector<1x128xf32>
    %11 = vector.broadcast %10 : vector<1x128xf32> to vector<64x128xf32>
    %12 = arith.mulf %9, %11 : vector<64x128xf32>
    %c0_11 = arith.constant 0 : index
    %c0_12 = arith.constant 0 : index
    %13 = vector.load %arg7[%c0_11, %c0_12] : memref<1x128xf32, #tpu.memory_space<vmem>>, vector<1x128xf32>
    %14 = vector.broadcast %13 : vector<1x128xf32> to vector<64x128xf32>
    %15 = arith.addf %12, %14 : vector<64x128xf32>
    %16 = arith.addf %7, %15 : vector<64x128xf32>
    %cst = arith.constant 0.000000e+00 : f32
    %17 = vector.broadcast %cst : f32 to vector<64x128xf32>
    %18 = arith.maximumf %16, %17 : vector<64x128xf32>
    %c0_13 = arith.constant 0 : index
    %c0_14 = arith.constant 0 : index
    %c0_15 = arith.constant 0 : index
    %19 = vector.load %arg8[%c0_13, %c0_14, %c0_15] : memref<1x64x128xf32, #tpu.memory_space<vmem>>, vector<1x64x128xf32>
    %20 = vector.shape_cast %19 : vector<1x64x128xf32> to vector<64x128xf32>
    %21 = vector.shape_cast %18 : vector<64x128xf32> to vector<1x64x128xf32>
    tpu.vector_store %arg8[%c0_13, %c0_14, %c0_15], %21 {strides = array<i32>} : memref<1x64x128xf32, #tpu.memory_space<vmem>>, vector<1x64x128xf32>,
    return
  }
  func.func @transform_0(%arg0: i32, %arg1: i32) -> (i32, i32, i32) {
    %c0_i32 = arith.constant 0 : i32
    %c0_i32_0 = arith.constant 0 : i32
    return %arg0, %arg1, %c0_i32 : i32, i32, i32
  }
  func.func @transform_1(%arg0: i32, %arg1: i32) -> (i32, i32) {
    %c0_i32 = arith.constant 0 : i32
    %c0_i32_0 = arith.constant 0 : i32
    %c0_i32_1 = arith.constant 0 : i32
    return %c0_i32, %c0_i32_0 : i32, i32
  }
  func.func @transform_2(%arg0: i32, %arg1: i32) -> (i32, i32) {
    %c0_i32 = arith.constant 0 : i32
    %c0_i32_0 = arith.constant 0 : i32
    %c0_i32_1 = arith.constant 0 : i32
    return %c0_i32, %c0_i32_0 : i32, i32
  }
  func.func @transform_3(%arg0: i32, %arg1: i32) -> (i32, i32, i32) {
    %c0_i32 = arith.constant 0 : i32
    %c0_i32_0 = arith.constant 0 : i32
    return %arg0, %arg1, %c0_i32 : i32, i32, i32
  }
  func.func @transform_4(%arg0: i32, %arg1: i32) -> (i32, i32) {
    %c0_i32 = arith.constant 0 : i32
    %c0_i32_0 = arith.constant 0 : i32
    %c0_i32_1 = arith.constant 0 : i32
    return %c0_i32, %c0_i32_0 : i32, i32
  }
  func.func @transform_5(%arg0: i32, %arg1: i32) -> (i32, i32) {
    %c0_i32 = arith.constant 0 : i32
    %c0_i32_0 = arith.constant 0 : i32
    %c0_i32_1 = arith.constant 0 : i32
    return %c0_i32, %c0_i32_0 : i32, i32
  }
  func.func @transform_6(%arg0: i32, %arg1: i32) -> (i32, i32, i32) {
    %c0_i32 = arith.constant 0 : i32
    %c0_i32_0 = arith.constant 0 : i32
    return %arg0, %arg1, %c0_i32 : i32, i32, i32
  }
}

module attributes {stable_mosaic.version = 11 : i64} {
  func.func @_mm_stats_kernel(%arg0: i32, %arg1: i32, %arg2: memref<1x64x128xf32, #tpu.memory_space<vmem>>, %arg3: memref<128x128xbf16, #tpu.memory_space<vmem>>, %arg4: memref<1x128xf32, #tpu.memory_space<vmem>>, %arg5: memref<1x128xf32, #tpu.memory_space<vmem>>, %arg6: memref<1x1x128xf32, #tpu.memory_space<vmem>>, %arg7: memref<1x64x128xf32, #tpu.memory_space<vmem>>, %arg8: memref<1x1x2x128xf32, #tpu.memory_space<vmem>>) attributes {dimension_semantics = [#tpu.dimension_semantics<parallel>, #tpu.dimension_semantics<parallel>], iteration_bounds = array<i64: 2, 1>, scalar_prefetch = 0 : i64, scratch_operands = 0 : i64, tpu.core_type = #tpu.core_type<tc>, window_params = [{transform_indices = @transform_0, window_bounds = array<i64: 1, 64, 128>}, {pipeline_mode = #tpu.pipeline_mode<synchronous>, transform_indices = @transform_1, window_bounds = array<i64: 128, 128>}, {pipeline_mode = #tpu.pipeline_mode<synchronous>, transform_indices = @transform_2, window_bounds = array<i64: 1, 128>}, {pipeline_mode = #tpu.pipeline_mode<synchronous>, transform_indices = @transform_3, window_bounds = array<i64: 1, 128>}, {pipeline_mode = #tpu.pipeline_mode<synchronous>, transform_indices = @transform_4, window_bounds = array<i64: 1, 1, 128>}, {transform_indices = @transform_5, window_bounds = array<i64: 1, 64, 128>}, {transform_indices = @transform_6, window_bounds = array<i64: 1, 1, 2, 128>}]} {
    %c0 = arith.constant 0 : index
    %c0_0 = arith.constant 0 : index
    %c0_1 = arith.constant 0 : index
    %0 = vector.load %arg2[%c0, %c0_0, %c0_1] : memref<1x64x128xf32, #tpu.memory_space<vmem>>, vector<1x64x128xf32>
    %1 = vector.shape_cast %0 : vector<1x64x128xf32> to vector<64x128xf32>
    %c0_2 = arith.constant 0 : index
    %c0_3 = arith.constant 0 : index
    %c0_4 = arith.constant 0 : index
    %2 = vector.load %arg6[%c0_2, %c0_3, %c0_4] : memref<1x1x128xf32, #tpu.memory_space<vmem>>, vector<1x1x128xf32>
    %3 = vector.shape_cast %2 : vector<1x1x128xf32> to vector<1x128xf32>
    %4 = vector.broadcast %3 : vector<1x128xf32> to vector<64x128xf32>
    %5 = arith.mulf %1, %4 : vector<64x128xf32>
    %6 = arith.truncf %5 : vector<64x128xf32> to vector<64x128xbf16>
    %c0_5 = arith.constant 0 : index
    %c0_6 = arith.constant 0 : index
    %7 = vector.load %arg3[%c0_5, %c0_6] : memref<128x128xbf16, #tpu.memory_space<vmem>>, vector<128x128xbf16>
    %cst = arith.constant dense<0.000000e+00> : vector<64x128xf32>
    %8 = tpu.matmul %6, %7, %cst {dimension_numbers = #tpu.dot_dimension_numbers<[1], [0], [0], [1], [0, 0, 1, 1], [], []>} : vector<64x128xbf16>, vector<128x128xbf16>, vector<64x128xf32> -> vector<64x128xf32>
    %c0_7 = arith.constant 0 : index
    %c0_8 = arith.constant 0 : index
    %c0_9 = arith.constant 0 : index
    %9 = vector.load %arg7[%c0_7, %c0_8, %c0_9] : memref<1x64x128xf32, #tpu.memory_space<vmem>>, vector<1x64x128xf32>
    %10 = vector.shape_cast %9 : vector<1x64x128xf32> to vector<64x128xf32>
    %11 = vector.shape_cast %8 : vector<64x128xf32> to vector<1x64x128xf32>
    tpu.vector_store %arg7[%c0_7, %c0_8, %c0_9], %11 {strides = array<i32>} : memref<1x64x128xf32, #tpu.memory_space<vmem>>, vector<1x64x128xf32>,
    %cst_10 = arith.constant dense<0.000000e+00> : vector<128xf32>
    %12 = vector.multi_reduction <add>, %8, %cst_10 [0] : vector<64x128xf32> to vector<128xf32>
    %13 = vector.shape_cast %12 : vector<128xf32> to vector<1x128xf32>
    %c0_11 = arith.constant 0 : index
    %c0_12 = arith.constant 0 : index
    %c0_13 = arith.constant 0 : index
    %c0_14 = arith.constant 0 : index
    %14 = vector.load %arg8[%c0_11, %c0_12, %c0_13, %c0_14] : memref<1x1x2x128xf32, #tpu.memory_space<vmem>>, vector<1x1x1x128xf32>
    %15 = vector.shape_cast %14 : vector<1x1x1x128xf32> to vector<1x128xf32>
    %16 = vector.shape_cast %13 : vector<1x128xf32> to vector<1x1x1x128xf32>
    tpu.vector_store %arg8[%c0_11, %c0_12, %c0_13, %c0_14], %16 {strides = array<i32>} : memref<1x1x2x128xf32, #tpu.memory_space<vmem>>, vector<1x1x1x128xf32>,
    %17 = arith.mulf %8, %8 : vector<64x128xf32>
    %cst_15 = arith.constant dense<0.000000e+00> : vector<128xf32>
    %18 = vector.multi_reduction <add>, %17, %cst_15 [0] : vector<64x128xf32> to vector<128xf32>
    %19 = vector.shape_cast %18 : vector<128xf32> to vector<1x128xf32>
    %c0_16 = arith.constant 0 : index
    %c0_17 = arith.constant 0 : index
    %c1 = arith.constant 1 : index
    %c0_18 = arith.constant 0 : index
    %20 = vector.load %arg8[%c0_16, %c0_17, %c1, %c0_18] : memref<1x1x2x128xf32, #tpu.memory_space<vmem>>, vector<1x1x1x128xf32>
    %21 = vector.shape_cast %20 : vector<1x1x1x128xf32> to vector<1x128xf32>
    %22 = vector.shape_cast %19 : vector<1x128xf32> to vector<1x1x1x128xf32>
    tpu.vector_store %arg8[%c0_16, %c0_17, %c1, %c0_18], %22 {strides = array<i32>} : memref<1x1x2x128xf32, #tpu.memory_space<vmem>>, vector<1x1x1x128xf32>,
    return
  }
  func.func @transform_0(%arg0: i32, %arg1: i32) -> (i32, i32, i32) {
    %c0_i32 = arith.constant 0 : i32
    %c0_i32_0 = arith.constant 0 : i32
    return %arg0, %arg1, %c0_i32 : i32, i32, i32
  }
  func.func @transform_1(%arg0: i32, %arg1: i32) -> (i32, i32) {
    %c0_i32 = arith.constant 0 : i32
    %c0_i32_0 = arith.constant 0 : i32
    %c0_i32_1 = arith.constant 0 : i32
    return %c0_i32, %c0_i32_0 : i32, i32
  }
  func.func @transform_2(%arg0: i32, %arg1: i32) -> (i32, i32) {
    %c0_i32 = arith.constant 0 : i32
    %c0_i32_0 = arith.constant 0 : i32
    %c0_i32_1 = arith.constant 0 : i32
    return %c0_i32, %c0_i32_0 : i32, i32
  }
  func.func @transform_3(%arg0: i32, %arg1: i32) -> (i32, i32) {
    %c0_i32 = arith.constant 0 : i32
    %c0_i32_0 = arith.constant 0 : i32
    %c0_i32_1 = arith.constant 0 : i32
    return %c0_i32, %c0_i32_0 : i32, i32
  }
  func.func @transform_4(%arg0: i32, %arg1: i32) -> (i32, i32, i32) {
    %c0_i32 = arith.constant 0 : i32
    %c0_i32_0 = arith.constant 0 : i32
    %c0_i32_1 = arith.constant 0 : i32
    %c0_i32_2 = arith.constant 0 : i32
    return %c0_i32, %c0_i32_0, %c0_i32_1 : i32, i32, i32
  }
  func.func @transform_5(%arg0: i32, %arg1: i32) -> (i32, i32, i32) {
    %c0_i32 = arith.constant 0 : i32
    %c0_i32_0 = arith.constant 0 : i32
    return %arg0, %arg1, %c0_i32 : i32, i32, i32
  }
  func.func @transform_6(%arg0: i32, %arg1: i32) -> (i32, i32, i32, i32) {
    %c0_i32 = arith.constant 0 : i32
    %c0_i32_0 = arith.constant 0 : i32
    %c0_i32_1 = arith.constant 0 : i32
    return %arg0, %arg1, %c0_i32, %c0_i32_0 : i32, i32, i32, i32
  }
}

module attributes {stable_mosaic.version = 11 : i64} {
  func.func @_conv2_kernel(%arg0: i32, %arg1: memref<1x1x10x10x128xf32, #tpu.memory_space<vmem>>, %arg2: memref<1x128xf32, #tpu.memory_space<vmem>>, %arg3: memref<1x128xf32, #tpu.memory_space<vmem>>, %arg4: memref<9x2x8x128xbf16, #tpu.memory_space<vmem>>, %arg5: memref<1x64x128xf32, #tpu.memory_space<vmem>>, %arg6: memref<1x2x128xf32, #tpu.memory_space<vmem>>) attributes {dimension_semantics = [#tpu.dimension_semantics<parallel>], iteration_bounds = array<i64: 2>, scalar_prefetch = 0 : i64, scratch_operands = 0 : i64, tpu.core_type = #tpu.core_type<tc>, window_params = [{transform_indices = @transform_0, window_bounds = array<i64: 1, 1, 10, 10, 128>}, {pipeline_mode = #tpu.pipeline_mode<synchronous>, transform_indices = @transform_1, window_bounds = array<i64: 1, 128>}, {pipeline_mode = #tpu.pipeline_mode<synchronous>, transform_indices = @transform_2, window_bounds = array<i64: 1, 128>}, {pipeline_mode = #tpu.pipeline_mode<synchronous>, transform_indices = @transform_3, window_bounds = array<i64: 9, 2, 8, 128>}, {transform_indices = @transform_4, window_bounds = array<i64: 1, 64, 128>}, {transform_indices = @transform_5, window_bounds = array<i64: 1, 2, 128>}]} {
    %c0 = arith.constant 0 : index
    %c0_0 = arith.constant 0 : index
    %0 = vector.load %arg2[%c0, %c0_0] : memref<1x128xf32, #tpu.memory_space<vmem>>, vector<1x128xf32>
    %c0_1 = arith.constant 0 : index
    %c0_2 = arith.constant 0 : index
    %1 = vector.load %arg3[%c0_1, %c0_2] : memref<1x128xf32, #tpu.memory_space<vmem>>, vector<1x128xf32>
    %c0_3 = arith.constant 0 : index
    %c0_4 = arith.constant 0 : index
    %c0_5 = arith.constant 0 : index
    %c0_6 = arith.constant 0 : index
    %c0_7 = arith.constant 0 : index
    %2 = vector.load %arg1[%c0_3, %c0_4, %c0_5, %c0_6, %c0_7] : memref<1x1x10x10x128xf32, #tpu.memory_space<vmem>>, vector<1x1x10x10x128xf32>
    %3 = vector.shape_cast %2 : vector<1x1x10x10x128xf32> to vector<10x10x128xf32>
    %4 = vector.shape_cast %0 : vector<1x128xf32> to vector<1x1x128xf32>
    %5 = vector.broadcast %4 : vector<1x1x128xf32> to vector<10x10x128xf32>
    %6 = arith.mulf %3, %5 : vector<10x10x128xf32>
    %7 = vector.shape_cast %1 : vector<1x128xf32> to vector<1x1x128xf32>
    %8 = vector.broadcast %7 : vector<1x1x128xf32> to vector<10x10x128xf32>
    %9 = arith.addf %6, %8 : vector<10x10x128xf32>
    %cst = arith.constant 0.000000e+00 : f32
    %10 = vector.broadcast %cst : f32 to vector<10x10x128xf32>
    %11 = arith.maximumf %9, %10 : vector<10x10x128xf32>
    %cst_8 = arith.constant 0.000000e+00 : f32
    %12 = vector.broadcast %cst_8 : f32 to vector<64x128xf32>
    %13 = vector.extract_strided_slice %11 {offsets = [0, 0, 0], sizes = [8, 8, 128], strides = [1, 1, 1]} : vector<10x10x128xf32> to vector<8x8x128xf32>
    %14 = vector.shape_cast %13 : vector<8x8x128xf32> to vector<64x128xf32>
    %15 = vector.extract_strided_slice %14 {offsets = [0, 0], sizes = [64, 8], strides = [1, 1]} : vector<64x128xf32> to vector<64x8xf32>
    %16 = arith.truncf %15 : vector<64x8xf32> to vector<64x8xbf16>
    %c0_9 = arith.constant 0 : index
    %c0_10 = arith.constant 0 : index
    %c0_11 = arith.constant 0 : index
    %c0_12 = arith.constant 0 : index
    %17 = vector.load %arg4[%c0_9, %c0_10, %c0_11, %c0_12] : memref<9x2x8x128xbf16, #tpu.memory_space<vmem>>, vector<1x1x8x128xbf16>
    %18 = vector.shape_cast %17 : vector<1x1x8x128xbf16> to vector<8x128xbf16>
    %cst_13 = arith.constant dense<0.000000e+00> : vector<64x128xf32>
    %19 = tpu.matmul %16, %18, %cst_13 {dimension_numbers = #tpu.dot_dimension_numbers<[1], [0], [0], [1], [0, 0, 1, 1], [], []>} : vector<64x8xbf16>, vector<8x128xbf16>, vector<64x128xf32> -> vector<64x128xf32>
    %20 = arith.addf %12, %19 : vector<64x128xf32>
    %21 = vector.extract_strided_slice %14 {offsets = [0, 8], sizes = [64, 8], strides = [1, 1]} : vector<64x128xf32> to vector<64x8xf32>
    %22 = arith.truncf %21 : vector<64x8xf32> to vector<64x8xbf16>
    %c0_14 = arith.constant 0 : index
    %c1 = arith.constant 1 : index
    %c0_15 = arith.constant 0 : index
    %c0_16 = arith.constant 0 : index
    %23 = vector.load %arg4[%c0_14, %c1, %c0_15, %c0_16] : memref<9x2x8x128xbf16, #tpu.memory_space<vmem>>, vector<1x1x8x128xbf16>
    %24 = vector.shape_cast %23 : vector<1x1x8x128xbf16> to vector<8x128xbf16>
    %cst_17 = arith.constant dense<0.000000e+00> : vector<64x128xf32>
    %25 = tpu.matmul %22, %24, %cst_17 {dimension_numbers = #tpu.dot_dimension_numbers<[1], [0], [0], [1], [0, 0, 1, 1], [], []>} : vector<64x8xbf16>, vector<8x128xbf16>, vector<64x128xf32> -> vector<64x128xf32>
    %26 = arith.addf %20, %25 : vector<64x128xf32>
    %27 = vector.extract_strided_slice %11 {offsets = [0, 1, 0], sizes = [8, 8, 128], strides = [1, 1, 1]} : vector<10x10x128xf32> to vector<8x8x128xf32>
    %28 = vector.shape_cast %27 : vector<8x8x128xf32> to vector<64x128xf32>
    %29 = vector.extract_strided_slice %28 {offsets = [0, 0], sizes = [64, 8], strides = [1, 1]} : vector<64x128xf32> to vector<64x8xf32>
    %30 = arith.truncf %29 : vector<64x8xf32> to vector<64x8xbf16>
    %c1_18 = arith.constant 1 : index
    %c0_19 = arith.constant 0 : index
    %c0_20 = arith.constant 0 : index
    %c0_21 = arith.constant 0 : index
    %31 = vector.load %arg4[%c1_18, %c0_19, %c0_20, %c0_21] : memref<9x2x8x128xbf16, #tpu.memory_space<vmem>>, vector<1x1x8x128xbf16>
    %32 = vector.shape_cast %31 : vector<1x1x8x128xbf16> to vector<8x128xbf16>
    %cst_22 = arith.constant dense<0.000000e+00> : vector<64x128xf32>
    %33 = tpu.matmul %30, %32, %cst_22 {dimension_numbers = #tpu.dot_dimension_numbers<[1], [0], [0], [1], [0, 0, 1, 1], [], []>} : vector<64x8xbf16>, vector<8x128xbf16>, vector<64x128xf32> -> vector<64x128xf32>
    %34 = arith.addf %26, %33 : vector<64x128xf32>
    %35 = vector.extract_strided_slice %28 {offsets = [0, 8], sizes = [64, 8], strides = [1, 1]} : vector<64x128xf32> to vector<64x8xf32>
    %36 = arith.truncf %35 : vector<64x8xf32> to vector<64x8xbf16>
    %c1_23 = arith.constant 1 : index
    %c1_24 = arith.constant 1 : index
    %c0_25 = arith.constant 0 : index
    %c0_26 = arith.constant 0 : index
    %37 = vector.load %arg4[%c1_23, %c1_24, %c0_25, %c0_26] : memref<9x2x8x128xbf16, #tpu.memory_space<vmem>>, vector<1x1x8x128xbf16>
    %38 = vector.shape_cast %37 : vector<1x1x8x128xbf16> to vector<8x128xbf16>
    %cst_27 = arith.constant dense<0.000000e+00> : vector<64x128xf32>
    %39 = tpu.matmul %36, %38, %cst_27 {dimension_numbers = #tpu.dot_dimension_numbers<[1], [0], [0], [1], [0, 0, 1, 1], [], []>} : vector<64x8xbf16>, vector<8x128xbf16>, vector<64x128xf32> -> vector<64x128xf32>
    %40 = arith.addf %34, %39 : vector<64x128xf32>
    %41 = vector.extract_strided_slice %11 {offsets = [0, 2, 0], sizes = [8, 8, 128], strides = [1, 1, 1]} : vector<10x10x128xf32> to vector<8x8x128xf32>
    %42 = vector.shape_cast %41 : vector<8x8x128xf32> to vector<64x128xf32>
    %43 = vector.extract_strided_slice %42 {offsets = [0, 0], sizes = [64, 8], strides = [1, 1]} : vector<64x128xf32> to vector<64x8xf32>
    %44 = arith.truncf %43 : vector<64x8xf32> to vector<64x8xbf16>
    %c2 = arith.constant 2 : index
    %c0_28 = arith.constant 0 : index
    %c0_29 = arith.constant 0 : index
    %c0_30 = arith.constant 0 : index
    %45 = vector.load %arg4[%c2, %c0_28, %c0_29, %c0_30] : memref<9x2x8x128xbf16, #tpu.memory_space<vmem>>, vector<1x1x8x128xbf16>
    %46 = vector.shape_cast %45 : vector<1x1x8x128xbf16> to vector<8x128xbf16>
    %cst_31 = arith.constant dense<0.000000e+00> : vector<64x128xf32>
    %47 = tpu.matmul %44, %46, %cst_31 {dimension_numbers = #tpu.dot_dimension_numbers<[1], [0], [0], [1], [0, 0, 1, 1], [], []>} : vector<64x8xbf16>, vector<8x128xbf16>, vector<64x128xf32> -> vector<64x128xf32>
    %48 = arith.addf %40, %47 : vector<64x128xf32>
    %49 = vector.extract_strided_slice %42 {offsets = [0, 8], sizes = [64, 8], strides = [1, 1]} : vector<64x128xf32> to vector<64x8xf32>
    %50 = arith.truncf %49 : vector<64x8xf32> to vector<64x8xbf16>
    %c2_32 = arith.constant 2 : index
    %c1_33 = arith.constant 1 : index
    %c0_34 = arith.constant 0 : index
    %c0_35 = arith.constant 0 : index
    %51 = vector.load %arg4[%c2_32, %c1_33, %c0_34, %c0_35] : memref<9x2x8x128xbf16, #tpu.memory_space<vmem>>, vector<1x1x8x128xbf16>
    %52 = vector.shape_cast %51 : vector<1x1x8x128xbf16> to vector<8x128xbf16>
    %cst_36 = arith.constant dense<0.000000e+00> : vector<64x128xf32>
    %53 = tpu.matmul %50, %52, %cst_36 {dimension_numbers = #tpu.dot_dimension_numbers<[1], [0], [0], [1], [0, 0, 1, 1], [], []>} : vector<64x8xbf16>, vector<8x128xbf16>, vector<64x128xf32> -> vector<64x128xf32>
    %54 = arith.addf %48, %53 : vector<64x128xf32>
    %55 = vector.extract_strided_slice %11 {offsets = [1, 0, 0], sizes = [8, 8, 128], strides = [1, 1, 1]} : vector<10x10x128xf32> to vector<8x8x128xf32>
    %56 = vector.shape_cast %55 : vector<8x8x128xf32> to vector<64x128xf32>
    %57 = vector.extract_strided_slice %56 {offsets = [0, 0], sizes = [64, 8], strides = [1, 1]} : vector<64x128xf32> to vector<64x8xf32>
    %58 = arith.truncf %57 : vector<64x8xf32> to vector<64x8xbf16>
    %c3 = arith.constant 3 : index
    %c0_37 = arith.constant 0 : index
    %c0_38 = arith.constant 0 : index
    %c0_39 = arith.constant 0 : index
    %59 = vector.load %arg4[%c3, %c0_37, %c0_38, %c0_39] : memref<9x2x8x128xbf16, #tpu.memory_space<vmem>>, vector<1x1x8x128xbf16>
    %60 = vector.shape_cast %59 : vector<1x1x8x128xbf16> to vector<8x128xbf16>
    %cst_40 = arith.constant dense<0.000000e+00> : vector<64x128xf32>
    %61 = tpu.matmul %58, %60, %cst_40 {dimension_numbers = #tpu.dot_dimension_numbers<[1], [0], [0], [1], [0, 0, 1, 1], [], []>} : vector<64x8xbf16>, vector<8x128xbf16>, vector<64x128xf32> -> vector<64x128xf32>
    %62 = arith.addf %54, %61 : vector<64x128xf32>
    %63 = vector.extract_strided_slice %56 {offsets = [0, 8], sizes = [64, 8], strides = [1, 1]} : vector<64x128xf32> to vector<64x8xf32>
    %64 = arith.truncf %63 : vector<64x8xf32> to vector<64x8xbf16>
    %c3_41 = arith.constant 3 : index
    %c1_42 = arith.constant 1 : index
    %c0_43 = arith.constant 0 : index
    %c0_44 = arith.constant 0 : index
    %65 = vector.load %arg4[%c3_41, %c1_42, %c0_43, %c0_44] : memref<9x2x8x128xbf16, #tpu.memory_space<vmem>>, vector<1x1x8x128xbf16>
    %66 = vector.shape_cast %65 : vector<1x1x8x128xbf16> to vector<8x128xbf16>
    %cst_45 = arith.constant dense<0.000000e+00> : vector<64x128xf32>
    %67 = tpu.matmul %64, %66, %cst_45 {dimension_numbers = #tpu.dot_dimension_numbers<[1], [0], [0], [1], [0, 0, 1, 1], [], []>} : vector<64x8xbf16>, vector<8x128xbf16>, vector<64x128xf32> -> vector<64x128xf32>
    %68 = arith.addf %62, %67 : vector<64x128xf32>
    %69 = vector.extract_strided_slice %11 {offsets = [1, 1, 0], sizes = [8, 8, 128], strides = [1, 1, 1]} : vector<10x10x128xf32> to vector<8x8x128xf32>
    %70 = vector.shape_cast %69 : vector<8x8x128xf32> to vector<64x128xf32>
    %71 = vector.extract_strided_slice %70 {offsets = [0, 0], sizes = [64, 8], strides = [1, 1]} : vector<64x128xf32> to vector<64x8xf32>
    %72 = arith.truncf %71 : vector<64x8xf32> to vector<64x8xbf16>
    %c4 = arith.constant 4 : index
    %c0_46 = arith.constant 0 : index
    %c0_47 = arith.constant 0 : index
    %c0_48 = arith.constant 0 : index
    %73 = vector.load %arg4[%c4, %c0_46, %c0_47, %c0_48] : memref<9x2x8x128xbf16, #tpu.memory_space<vmem>>, vector<1x1x8x128xbf16>
    %74 = vector.shape_cast %73 : vector<1x1x8x128xbf16> to vector<8x128xbf16>
    %cst_49 = arith.constant dense<0.000000e+00> : vector<64x128xf32>
    %75 = tpu.matmul %72, %74, %cst_49 {dimension_numbers = #tpu.dot_dimension_numbers<[1], [0], [0], [1], [0, 0, 1, 1], [], []>} : vector<64x8xbf16>, vector<8x128xbf16>, vector<64x128xf32> -> vector<64x128xf32>
    %76 = arith.addf %68, %75 : vector<64x128xf32>
    %77 = vector.extract_strided_slice %70 {offsets = [0, 8], sizes = [64, 8], strides = [1, 1]} : vector<64x128xf32> to vector<64x8xf32>
    %78 = arith.truncf %77 : vector<64x8xf32> to vector<64x8xbf16>
    %c4_50 = arith.constant 4 : index
    %c1_51 = arith.constant 1 : index
    %c0_52 = arith.constant 0 : index
    %c0_53 = arith.constant 0 : index
    %79 = vector.load %arg4[%c4_50, %c1_51, %c0_52, %c0_53] : memref<9x2x8x128xbf16, #tpu.memory_space<vmem>>, vector<1x1x8x128xbf16>
    %80 = vector.shape_cast %79 : vector<1x1x8x128xbf16> to vector<8x128xbf16>
    %cst_54 = arith.constant dense<0.000000e+00> : vector<64x128xf32>
    %81 = tpu.matmul %78, %80, %cst_54 {dimension_numbers = #tpu.dot_dimension_numbers<[1], [0], [0], [1], [0, 0, 1, 1], [], []>} : vector<64x8xbf16>, vector<8x128xbf16>, vector<64x128xf32> -> vector<64x128xf32>
    %82 = arith.addf %76, %81 : vector<64x128xf32>
    %83 = vector.extract_strided_slice %11 {offsets = [1, 2, 0], sizes = [8, 8, 128], strides = [1, 1, 1]} : vector<10x10x128xf32> to vector<8x8x128xf32>
    %84 = vector.shape_cast %83 : vector<8x8x128xf32> to vector<64x128xf32>
    %85 = vector.extract_strided_slice %84 {offsets = [0, 0], sizes = [64, 8], strides = [1, 1]} : vector<64x128xf32> to vector<64x8xf32>
    %86 = arith.truncf %85 : vector<64x8xf32> to vector<64x8xbf16>
    %c5 = arith.constant 5 : index
    %c0_55 = arith.constant 0 : index
    %c0_56 = arith.constant 0 : index
    %c0_57 = arith.constant 0 : index
    %87 = vector.load %arg4[%c5, %c0_55, %c0_56, %c0_57] : memref<9x2x8x128xbf16, #tpu.memory_space<vmem>>, vector<1x1x8x128xbf16>
    %88 = vector.shape_cast %87 : vector<1x1x8x128xbf16> to vector<8x128xbf16>
    %cst_58 = arith.constant dense<0.000000e+00> : vector<64x128xf32>
    %89 = tpu.matmul %86, %88, %cst_58 {dimension_numbers = #tpu.dot_dimension_numbers<[1], [0], [0], [1], [0, 0, 1, 1], [], []>} : vector<64x8xbf16>, vector<8x128xbf16>, vector<64x128xf32> -> vector<64x128xf32>
    %90 = arith.addf %82, %89 : vector<64x128xf32>
    %91 = vector.extract_strided_slice %84 {offsets = [0, 8], sizes = [64, 8], strides = [1, 1]} : vector<64x128xf32> to vector<64x8xf32>
    %92 = arith.truncf %91 : vector<64x8xf32> to vector<64x8xbf16>
    %c5_59 = arith.constant 5 : index
    %c1_60 = arith.constant 1 : index
    %c0_61 = arith.constant 0 : index
    %c0_62 = arith.constant 0 : index
    %93 = vector.load %arg4[%c5_59, %c1_60, %c0_61, %c0_62] : memref<9x2x8x128xbf16, #tpu.memory_space<vmem>>, vector<1x1x8x128xbf16>
    %94 = vector.shape_cast %93 : vector<1x1x8x128xbf16> to vector<8x128xbf16>
    %cst_63 = arith.constant dense<0.000000e+00> : vector<64x128xf32>
    %95 = tpu.matmul %92, %94, %cst_63 {dimension_numbers = #tpu.dot_dimension_numbers<[1], [0], [0], [1], [0, 0, 1, 1], [], []>} : vector<64x8xbf16>, vector<8x128xbf16>, vector<64x128xf32> -> vector<64x128xf32>
    %96 = arith.addf %90, %95 : vector<64x128xf32>
    %97 = vector.extract_strided_slice %11 {offsets = [2, 0, 0], sizes = [8, 8, 128], strides = [1, 1, 1]} : vector<10x10x128xf32> to vector<8x8x128xf32>
    %98 = vector.shape_cast %97 : vector<8x8x128xf32> to vector<64x128xf32>
    %99 = vector.extract_strided_slice %98 {offsets = [0, 0], sizes = [64, 8], strides = [1, 1]} : vector<64x128xf32> to vector<64x8xf32>
    %100 = arith.truncf %99 : vector<64x8xf32> to vector<64x8xbf16>
    %c6 = arith.constant 6 : index
    %c0_64 = arith.constant 0 : index
    %c0_65 = arith.constant 0 : index
    %c0_66 = arith.constant 0 : index
    %101 = vector.load %arg4[%c6, %c0_64, %c0_65, %c0_66] : memref<9x2x8x128xbf16, #tpu.memory_space<vmem>>, vector<1x1x8x128xbf16>
    %102 = vector.shape_cast %101 : vector<1x1x8x128xbf16> to vector<8x128xbf16>
    %cst_67 = arith.constant dense<0.000000e+00> : vector<64x128xf32>
    %103 = tpu.matmul %100, %102, %cst_67 {dimension_numbers = #tpu.dot_dimension_numbers<[1], [0], [0], [1], [0, 0, 1, 1], [], []>} : vector<64x8xbf16>, vector<8x128xbf16>, vector<64x128xf32> -> vector<64x128xf32>
    %104 = arith.addf %96, %103 : vector<64x128xf32>
    %105 = vector.extract_strided_slice %98 {offsets = [0, 8], sizes = [64, 8], strides = [1, 1]} : vector<64x128xf32> to vector<64x8xf32>
    %106 = arith.truncf %105 : vector<64x8xf32> to vector<64x8xbf16>
    %c6_68 = arith.constant 6 : index
    %c1_69 = arith.constant 1 : index
    %c0_70 = arith.constant 0 : index
    %c0_71 = arith.constant 0 : index
    %107 = vector.load %arg4[%c6_68, %c1_69, %c0_70, %c0_71] : memref<9x2x8x128xbf16, #tpu.memory_space<vmem>>, vector<1x1x8x128xbf16>
    %108 = vector.shape_cast %107 : vector<1x1x8x128xbf16> to vector<8x128xbf16>
    %cst_72 = arith.constant dense<0.000000e+00> : vector<64x128xf32>
    %109 = tpu.matmul %106, %108, %cst_72 {dimension_numbers = #tpu.dot_dimension_numbers<[1], [0], [0], [1], [0, 0, 1, 1], [], []>} : vector<64x8xbf16>, vector<8x128xbf16>, vector<64x128xf32> -> vector<64x128xf32>
    %110 = arith.addf %104, %109 : vector<64x128xf32>
    %111 = vector.extract_strided_slice %11 {offsets = [2, 1, 0], sizes = [8, 8, 128], strides = [1, 1, 1]} : vector<10x10x128xf32> to vector<8x8x128xf32>
    %112 = vector.shape_cast %111 : vector<8x8x128xf32> to vector<64x128xf32>
    %113 = vector.extract_strided_slice %112 {offsets = [0, 0], sizes = [64, 8], strides = [1, 1]} : vector<64x128xf32> to vector<64x8xf32>
    %114 = arith.truncf %113 : vector<64x8xf32> to vector<64x8xbf16>
    %c7 = arith.constant 7 : index
    %c0_73 = arith.constant 0 : index
    %c0_74 = arith.constant 0 : index
    %c0_75 = arith.constant 0 : index
    %115 = vector.load %arg4[%c7, %c0_73, %c0_74, %c0_75] : memref<9x2x8x128xbf16, #tpu.memory_space<vmem>>, vector<1x1x8x128xbf16>
    %116 = vector.shape_cast %115 : vector<1x1x8x128xbf16> to vector<8x128xbf16>
    %cst_76 = arith.constant dense<0.000000e+00> : vector<64x128xf32>
    %117 = tpu.matmul %114, %116, %cst_76 {dimension_numbers = #tpu.dot_dimension_numbers<[1], [0], [0], [1], [0, 0, 1, 1], [], []>} : vector<64x8xbf16>, vector<8x128xbf16>, vector<64x128xf32> -> vector<64x128xf32>
    %118 = arith.addf %110, %117 : vector<64x128xf32>
    %119 = vector.extract_strided_slice %112 {offsets = [0, 8], sizes = [64, 8], strides = [1, 1]} : vector<64x128xf32> to vector<64x8xf32>
    %120 = arith.truncf %119 : vector<64x8xf32> to vector<64x8xbf16>
    %c7_77 = arith.constant 7 : index
    %c1_78 = arith.constant 1 : index
    %c0_79 = arith.constant 0 : index
    %c0_80 = arith.constant 0 : index
    %121 = vector.load %arg4[%c7_77, %c1_78, %c0_79, %c0_80] : memref<9x2x8x128xbf16, #tpu.memory_space<vmem>>, vector<1x1x8x128xbf16>
    %122 = vector.shape_cast %121 : vector<1x1x8x128xbf16> to vector<8x128xbf16>
    %cst_81 = arith.constant dense<0.000000e+00> : vector<64x128xf32>
    %123 = tpu.matmul %120, %122, %cst_81 {dimension_numbers = #tpu.dot_dimension_numbers<[1], [0], [0], [1], [0, 0, 1, 1], [], []>} : vector<64x8xbf16>, vector<8x128xbf16>, vector<64x128xf32> -> vector<64x128xf32>
    %124 = arith.addf %118, %123 : vector<64x128xf32>
    %125 = vector.extract_strided_slice %11 {offsets = [2, 2, 0], sizes = [8, 8, 128], strides = [1, 1, 1]} : vector<10x10x128xf32> to vector<8x8x128xf32>
    %126 = vector.shape_cast %125 : vector<8x8x128xf32> to vector<64x128xf32>
    %127 = vector.extract_strided_slice %126 {offsets = [0, 0], sizes = [64, 8], strides = [1, 1]} : vector<64x128xf32> to vector<64x8xf32>
    %128 = arith.truncf %127 : vector<64x8xf32> to vector<64x8xbf16>
    %c8 = arith.constant 8 : index
    %c0_82 = arith.constant 0 : index
    %c0_83 = arith.constant 0 : index
    %c0_84 = arith.constant 0 : index
    %129 = vector.load %arg4[%c8, %c0_82, %c0_83, %c0_84] : memref<9x2x8x128xbf16, #tpu.memory_space<vmem>>, vector<1x1x8x128xbf16>
    %130 = vector.shape_cast %129 : vector<1x1x8x128xbf16> to vector<8x128xbf16>
    %cst_85 = arith.constant dense<0.000000e+00> : vector<64x128xf32>
    %131 = tpu.matmul %128, %130, %cst_85 {dimension_numbers = #tpu.dot_dimension_numbers<[1], [0], [0], [1], [0, 0, 1, 1], [], []>} : vector<64x8xbf16>, vector<8x128xbf16>, vector<64x128xf32> -> vector<64x128xf32>
    %132 = arith.addf %124, %131 : vector<64x128xf32>
    %133 = vector.extract_strided_slice %126 {offsets = [0, 8], sizes = [64, 8], strides = [1, 1]} : vector<64x128xf32> to vector<64x8xf32>
    %134 = arith.truncf %133 : vector<64x8xf32> to vector<64x8xbf16>
    %c8_86 = arith.constant 8 : index
    %c1_87 = arith.constant 1 : index
    %c0_88 = arith.constant 0 : index
    %c0_89 = arith.constant 0 : index
    %135 = vector.load %arg4[%c8_86, %c1_87, %c0_88, %c0_89] : memref<9x2x8x128xbf16, #tpu.memory_space<vmem>>, vector<1x1x8x128xbf16>
    %136 = vector.shape_cast %135 : vector<1x1x8x128xbf16> to vector<8x128xbf16>
    %cst_90 = arith.constant dense<0.000000e+00> : vector<64x128xf32>
    %137 = tpu.matmul %134, %136, %cst_90 {dimension_numbers = #tpu.dot_dimension_numbers<[1], [0], [0], [1], [0, 0, 1, 1], [], []>} : vector<64x8xbf16>, vector<8x128xbf16>, vector<64x128xf32> -> vector<64x128xf32>
    %138 = arith.addf %132, %137 : vector<64x128xf32>
    %c0_91 = arith.constant 0 : index
    %c0_92 = arith.constant 0 : index
    %c0_93 = arith.constant 0 : index
    %139 = vector.load %arg5[%c0_91, %c0_92, %c0_93] : memref<1x64x128xf32, #tpu.memory_space<vmem>>, vector<1x64x128xf32>
    %140 = vector.shape_cast %139 : vector<1x64x128xf32> to vector<64x128xf32>
    %141 = vector.shape_cast %138 : vector<64x128xf32> to vector<1x64x128xf32>
    tpu.vector_store %arg5[%c0_91, %c0_92, %c0_93], %141 {strides = array<i32>} : memref<1x64x128xf32, #tpu.memory_space<vmem>>, vector<1x64x128xf32>,
    %cst_94 = arith.constant dense<0.000000e+00> : vector<128xf32>
    %142 = vector.multi_reduction <add>, %138, %cst_94 [0] : vector<64x128xf32> to vector<128xf32>
    %143 = vector.shape_cast %142 : vector<128xf32> to vector<1x128xf32>
    %c0_95 = arith.constant 0 : index
    %c0_96 = arith.constant 0 : index
    %c0_97 = arith.constant 0 : index
    %144 = vector.load %arg6[%c0_95, %c0_96, %c0_97] : memref<1x2x128xf32, #tpu.memory_space<vmem>>, vector<1x1x128xf32>
    %145 = vector.shape_cast %144 : vector<1x1x128xf32> to vector<1x128xf32>
    %146 = vector.shape_cast %143 : vector<1x128xf32> to vector<1x1x128xf32>
    tpu.vector_store %arg6[%c0_95, %c0_96, %c0_97], %146 {strides = array<i32>} : memref<1x2x128xf32, #tpu.memory_space<vmem>>, vector<1x1x128xf32>,
    %147 = arith.mulf %138, %138 : vector<64x128xf32>
    %cst_98 = arith.constant dense<0.000000e+00> : vector<128xf32>
    %148 = vector.multi_reduction <add>, %147, %cst_98 [0] : vector<64x128xf32> to vector<128xf32>
    %149 = vector.shape_cast %148 : vector<128xf32> to vector<1x128xf32>
    %c0_99 = arith.constant 0 : index
    %c1_100 = arith.constant 1 : index
    %c0_101 = arith.constant 0 : index
    %150 = vector.load %arg6[%c0_99, %c1_100, %c0_101] : memref<1x2x128xf32, #tpu.memory_space<vmem>>, vector<1x1x128xf32>
    %151 = vector.shape_cast %150 : vector<1x1x128xf32> to vector<1x128xf32>
    %152 = vector.shape_cast %149 : vector<1x128xf32> to vector<1x1x128xf32>
    tpu.vector_store %arg6[%c0_99, %c1_100, %c0_101], %152 {strides = array<i32>} : memref<1x2x128xf32, #tpu.memory_space<vmem>>, vector<1x1x128xf32>,
    return
  }
  func.func @transform_0(%arg0: i32) -> (i32, i32, i32, i32, i32) {
    %c0_i32 = arith.constant 0 : i32
    %c0_i32_0 = arith.constant 0 : i32
    %c0_i32_1 = arith.constant 0 : i32
    %c0_i32_2 = arith.constant 0 : i32
    %c0_i32_3 = arith.constant 0 : i32
    return %c0_i32, %arg0, %c0_i32_0, %c0_i32_1, %c0_i32_2 : i32, i32, i32, i32, i32
  }
  func.func @transform_1(%arg0: i32) -> (i32, i32) {
    %c0_i32 = arith.constant 0 : i32
    %c0_i32_0 = arith.constant 0 : i32
    %c0_i32_1 = arith.constant 0 : i32
    return %c0_i32, %c0_i32_0 : i32, i32
  }
  func.func @transform_2(%arg0: i32) -> (i32, i32) {
    %c0_i32 = arith.constant 0 : i32
    %c0_i32_0 = arith.constant 0 : i32
    %c0_i32_1 = arith.constant 0 : i32
    return %c0_i32, %c0_i32_0 : i32, i32
  }
  func.func @transform_3(%arg0: i32) -> (i32, i32, i32, i32) {
    %c0_i32 = arith.constant 0 : i32
    %c0_i32_0 = arith.constant 0 : i32
    %c0_i32_1 = arith.constant 0 : i32
    %c0_i32_2 = arith.constant 0 : i32
    %c0_i32_3 = arith.constant 0 : i32
    return %c0_i32, %c0_i32_0, %c0_i32_1, %c0_i32_2 : i32, i32, i32, i32
  }
  func.func @transform_4(%arg0: i32) -> (i32, i32, i32) {
    %c0_i32 = arith.constant 0 : i32
    %c0_i32_0 = arith.constant 0 : i32
    %c0_i32_1 = arith.constant 0 : i32
    return %arg0, %c0_i32, %c0_i32_0 : i32, i32, i32
  }
  func.func @transform_5(%arg0: i32) -> (i32, i32, i32) {
    %c0_i32 = arith.constant 0 : i32
    %c0_i32_0 = arith.constant 0 : i32
    %c0_i32_1 = arith.constant 0 : i32
    return %arg0, %c0_i32, %c0_i32_0 : i32, i32, i32
  }
}

</mosaic_0001>

<bundles_post_ra>
// kernel: regstage_forward.11
= control target key start
LH: loop header
LB: loop body
LE: loop exit
PB: predicated region body
PF: predicated region fallthrough
CT: control target
= control target key end

     0   :  { %s977_s21 = smov 0   ;;  %s979_s22 = smov 0   ;;  %s1264_s0 = inlined_call_operand.vmem [shape: f32[2,256,128], index: 0, kind: input, shape index: {}]   ;;  %s1265_s1 = inlined_call_operand.vmem [shape: bf16[128,128], index: 1, kind: input, shape index: {}]   ;;  %s1266_s2 = inlined_call_operand.vmem [shape: f32[1,128], index: 2, kind: input, shape index: {}]   ;;  %s1267_s3 = inlined_call_operand.vmem [shape: f32[1,128], index: 3, kind: input, shape index: {}]   ;;  %s1268_s4 = inlined_call_operand.vmem [shape: f32[1,1,128], index: 4, kind: input, shape index: {}]   ;;  %s1269_s5 = inlined_call_operand.vmem [shape: f32[2,256,128], index: 5, kind: output, shape index: {0}]   ;;  %s1270_s6 = inlined_call_operand.vmem [shape: f32[2,1,2,128], index: 6, kind: output, shape index: {1}]  }
   0x1   :  { %s981_s23 = smov 0  }
   0x2 LB: > { %s29_s2 = sadd.s32 1, %s936_s22  ;;  %p819_p0 = scmp.ge.s32.totalorder %s940_s23, 1  ;;  %s940_s23 = sphi %s981_s23, %s17_s23   ;;  %s936_s22 = sphi %s979_s22, %s1272_s22   ;;  %s932_s21 = sphi %s977_s21, %s1271_s21  }
   0x3   : > { %p31_p1 = scmp.ge.s32.totalorder %s29_s2, 2  ;;  %p238_p2 = scmp.lt.s32.totalorder %s940_s23, 3 }
   0x5   : > { %s1274_s2 = smov (%p31_p1, %s29_s2), 0  ;;  %p239_p3 = pnand %p819_p0, %p238_p2 }
   0x6   : > { %p284_p4 = scmp.lt.s32.totalorder (!%p239_p3), %s932_s21, 1 }
   0x7   : > { %242 = sbr.rel (%p239_p3) target bundleno = 291 (0x123), region = 40 }
   0xc   : > { %v868_v0 = vld [vmem:[%s1265_s1 + $0x38] sm:$0xff]  ;;  %v867_v1 = vld [vmem:[%s1265_s1 + $0x30] sm:$0xff]  ;;  %v866_v2 = vld [vmem:[%s1265_s1 + $0x28] sm:$0xff]  ;;  %s1276_s21 = smov (!%p284_p4, %s932_s21), 1 }
   0xd   : > { %458 = vmatpush.bf16.msra.mxu0 %v868_v0  ;;  %869 = vmatpush.bf16.msra.mxu1 %v868_v0  ;;  %v865_v3 = vld [vmem:[%s1265_s1 + $0x20] sm:$0xff]  ;;  %v864_v4 = vld [vmem:[%s1265_s1 + $0x18] sm:$0xff]  ;;  %s859_s9 = sshll.u32 %s1276_s21, 8  ;;  %v863_v5 = vld [vmem:[%s1265_s1 + $0x10] sm:$0xff]  ;;  %s824_s26 = sshll.u32 %s1276_s21, 1 }
   0xe   : > { %870 = vmatpush.bf16.msra.mxu2 %v868_v0  ;;  %871 = vmatpush.bf16.msra.mxu3 %v868_v0  ;;  %s1021_s14 = scalar_lea.vmem %s1264_s0, %s859_s9  ;;  %v862_v6 = vld [vmem:[%s1265_s1 + $0x8] sm:$0xff]  ;;  %v1030_v8 = vld [vmem:[%s1268_s4] ss:$0 sm:$0xff]  ;;  %s1103_s25 = scalar_lea.vmem %s1269_s5, %s859_s9 }
   0xf   : > { %v310_v7 = vld [vmem:[%s1021_s14] sm:$0xff]  ;;  %v311_v9 = vld [vmem:[%s1021_s14 + $0x8] sm:$0xff]  ;;  %v312_v29 = vld [vmem:[%s1021_s14 + $0x10] sm:$0xff]  ;;  %s309_s29 = scalar_lea.vmem %s1270_s6, %s824_s26 }
  0x10   : > { %v318_v10 = vld [vmem:[%s1021_s14 + $0x40] sm:$0xff]  ;;  %v319_v11 = vld [vmem:[%s1021_s14 + $0x48] sm:$0xff]  ;;  %v346_v14 = vmul.f32 %v1030_v8, %v310_v7  ;;  %v347_v15 = vmul.f32 %v1030_v8, %v311_v9  ;;  %v313_v30 = vld [vmem:[%s1021_s14 + $0x18] sm:$0xff]  ;;  %v348_v35 = vmul.f32 %v1030_v8, %v312_v29 }
  0x11   : > { %459 = vmatpush.bf16.msra.mxu0 %v867_v1  ;;  %872 = vmatpush.bf16.msra.mxu1 %v867_v1  ;;  %v326_v12 = vld [vmem:[%s1021_s14 + $0x80] sm:$0xff]  ;;  %v327_v13 = vld [vmem:[%s1021_s14 + $0x88] sm:$0xff]  ;;  %v354_v16 = vmul.f32 %v1030_v8, %v318_v10  ;;  %v355_v17 = vmul.f32 %v1030_v8, %v319_v11  ;;  %v320_v31 = vld [vmem:[%s1021_s14 + $0x50] sm:$0xff]  ;;  %v349_v36 = vmul.f32 %v1030_v8, %v313_v30 }
  0x12   : > { %873 = vmatpush.bf16.msra.mxu2 %v867_v1  ;;  %874 = vmatpush.bf16.msra.mxu3 %v867_v1  ;;  %v861_v18 = vld [vmem:[%s1265_s1] sm:$0xff]  ;;  %v362_v19 = vmul.f32 %v1030_v8, %v326_v12  ;;  %v363_v20 = vmul.f32 %v1030_v8, %v327_v13  ;;  %v378_v21 = vpack.c.bf16 %v347_v15, %v346_v14  ;;  %v335_v25 = vld [vmem:[%s1021_s14 + $0xc8] sm:$0xff]  ;;  %v321_v32 = vld [vmem:[%s1021_s14 + $0x58] sm:$0xff] }
  0x13   : > { %v382_v22 = vpack.c.bf16 %v355_v17, %v354_v16  ;;  %v334_v24 = vld [vmem:[%s1021_s14 + $0xc0] sm:$0xff]  ;;  %v371_v27 = vmul.f32 %v1030_v8, %v335_v25  ;;  %v328_v33 = vld [vmem:[%s1021_s14 + $0x90] sm:$0xff]  ;;  %v329_v34 = vld [vmem:[%s1021_s14 + $0x98] sm:$0xff]  ;;  %v356_v37 = vmul.f32 %v1030_v8, %v320_v31  ;;  %v357_v38 = vmul.f32 %v1030_v8, %v321_v32 }
  0x14   : > { %v386_v23 = vpack.c.bf16 %v363_v20, %v362_v19  ;;  %v370_v26 = vmul.f32 %v1030_v8, %v334_v24  ;;  %v364_v39 = vmul.f32 %v1030_v8, %v328_v33  ;;  %v365_v40 = vmul.f32 %v1030_v8, %v329_v34  ;;  %v336_v44 = vld [vmem:[%s1021_s14 + $0xd0] sm:$0xff]  ;;  %v337_v45 = vld [vmem:[%s1021_s14 + $0xd8] sm:$0xff]  ;;  %v314_v49 = vld [vmem:[%s1021_s14 + $0x20] sm:$0xff] }
  0x15   : > { %460 = vmatpush.bf16.msra.mxu0 %v866_v2  ;;  %875 = vmatpush.bf16.msra.mxu1 %v866_v2  ;;  %v379_v41 = vpack.c.bf16 %v349_v36, %v348_v35  ;;  %v383_v42 = vpack.c.bf16 %v357_v38, %v356_v37  ;;  %v372_v46 = vmul.f32 %v1030_v8, %v336_v44  ;;  %v315_v50 = vld [vmem:[%s1021_s14 + $0x28] sm:$0xff]  ;;  %v322_v51 = vld [vmem:[%s1021_s14 + $0x60] sm:$0xff]  ;;  %v324_v7 = vld [vmem:[%s1021_s14 + $0x70] sm:$0xff] }
  0x16   : > { %876 = vmatpush.bf16.msra.mxu2 %v866_v2  ;;  %877 = vmatpush.bf16.msra.mxu3 %v866_v2  ;;  %v390_v28 = vpack.c.bf16 %v371_v27, %v370_v26  ;;  %v387_v43 = vpack.c.bf16 %v365_v40, %v364_v39  ;;  %v373_v47 = vmul.f32 %v1030_v8, %v337_v45  ;;  %v323_v52 = vld [vmem:[%s1021_s14 + $0x68] sm:$0xff]  ;;  %v330_v53 = vld [vmem:[%s1021_s14 + $0xa0] sm:$0xff]  ;;  %v325_v9 = vld [vmem:[%s1021_s14 + $0x78] sm:$0xff] }
  0x17   : > { %v331_v54 = vld [vmem:[%s1021_s14 + $0xa8] sm:$0xff]  ;;  %v350_v55 = vmul.f32 %v1030_v8, %v314_v49  ;;  %v351_v56 = vmul.f32 %v1030_v8, %v315_v50  ;;  %v358_v57 = vmul.f32 %v1030_v8, %v322_v51  ;;  %v359_v58 = vmul.f32 %v1030_v8, %v323_v52  ;;  %v338_v59 = vld [vmem:[%s1021_s14 + $0xe0] sm:$0xff]  ;;  %v332_v10 = vld [vmem:[%s1021_s14 + $0xb0] sm:$0xff] }
  0x18   : > { %v391_v48 = vpack.c.bf16 %v373_v47, %v372_v46  ;;  %v339_v60 = vld [vmem:[%s1021_s14 + $0xe8] sm:$0xff]  ;;  %v366_v61 = vmul.f32 %v1030_v8, %v330_v53  ;;  %v367_v62 = vmul.f32 %v1030_v8, %v331_v54  ;;  %v374_v63 = vmul.f32 %v1030_v8, %v338_v59  ;;  %v333_v11 = vld [vmem:[%s1021_s14 + $0xb8] sm:$0xff]  ;;  %v340_v16 = vld [vmem:[%s1021_s14 + $0xf0] sm:$0xff] }
  0x19   : > { %461 = vmatpush.bf16.msra.mxu0 %v865_v3  ;;  %878 = vmatpush.bf16.msra.mxu1 %v865_v3  ;;  %v375_v0 = vmul.f32 %v1030_v8, %v339_v60  ;;  %v380_v1 = vpack.c.bf16 %v351_v56, %v350_v55  ;;  %v384_v2 = vpack.c.bf16 %v359_v58, %v358_v57  ;;  %v341_v17 = vld [vmem:[%s1021_s14 + $0xf8] sm:$0xff] }
  0x1a   : > { %879 = vmatpush.bf16.msra.mxu2 %v865_v3  ;;  %880 = vmatpush.bf16.msra.mxu3 %v865_v3  ;;  %v388_v3 = vpack.c.bf16 %v367_v62, %v366_v61  ;;  %v360_v14 = vmul.f32 %v1030_v8, %v324_v7  ;;  %v361_v15 = vmul.f32 %v1030_v8, %v325_v9 }
  0x1b   : > { %v369_v19 = vmul.f32 %v1030_v8, %v333_v11  ;;  %v376_v20 = vmul.f32 %v1030_v8, %v340_v16 }
  0x1d   : > { %462 = vmatpush.bf16.msra.mxu0 %v864_v4  ;;  %881 = vmatpush.bf16.msra.mxu1 %v864_v4 }
  0x1e   : > { %882 = vmatpush.bf16.msra.mxu2 %v864_v4  ;;  %883 = vmatpush.bf16.msra.mxu3 %v864_v4  ;;  %v392_v4 = vpack.c.bf16 %v375_v0, %v374_v63 }
  0x21   : > { %463 = vmatpush.bf16.msra.mxu0 %v863_v5  ;;  %884 = vmatpush.bf16.msra.mxu1 %v863_v5 }
  0x22   : > { %885 = vmatpush.bf16.msra.mxu2 %v863_v5  ;;  %886 = vmatpush.bf16.msra.mxu3 %v863_v5  ;;  %v316_v5 = vld [vmem:[%s1021_s14 + $0x30] sm:$0xff] }
  0x23   : > { %v352_v12 = vmul.f32 %v1030_v8, %v316_v5 }
  0x25   : > { %464 = vmatpush.bf16.msra.mxu0 %v862_v6  ;;  %887 = vmatpush.bf16.msra.mxu1 %v862_v6 }
  0x26   : > { %888 = vmatpush.bf16.msra.mxu2 %v862_v6  ;;  %889 = vmatpush.bf16.msra.mxu3 %v862_v6  ;;  %v317_v6 = vld [vmem:[%s1021_s14 + $0x38] sm:$0xff] }
  0x27   : > { %v353_v13 = vmul.f32 %v1030_v8, %v317_v6 }
  0x29   : > { %465 = vmatpush.bf16.msra.mxu0 %v861_v18  ;;  %890 = vmatpush.bf16.msra.mxu1 %v861_v18 }
  0x2a   : > { %891 = vmatpush.bf16.msra.mxu2 %v861_v18  ;;  %892 = vmatpush.bf16.msra.mxu3 %v861_v18  ;;  %v368_v18 = vmul.f32 %v1030_v8, %v332_v10 }
  0x2c   : > { %466 = vmatmul.bf16.vlgmr.msra.gmra.mxu0 %v378_v21  ;;  %486 = vmatmul.bf16.vlgmr.msra.gmra.mxu1 %v382_v22  ;;  %v377_v21 = vmul.f32 %v1030_v8, %v341_v17  ;;  %v381_v22 = vpack.c.bf16 %v353_v13, %v352_v12  ;;  %v389_v24 = vpack.c.bf16 %v369_v19, %v368_v18 }
  0x2d   : > { %506 = vmatmul.bf16.vlgmr.msra.gmra.mxu2 %v386_v23  ;;  %526 = vmatmul.bf16.vlgmr.msra.gmra.mxu3 %v390_v28  ;;  %v385_v23 = vpack.c.bf16 %v361_v15, %v360_v14 }
  0x2e   : > { %v393_v25 = vpack.c.bf16 %v377_v21, %v376_v20 }
  0x3c   : > { %471 = vmatmul.bf16.gmra.mxu0 %v379_v41  ;;  %491 = vmatmul.bf16.gmra.mxu1 %v383_v42 }
  0x3d   : > { %511 = vmatmul.bf16.gmra.mxu2 %v387_v43  ;;  %531 = vmatmul.bf16.gmra.mxu3 %v391_v48 }
  0x4c   : > { %476 = vmatmul.bf16.gmra.mxu0 %v380_v1  ;;  %496 = vmatmul.bf16.gmra.mxu1 %v384_v2 }
  0x4d   : > { %516 = vmatmul.bf16.gmra.mxu2 %v388_v3  ;;  %536 = vmatmul.bf16.gmra.mxu3 %v392_v4 }
  0x5c   : > { %481 = vmatmul.bf16.gmra.mxu0 %v381_v22  ;;  %501 = vmatmul.bf16.gmra.mxu1 %v385_v23 }
  0x5d   : > { %521 = vmatmul.bf16.gmra.mxu2 %v389_v24  ;;  %541 = vmatmul.bf16.gmra.mxu3 %v393_v25 }
  0xa9   : > { %v467_v8 = vpop.f32.mrf.mxu0  ;;  %v1105_v26 = vpop.f32.mrf.mxu1 }
  0xaa   : > { %547 = vst [vmem:[%s1103_s25] sm:$0xff] %v467_v8  ;;  %v617_v48 = vmul.f32 %v467_v8, %v467_v8  ;;  %v625_v13 = vmul.f32 %v1105_v26, %v1105_v26 }
  0xab   : > { %555 = vst [vmem:[%s1103_s25 + $0x40] sm:$0xff] %v1105_v26 }
  0xb0   : > { %v1110_v27 = vpop.f32.mrf.mxu2  ;;  %v1117_v30 = vpop.f32.mrf.mxu3 }
  0xb1   : > { %v469_v28 = vpop.f32.mrf.mxu0  ;;  %v1112_v29 = vpop.f32.mrf.mxu1  ;;  %563 = vst [vmem:[%s1103_s25 + $0x80] sm:$0xff] %v1110_v27 }
  0xb2   : > { %548 = vst [vmem:[%s1103_s25 + $0x8] sm:$0xff] %v469_v28  ;;  %v618_v47 = vmul.f32 %v469_v28, %v469_v28  ;;  %v579_v49 = vadd.f32 %v469_v28, %v467_v8  ;;  %v626_v16 = vmul.f32 %v1112_v29, %v1112_v29 }
  0xb3   : > { %556 = vst [vmem:[%s1103_s25 + $0x48] sm:$0xff] %v1112_v29 }
  0xb4   : > { %571 = vst [vmem:[%s1103_s25 + $0xc0] sm:$0xff] %v1117_v30  ;;  %v649_v51 = vadd.f32 %v618_v47, %v617_v48 }
  0xb8   : > { %v1123_v31 = vpop.f32.mrf.mxu2  ;;  %v1130_v34 = vpop.f32.mrf.mxu3 }
  0xb9   : > { %v472_v32 = vpop.f32.mrf.mxu0  ;;  %v1125_v33 = vpop.f32.mrf.mxu1  ;;  %564 = vst [vmem:[%s1103_s25 + $0x88] sm:$0xff] %v1123_v31 }
  0xba   : > { %549 = vst [vmem:[%s1103_s25 + $0x10] sm:$0xff] %v472_v32  ;;  %v619_v50 = vmul.f32 %v472_v32, %v472_v32  ;;  %v580_v52 = vadd.f32 %v579_v49, %v472_v32  ;;  %v627_v19 = vmul.f32 %v1125_v33, %v1125_v33 }
  0xbb   : > { %557 = vst [vmem:[%s1103_s25 + $0x50] sm:$0xff] %v1125_v33 }
  0xbc   : > { %572 = vst [vmem:[%s1103_s25 + $0xc8] sm:$0xff] %v1130_v34  ;;  %v650_v57 = vadd.f32 %v649_v51, %v619_v50  ;;  %v633_v50 = vmul.f32 %v1110_v27, %v1110_v27 }
  0xc0   : > { %v1136_v35 = vpop.f32.mrf.mxu2  ;;  %v1143_v38 = vpop.f32.mrf.mxu3 }
  0xc1   : > { %v474_v36 = vpop.f32.mrf.mxu0  ;;  %v1138_v37 = vpop.f32.mrf.mxu1  ;;  %565 = vst [vmem:[%s1103_s25 + $0x90] sm:$0xff] %v1136_v35 }
  0xc2   : > { %550 = vst [vmem:[%s1103_s25 + $0x18] sm:$0xff] %v474_v36  ;;  %v620_v53 = vmul.f32 %v474_v36, %v474_v36  ;;  %v581_v58 = vadd.f32 %v580_v52, %v474_v36  ;;  %v628_v23 = vmul.f32 %v1138_v37, %v1138_v37 }
  0xc3   : > { %558 = vst [vmem:[%s1103_s25 + $0x58] sm:$0xff] %v1138_v37 }
  0xc4   : > { %573 = vst [vmem:[%s1103_s25 + $0xd0] sm:$0xff] %v1143_v38  ;;  %v651_v61 = vadd.f32 %v650_v57, %v620_v53 }
  0xc8   : > { %v1149_v39 = vpop.f32.mrf.mxu2  ;;  %v1156_v42 = vpop.f32.mrf.mxu3 }
  0xc9   : > { %v477_v40 = vpop.f32.mrf.mxu0  ;;  %v1151_v41 = vpop.f32.mrf.mxu1  ;;  %566 = vst [vmem:[%s1103_s25 + $0x98] sm:$0xff] %v1149_v39 }
  0xca   : > { %551 = vst [vmem:[%s1103_s25 + $0x20] sm:$0xff] %v477_v40  ;;  %v621_v59 = vmul.f32 %v477_v40, %v477_v40  ;;  %v582_v62 = vadd.f32 %v581_v58, %v477_v40  ;;  %v636_v58 = vmul.f32 %v1149_v39, %v1149_v39 }
  0xcb   : > { %559 = vst [vmem:[%s1103_s25 + $0x60] sm:$0xff] %v1151_v41 }
  0xcc   : > { %574 = vst [vmem:[%s1103_s25 + $0xd8] sm:$0xff] %v1156_v42  ;;  %v652_v0 = vadd.f32 %v651_v61, %v621_v59 }
  0xd0   : > { %v1162_v43 = vpop.f32.mrf.mxu2  ;;  %v1169_v46 = vpop.f32.mrf.mxu3 }
  0xd1   : > { %v479_v44 = vpop.f32.mrf.mxu0  ;;  %v1164_v45 = vpop.f32.mrf.mxu1  ;;  %567 = vst [vmem:[%s1103_s25 + $0xa0] sm:$0xff] %v1162_v43 }
  0xd2   : > { %552 = vst [vmem:[%s1103_s25 + $0x28] sm:$0xff] %v479_v44  ;;  %v622_v63 = vmul.f32 %v479_v44, %v479_v44  ;;  %v583_v1 = vadd.f32 %v582_v62, %v479_v44  ;;  %v630_v32 = vmul.f32 %v1164_v45, %v1164_v45 }
  0xd3   : > { %560 = vst [vmem:[%s1103_s25 + $0x68] sm:$0xff] %v1164_v45 }
  0xd4   : > { %575 = vst [vmem:[%s1103_s25 + $0xe0] sm:$0xff] %v1169_v46  ;;  %v653_v3 = vadd.f32 %v652_v0, %v622_v63 }
  0xd8   : > { %v1175_v54 = vpop.f32.mrf.mxu2  ;;  %v1180_v60 = vpop.f32.mrf.mxu3 }
  0xd9   : > { %v482_v55 = vpop.f32.mrf.mxu0  ;;  %v502_v56 = vpop.f32.mrf.mxu1  ;;  %568 = vst [vmem:[%s1103_s25 + $0xa8] sm:$0xff] %v1175_v54  ;;  %v638_v0 = vmul.f32 %v1175_v54, %v1175_v54 }
  0xda   : > { %553 = vst [vmem:[%s1103_s25 + $0x30] sm:$0xff] %v482_v55  ;;  %v623_v2 = vmul.f32 %v482_v55, %v482_v55  ;;  %v584_v4 = vadd.f32 %v583_v1, %v482_v55  ;;  %v631_v44 = vmul.f32 %v502_v56, %v502_v56 }
  0xdb   : > { %561 = vst [vmem:[%s1103_s25 + $0x70] sm:$0xff] %v502_v56 }
  0xdc   : > { %576 = vst [vmem:[%s1103_s25 + $0xe8] sm:$0xff] %v1180_v60  ;;  %v654_v9 = vadd.f32 %v653_v3, %v623_v2 }
  0xe0   : > { %v522_v5 = vpop.f32.mrf.mxu2  ;;  %v1187_v12 = vpop.f32.mrf.mxu3 }
  0xe1   : > { %v484_v6 = vpop.f32.mrf.mxu0  ;;  %v504_v7 = vpop.f32.mrf.mxu1  ;;  %569 = vst [vmem:[%s1103_s25 + $0xb0] sm:$0xff] %v522_v5  ;;  %v639_v3 = vmul.f32 %v522_v5, %v522_v5 }
  0xe2   : > { %554 = vst [vmem:[%s1103_s25 + $0x38] sm:$0xff] %v484_v6  ;;  %v585_v10 = vadd.f32 %v584_v4, %v484_v6  ;;  %v624_v11 = vmul.f32 %v484_v6, %v484_v6 }
  0xe3   : > { %562 = vst [vmem:[%s1103_s25 + $0x78] sm:$0xff] %v504_v7 }
  0xe4   : > { %v586_v14 = vadd.f32 %v585_v10, %v1105_v26  ;;  %v655_v15 = vadd.f32 %v654_v9, %v624_v11  ;;  %577 = vst [vmem:[%s1103_s25 + $0xf0] sm:$0xff] %v1187_v12  ;;  %v629_v26 = vmul.f32 %v1151_v41, %v1151_v41 }
  0xe6   : > { %v587_v17 = vadd.f32 %v586_v14, %v1112_v29  ;;  %v656_v18 = vadd.f32 %v655_v15, %v625_v13  ;;  %v644_v15 = vmul.f32 %v1156_v42, %v1156_v42 }
  0xe8   : > { %v588_v20 = vadd.f32 %v587_v17, %v1125_v33  ;;  %v657_v21 = vadd.f32 %v656_v18, %v626_v16  ;;  %v524_v22 = vpop.f32.mrf.mxu2  ;;  %v544_v8 = vpop.f32.mrf.mxu3 }
  0xe9   : > { %570 = vst [vmem:[%s1103_s25 + $0xb8] sm:$0xff] %v524_v22 }
  0xea   : > { %v658_v24 = vadd.f32 %v657_v21, %v627_v19  ;;  %v589_v25 = vadd.f32 %v588_v20, %v1138_v37  ;;  %578 = vst [vmem:[%s1103_s25 + $0xf8] sm:$0xff] %v544_v8  ;;  %v632_v37 = vmul.f32 %v504_v7, %v504_v7  ;;  %v646_v20 = vmul.f32 %v1180_v60, %v1180_v60 }
  0xec   : > { %v590_v28 = vadd.f32 %v589_v25, %v1151_v41  ;;  %v659_v29 = vadd.f32 %v658_v24, %v628_v23  ;;  %v634_v41 = vmul.f32 %v1123_v31, %v1123_v31  ;;  %v647_v23 = vmul.f32 %v1187_v12, %v1187_v12 }
  0xed   : > { %v648_v25 = vmul.f32 %v544_v8, %v544_v8 }
  0xee   : > { %v591_v33 = vadd.f32 %v590_v28, %v1164_v45  ;;  %v660_v36 = vadd.f32 %v659_v29, %v629_v26  ;;  %v635_v45 = vmul.f32 %v1136_v35, %v1136_v35 }
  0xf0   : > { %v592_v40 = vadd.f32 %v591_v33, %v502_v56  ;;  %v661_v47 = vadd.f32 %v660_v36, %v630_v32 }
  0xf2   : > { %v662_v48 = vadd.f32 %v661_v47, %v631_v44  ;;  %v593_v49 = vadd.f32 %v592_v40, %v504_v7  ;;  %v640_v7 = vmul.f32 %v524_v22, %v524_v22 }
  0xf4   : > { %v594_v51 = vadd.f32 %v593_v49, %v1110_v27  ;;  %v663_v52 = vadd.f32 %v662_v48, %v632_v37  ;;  %v637_v27 = vmul.f32 %v1162_v43, %v1162_v43 }
  0xf6   : > { %v595_v53 = vadd.f32 %v594_v51, %v1123_v31  ;;  %v664_v55 = vadd.f32 %v663_v52, %v633_v50 }
  0xf8   : > { %v596_v56 = vadd.f32 %v595_v53, %v1136_v35  ;;  %v665_v57 = vadd.f32 %v664_v55, %v634_v41 }
  0xfa   : > { %v666_v59 = vadd.f32 %v665_v57, %v635_v45  ;;  %v597_v61 = vadd.f32 %v596_v56, %v1149_v39  ;;  %v641_v39 = vmul.f32 %v1117_v30, %v1117_v30 }
  0xfc   : > { %v598_v62 = vadd.f32 %v597_v61, %v1162_v43  ;;  %v667_v63 = vadd.f32 %v666_v59, %v636_v58  ;;  %v642_v43 = vmul.f32 %v1130_v34, %v1130_v34 }
  0xfe   : > { %v599_v31 = vadd.f32 %v598_v62, %v1175_v54  ;;  %v668_v1 = vadd.f32 %v667_v63, %v637_v27  ;;  %v643_v54 = vmul.f32 %v1143_v38, %v1143_v38 }
 0x100   : > { %v669_v35 = vadd.f32 %v668_v1, %v638_v0  ;;  %v600_v2 = vadd.f32 %v599_v31, %v522_v5 }
 0x102   : > { %v670_v4 = vadd.f32 %v669_v35, %v639_v3  ;;  %v601_v6 = vadd.f32 %v600_v2, %v524_v22 }
 0x104   : > { %v602_v9 = vadd.f32 %v601_v6, %v1117_v30  ;;  %v671_v10 = vadd.f32 %v670_v4, %v640_v7  ;;  %v645_v30 = vmul.f32 %v1169_v46, %v1169_v46 }
 0x106   : > { %v603_v11 = vadd.f32 %v602_v9, %v1130_v34  ;;  %v672_v13 = vadd.f32 %v671_v10, %v641_v39 }
 0x108   : > { %v604_v5 = vadd.f32 %v603_v11, %v1143_v38  ;;  %v673_v14 = vadd.f32 %v672_v13, %v642_v43 }
 0x10a   : > { %v674_v16 = vadd.f32 %v673_v14, %v643_v54  ;;  %v605_v17 = vadd.f32 %v604_v5, %v1156_v42 }
 0x10c   : > { %v606_v18 = vadd.f32 %v605_v17, %v1169_v46  ;;  %v675_v19 = vadd.f32 %v674_v16, %v644_v15 }
 0x10e   : > { %v607_v34 = vadd.f32 %v606_v18, %v1180_v60  ;;  %v676_v38 = vadd.f32 %v675_v19, %v645_v30 }
 0x110   : > { %v677_v21 = vadd.f32 %v676_v38, %v646_v20  ;;  %v608_v22 = vadd.f32 %v607_v34, %v1187_v12 }
 0x112   : > { %v678_v42 = vadd.f32 %v677_v21, %v647_v23  ;;  %v609_v24 = vadd.f32 %v608_v22, %v544_v8 }
 0x114   : > { %v610_v26 = vrot.slane %v609_v24, 4  ;;  %v679_v28 = vadd.f32 %v678_v42, %v648_v25 }
 0x116   : > { %v611_v46 = vadd.f32 %v610_v26, %v609_v24  ;;  %v680_v29 = vrot.slane %v679_v28, 4 }
 0x118   : > { %v612_v32 = vrot.slane %v611_v46, 2  ;;  %v681_v33 = vadd.f32 %v680_v29, %v679_v28 }
 0x11a   : > { %v613_v36 = vadd.f32 %v612_v32, %v611_v46  ;;  %v682_v40 = vrot.slane %v681_v33, 2 }
 0x11c   : > { %v614_v60 = vrot.slane %v613_v36, 1  ;;  %v683_v44 = vadd.f32 %v682_v40, %v681_v33 }
 0x11e   : > { %v615_v47 = vadd.f32 %v614_v60, %v613_v36  ;;  %v684_v12 = vrot.slane %v683_v44, 1 }
 0x120   : > { %616 = vst [vmem:[%s309_s29] sm:$0x1] %v615_v47  ;;  %v685_v48 = vadd.f32 %v684_v12, %v683_v44 }
 0x122   : > { %686 = vst [vmem:[%s309_s29 + $0x1] sm:$0x1] %v685_v48 }
 0x123 PF: > { %s17_s23 = sadd.s32 1, %s940_s23   ;;  %s1271_s21 = smov %s936_s22 }
 0x124   : > { %p14_p5 = scmp.ge.s32.totalorder %s17_s23, 4   ;;  %s1272_s22 = smov %s1274_s2 }
 0x126   :  { %16 = sbr.rel (!%p14_p5) target bundleno = 2 (0x2), region = 82 }

// kernel: regstage_forward.13
= control target key start
LH: loop header
LB: loop body
LE: loop exit
PB: predicated region body
PF: predicated region fallthrough
CT: control target
= control target key end

     0   :  { %s719_s24 = smov 0   ;;  %s800_s0 = inlined_call_operand.vmem [shape: f32[2,64,128], index: 0, kind: input, shape index: {}]   ;;  %s801_s1 = inlined_call_operand.vmem [shape: f32[1,128], index: 1, kind: input, shape index: {}]   ;;  %s802_s2 = inlined_call_operand.vmem [shape: f32[1,128], index: 2, kind: input, shape index: {}]   ;;  %s803_s3 = inlined_call_operand.vmem [shape: bf16[128,128], index: 3, kind: input, shape index: {}]   ;;  %s804_s4 = inlined_call_operand.vmem [shape: f32[1,128], index: 4, kind: input, shape index: {}]   ;;  %s805_s5 = inlined_call_operand.vmem [shape: bf16[128,128], index: 5, kind: input, shape index: {}]   ;;  %s806_s6 = inlined_call_operand.vmem [shape: f32[1,128], index: 6, kind: input, shape index: {}]   ;;  %s807_s7 = inlined_call_operand.vmem [shape: f32[2,1,128], index: 7, kind: output, shape index: {}]  }
   0x1 LB: > { %s562_s25 = sadd.s32 4294967295, %s676_s24   ;;  %p566_p0 = scmp.ge.s32.totalorder %s676_s24, 1  ;;  %s676_s24 = sphi %s719_s24, %s17_s24  }
   0x2   : > { %p237_p1 = scmp.lt.s32.totalorder %s676_s24, 3 }
   0x4   : > { %p238_p2 = pnand %p566_p0, %p237_p1 }
   0x5   : > { %p267_p3 = scmp.lt.s32.totalorder (!%p238_p2), %s562_s25, 1 }
   0x6   : > { %241 = sbr.rel (%p238_p2) target bundleno = 340 (0x154), region = 48 }
   0xb   : > { %v644_v0 = vld [vmem:[%s803_s3 + $0x38] sm:$0xff]  ;;  %v643_v1 = vld [vmem:[%s803_s3 + $0x30] sm:$0xff]  ;;  %s809_s25 = smov (!%p267_p3, %s562_s25), 1  ;;  %v662_v2 = vld [vmem:[%s801_s1] ss:$0 sm:$0xff]  ;;  %v678_v24 = vmov 64.0  }
   0xc   : > { %402 = vmatpush.bf16.msra.mxu0 %v644_v0  ;;  %s636_s9 = sshll.u32 %s809_s25, 6  ;;  %v642_v3 = vld [vmem:[%s803_s3 + $0x28] sm:$0xff]  ;;  %v663_v4 = vld [vmem:[%s802_s2] ss:$0 sm:$0xff]  ;;  %664 = vrcp.f32 %v678_v24  ;;  %v652_v29 = vld [vmem:[%s805_s5 + $0x38] sm:$0xff]  ;;  %s274_s30 = scalar_lea.vmem %s807_s7, %s809_s25 }
   0xd   : > { %s271_s14 = scalar_lea.vmem %s800_s0, %s636_s9  ;;  %v641_v20 = vld [vmem:[%s803_s3 + $0x20] sm:$0xff]  ;;  %482 = vmatpush.bf16.msra.mxu1 %v652_v29  ;;  %v651_v35 = vld [vmem:[%s805_s5 + $0x30] sm:$0xff]  ;;  %v640_v36 = vld [vmem:[%s803_s3 + $0x18] sm:$0xff] }
   0xe   : > { %v275_v5 = vld [vmem:[%s271_s14] sm:$0xff]  ;;  %v276_v6 = vld [vmem:[%s271_s14 + $0x8] sm:$0xff]  ;;  %v277_v7 = vld [vmem:[%s271_s14 + $0x10] sm:$0xff] }
   0xf   : > { %v278_v8 = vld [vmem:[%s271_s14 + $0x18] sm:$0xff]  ;;  %v279_v9 = vld [vmem:[%s271_s14 + $0x20] sm:$0xff]  ;;  %v280_v10 = vld [vmem:[%s271_s14 + $0x28] sm:$0xff]  ;;  %v287_v11 = vmul.f32 %v662_v2, %v275_v5  ;;  %v288_v12 = vmul.f32 %v662_v2, %v276_v6  ;;  %v289_v13 = vmul.f32 %v662_v2, %v277_v7 }
  0x10   : > { %403 = vmatpush.bf16.msra.mxu0 %v643_v1  ;;  %v281_v14 = vld [vmem:[%s271_s14 + $0x30] sm:$0xff]  ;;  %v290_v15 = vmul.f32 %v662_v2, %v278_v8  ;;  %v291_v16 = vmul.f32 %v662_v2, %v279_v9  ;;  %v292_v17 = vmul.f32 %v662_v2, %v280_v10  ;;  %v282_v21 = vld [vmem:[%s271_s14 + $0x38] sm:$0xff]  ;;  %v650_v44 = vld [vmem:[%s805_s5 + $0x28] sm:$0xff] }
  0x11   : > { %v299_v18 = vadd.f32 %v663_v4, %v287_v11  ;;  %v300_v19 = vadd.f32 %v663_v4, %v288_v12  ;;  %v301_v22 = vadd.f32 %v663_v4, %v289_v13  ;;  %v293_v25 = vmul.f32 %v662_v2, %v281_v14  ;;  %483 = vmatpush.bf16.msra.mxu1 %v651_v35  ;;  %v639_v45 = vld [vmem:[%s803_s3 + $0x10] sm:$0xff]  ;;  %v649_v51 = vld [vmem:[%s805_s5 + $0x20] sm:$0xff]  ;;  %v638_v52 = vld [vmem:[%s803_s3 + $0x8] sm:$0xff] }
  0x12   : > { %v302_v23 = vadd.f32 %v663_v4, %v290_v15  ;;  %v303_v26 = vadd.f32 %v663_v4, %v291_v16  ;;  %v294_v31 = vmul.f32 %v662_v2, %v282_v21  ;;  %v304_v32 = vadd.f32 %v663_v4, %v292_v17  ;;  %v665_v40 = vpop.eup %664  ;;  %v648_v56 = vld [vmem:[%s805_s5 + $0x18] sm:$0xff]  ;;  %v637_v57 = vld [vmem:[%s803_s3] sm:$0xff]  ;;  %v647_v61 = vld [vmem:[%s805_s5 + $0x10] sm:$0xff] }
  0x13   : > { %v307_v27 = vmax.f32 %v299_v18, 0.0  ;;  %v308_v28 = vmax.f32 %v300_v19, 0.0  ;;  %v309_v30 = vmax.f32 %v301_v22, 0.0  ;;  %v305_v37 = vadd.f32 %v663_v4, %v293_v25  ;;  %v646_v6 = vld [vmem:[%s805_s5 + $0x8] sm:$0xff]  ;;  %v645_v7 = vld [vmem:[%s805_s5] sm:$0xff] }
  0x14   : > { %404 = vmatpush.bf16.msra.mxu0 %v642_v3  ;;  %v310_v33 = vmax.f32 %v302_v23, 0.0  ;;  %v311_v38 = vmax.f32 %v303_v26, 0.0  ;;  %v306_v41 = vadd.f32 %v663_v4, %v294_v31  ;;  %v312_v42 = vmax.f32 %v304_v32, 0.0  ;;  %v353_v8 = vld [vmem:[%s804_s4] sm:$0x1] }
  0x15   : > { %v315_v34 = vadd.f32 %v308_v28, %v307_v27  ;;  %v313_v46 = vmax.f32 %v305_v37, 0.0  ;;  %v329_v48 = vmul.f32 64.0, %v665_v40  ;;  %484 = vmatpush.bf16.msra.mxu1 %v650_v44  ;;  %vm333_vm0 = vweird.f32 %v665_v40  ;;  %v433_v14 = vld [vmem:[%s806_s6] sm:$0x1] }
  0x16   : > { %v314_v49 = vmax.f32 %v306_v41, 0.0 }
  0x17   : > { %v316_v39 = vadd.f32 %v315_v34, %v309_v30  ;;  %v330_v54 = vsub.f32 1.0, %v329_v48 }
  0x18   : > { %405 = vmatpush.bf16.msra.mxu0 %v641_v20 }
  0x19   : > { %v317_v43 = vadd.f32 %v316_v39, %v310_v33  ;;  %485 = vmatpush.bf16.msra.mxu1 %v649_v51  ;;  %v331_v59 = vmul.f32 %v665_v40, %v330_v54 }
  0x1b   : > { %v318_v47 = vadd.f32 %v317_v43, %v311_v38  ;;  %v332_v63 = vadd.f32 %v665_v40, %v331_v59 }
  0x1c   : > { %406 = vmatpush.bf16.msra.mxu0 %v640_v36 }
  0x1d   : > { %v319_v50 = vadd.f32 %v318_v47, %v312_v42  ;;  %486 = vmatpush.bf16.msra.mxu1 %v648_v56  ;;  %v334_v2 = vsel %vm333_vm0, %v665_v40, %v332_v63 }
  0x1f   : > { %v320_v53 = vadd.f32 %v319_v50, %v313_v46 }
  0x20   : > { %407 = vmatpush.bf16.msra.mxu0 %v639_v45 }
  0x21   : > { %v321_v55 = vadd.f32 %v320_v53, %v314_v49  ;;  %487 = vmatpush.bf16.msra.mxu1 %v647_v61 }
  0x23   : > { %v322_v58 = vrot.slane %v321_v55, 4 }
  0x24   : > { %408 = vmatpush.bf16.msra.mxu0 %v638_v52 }
  0x25   : > { %v323_v60 = vadd.f32 %v322_v58, %v321_v55  ;;  %488 = vmatpush.bf16.msra.mxu1 %v646_v6 }
  0x27   : > { %v324_v62 = vrot.slane %v323_v60, 2 }
  0x28   : > { %409 = vmatpush.bf16.msra.mxu0 %v637_v57 }
  0x29   : > { %v325_v0 = vadd.f32 %v324_v62, %v323_v60  ;;  %489 = vmatpush.bf16.msra.mxu1 %v645_v7 }
  0x2b   : > { %v326_v1 = vrot.slane %v325_v0, 1 }
  0x2d   : > { %v327_v3 = vadd.f32 %v326_v1, %v325_v0 }
  0x2f   : > { %v335_v4 = vmul.f32 %v334_v2, %v327_v3 }
  0x31   : > { %v336_v5 = vpack.c.bf16 %v335_v4, %v335_v4 }
  0x33   : > { %410 = vmatmul.bf16.vlgmr.msra.gmra.mxu0 %v336_v5 }
  0xb0   : > { %v411_v9 = vpop.f32.mrf.mxu0 }
  0xb1   : > { %v412_v10 = vadd.f32 %v411_v9, %v353_v8 }
  0xb3   : > { %v415_v11 = vmax.f32 %v412_v10, 0.0 }
  0xb5   : > { %v416_v12 = vpack.c.bf16 %v415_v11, %v415_v11 }
  0xb7   : > { %490 = vmatmul.bf16.vlgmr.msra.gmra.mxu1 %v416_v12 }
  0xb8   : > { %v413_v13 = vpop.f32.mrf.mxu0 }
 0x134   : > { %v491_v15 = vpop.f32.mrf.mxu1 }
 0x135   : > { %v492_v16 = vadd.f32 %v491_v15, %v433_v14 }
 0x137   : > { %v633_v17 = vmul.f32 -1.442695, %v492_v16 }
 0x139   : > { %666 = vpow2.f32 %v633_v17 }
 0x13c   : > { %v493_v18 = vpop.f32.mrf.mxu1 }
 0x13f   : > { %v667_v19 = vpop.eup %666 }
 0x140   : > { %v498_v20 = vadd.f32 1.0, %v667_v19 }
 0x142   : > { %668 = vrcp.f32 %v498_v20  ;;  %v510_v24 = vand.u32 2147483648, %v498_v20  ;;  %v508_v26 = vand.u32 2147483647, %v498_v20  ;;  %vm504_vm2 = vweird.f32 %v498_v20 }
 0x144   : > { %v511_v28 = vor.u32 1.1754944e-38, %v510_v24  ;;  %vm509_vm4 = vcmp.eq.f32.partialorder %v508_v26, 8.507059e+37 }
 0x148   : > { %v669_v21 = vpop.eup %668 }
 0x149   : > { %v500_v22 = vmul.f32 %v669_v21, %v498_v20  ;;  %vm505_vm1 = vweird.f32 %v669_v21 }
 0x14a   : > { %vm506_vm3 = vmor %vm504_vm2, %vm505_vm1 }
 0x14b   : > { %v501_v23 = vsub.f32 1.0, %v500_v22 }
 0x14d   : > { %v502_v25 = vmul.f32 %v669_v21, %v501_v23 }
 0x14f   : > { %v503_v27 = vadd.f32 %v669_v21, %v502_v25 }
 0x151   : > { %v507_v29 = vsel %vm506_vm3, %v669_v21, %v503_v27 }
 0x152   : > { %v512_v30 = vsel %vm509_vm4, %v511_v28, %v507_v29 }
 0x153   : > { %514 = vst [vmem:[%s274_s30] sm:$0x1] %v512_v30 }
 0x154 PF: > { %s17_s24 = sadd.s32 1, %s676_s24  }
 0x155   : > { %p14_p4 = scmp.ge.s32.totalorder %s17_s24, 4  }
 0x157   :  { %16 = sbr.rel (!%p14_p4) target bundleno = 1 (0x1), region = 78 }

// kernel: regstage_forward.12
= control target key start
LH: loop header
LB: loop body
LE: loop exit
PB: predicated region body
PF: predicated region fallthrough
CT: control target
= control target key end

     0   :  { %s2333_s18 = smov 0   ;;  %s2335_s19 = smov 0   ;;  %s3356_s0 = inlined_call_operand.vmem [shape: f32[4,2,9,9,128], index: 0, kind: input, shape index: {}]   ;;  %s3357_s1 = inlined_call_operand.vmem [shape: f32[1,128], index: 1, kind: input, shape index: {}]   ;;  %s3358_s2 = inlined_call_operand.vmem [shape: f32[1,128], index: 2, kind: input, shape index: {}]   ;;  %s3359_s3 = inlined_call_operand.vmem [shape: bf16[9,2,8,128], index: 3, kind: input, shape index: {}]   ;;  %s3360_s4 = inlined_call_operand.vmem [shape: f32[2,64,128], index: 4, kind: output, shape index: {0}]   ;;  %s3361_s5 = inlined_call_operand.vmem [shape: f32[2,2,128], index: 5, kind: output, shape index: {1}]  }
   0x1   :  { %s2337_s20 = smov 0  }
   0x2 LB: > { %s2112_s21 = sadd.s32 4294967295, %s2300_s20   ;;  %s2350_s22 = sadd.s32 1, %s2300_s20   ;;  %s2300_s20 = sphi %s2337_s20, %s3386_s20   ;;  %s2296_s19 = sphi %s2335_s19, %s3385_s19   ;;  %s2292_s18 = sphi %s2333_s18, %s3384_s18  }
   0x3   : > { %s20_s23 = ssub.s32 %s2300_s20, %s2350_s22  ;;  %s23_s24 = sadd.s32 1, %s2296_s19 }
   0x4   : > { %p21_p0 = scmp.eq.s32.totalorder %s20_s23, 0  ;;  %p30_p1 = scmp.ne.s32.totalorder %s2296_s19, %s2292_s18 }
   0x5   : > { %p31_p2 = scmp.eq.s32.totalorder %s2300_s20, 0  ;;  %p2115_p4 = scmp.ge.s32.totalorder %s2300_s20, 2 }
   0x6   : > { %s2359_s25 = scalar_select %p21_p0, %s2296_s19, %s23_s24  }
   0x7   : > { %p32_p3 = por %p31_p2, %p30_p1  ;;  %180 = sbr.rel (%p2115_p4) target bundleno = 89 (0x59), region = 28 }
   0xc   : > { %183 = sbr.rel (!%p32_p3) target bundleno = 89 (0x59), region = 32  ;;  %s185_s26 = sand.u32 (%p32_p3), 1, %s2296_s19  }
   0xd   : > { %s2249_s27 = smul.u32 (%p32_p3), 144, %s2300_s20 }
   0xe   : > { %s2248_s28 = smul.u32 (%p32_p3), 576, %s185_s26 }
   0xf   : > { %s2367_s6 = scalar_lea.vmem (%p32_p3), %s3356_s0, %s2249_s27 }
  0x10   : > { %v361_v0 = vld [vmem:[%s2367_s6] sm:$0xff] (%p32_p3)  ;;  %v363_v1 = vld [vmem:[%s2367_s6 + $0x8] sm:$0xff] (%p32_p3)  ;;  %v365_v2 = vld [vmem:[%s2367_s6 + $0x10] sm:$0xff] (%p32_p3)  ;;  %s2372_s7 = scalar_lea.vmem (%p32_p3), [#allocation2], %s2248_s28 }
  0x11   : > { %362 = vst [vmem:[%s2372_s7] sm:$0xff] %v361_v0  ;;  %v367_v3 = vld [vmem:[%s2367_s6 + $0x18] sm:$0xff]  ;;  %v369_v4 = vld [vmem:[%s2367_s6 + $0x20] sm:$0xff]  ;;  %v371_v5 = vld [vmem:[%s2367_s6 + $0x28] sm:$0xff] }
  0x12   : > { %364 = vst [vmem:[%s2372_s7 + $0x8] sm:$0xff] %v363_v1  ;;  %v373_v6 = vld [vmem:[%s2367_s6 + $0x30] sm:$0xff]  ;;  %v375_v7 = vld [vmem:[%s2367_s6 + $0x38] sm:$0xff]  ;;  %v377_v8 = vld [vmem:[%s2367_s6 + $0x40] sm:$0xff] }
  0x13   : > { %366 = vst [vmem:[%s2372_s7 + $0x10] sm:$0xff] %v365_v2  ;;  %v379_v9 = vld [vmem:[%s2367_s6 + $0x48] sm:$0xff]  ;;  %v381_v10 = vld [vmem:[%s2367_s6 + $0x50] sm:$0xff]  ;;  %v383_v11 = vld [vmem:[%s2367_s6 + $0x58] sm:$0xff] }
  0x14   : > { %368 = vst [vmem:[%s2372_s7 + $0x18] sm:$0xff] %v367_v3  ;;  %v385_v12 = vld [vmem:[%s2367_s6 + $0x60] sm:$0xff]  ;;  %v387_v13 = vld [vmem:[%s2367_s6 + $0x68] sm:$0xff]  ;;  %v389_v14 = vld [vmem:[%s2367_s6 + $0x70] sm:$0xff] }
  0x15   : > { %370 = vst [vmem:[%s2372_s7 + $0x20] sm:$0xff] %v369_v4  ;;  %v391_v15 = vld [vmem:[%s2367_s6 + $0x78] sm:$0xff]  ;;  %v393_v16 = vld [vmem:[%s2367_s6 + $0x80] sm:$0xff]  ;;  %v395_v17 = vld [vmem:[%s2367_s6 + $0x88] sm:$0xff] }
  0x16   : > { %372 = vst [vmem:[%s2372_s7 + $0x28] sm:$0xff] %v371_v5  ;;  %v397_v18 = vld [vmem:[%s2367_s6 + $0x120] sm:$0xff]  ;;  %v399_v19 = vld [vmem:[%s2367_s6 + $0x128] sm:$0xff]  ;;  %v401_v20 = vld [vmem:[%s2367_s6 + $0x130] sm:$0xff] }
  0x17   : > { %374 = vst [vmem:[%s2372_s7 + $0x30] sm:$0xff] %v373_v6  ;;  %v403_v21 = vld [vmem:[%s2367_s6 + $0x138] sm:$0xff]  ;;  %v405_v22 = vld [vmem:[%s2367_s6 + $0x140] sm:$0xff]  ;;  %v407_v23 = vld [vmem:[%s2367_s6 + $0x148] sm:$0xff] }
  0x18   : > { %376 = vst [vmem:[%s2372_s7 + $0x38] sm:$0xff] %v375_v7  ;;  %v409_v24 = vld [vmem:[%s2367_s6 + $0x150] sm:$0xff]  ;;  %v411_v25 = vld [vmem:[%s2367_s6 + $0x158] sm:$0xff]  ;;  %v413_v26 = vld [vmem:[%s2367_s6 + $0x160] sm:$0xff] }
  0x19   : > { %378 = vst [vmem:[%s2372_s7 + $0x40] sm:$0xff] %v377_v8  ;;  %v415_v27 = vld [vmem:[%s2367_s6 + $0x168] sm:$0xff]  ;;  %v417_v28 = vld [vmem:[%s2367_s6 + $0x170] sm:$0xff]  ;;  %v419_v29 = vld [vmem:[%s2367_s6 + $0x178] sm:$0xff] }
  0x1a   : > { %380 = vst [vmem:[%s2372_s7 + $0x48] sm:$0xff] %v379_v9  ;;  %v421_v30 = vld [vmem:[%s2367_s6 + $0x180] sm:$0xff]  ;;  %v423_v31 = vld [vmem:[%s2367_s6 + $0x188] sm:$0xff]  ;;  %v425_v32 = vld [vmem:[%s2367_s6 + $0x190] sm:$0xff] }
  0x1b   : > { %382 = vst [vmem:[%s2372_s7 + $0x50] sm:$0xff] %v381_v10  ;;  %v427_v33 = vld [vmem:[%s2367_s6 + $0x198] sm:$0xff]  ;;  %v429_v34 = vld [vmem:[%s2367_s6 + $0x1a0] sm:$0xff]  ;;  %v431_v35 = vld [vmem:[%s2367_s6 + $0x1a8] sm:$0xff] }
  0x1c   : > { %384 = vst [vmem:[%s2372_s7 + $0x58] sm:$0xff] %v383_v11  ;;  %v433_v36 = vld [vmem:[%s2367_s6 + $0x240] sm:$0xff]  ;;  %v435_v37 = vld [vmem:[%s2367_s6 + $0x248] sm:$0xff]  ;;  %v437_v38 = vld [vmem:[%s2367_s6 + $0x250] sm:$0xff] }
  0x1d   : > { %386 = vst [vmem:[%s2372_s7 + $0x60] sm:$0xff] %v385_v12  ;;  %v439_v39 = vld [vmem:[%s2367_s6 + $0x258] sm:$0xff]  ;;  %v441_v40 = vld [vmem:[%s2367_s6 + $0x260] sm:$0xff]  ;;  %v443_v41 = vld [vmem:[%s2367_s6 + $0x268] sm:$0xff] }
  0x1e   : > { %388 = vst [vmem:[%s2372_s7 + $0x68] sm:$0xff] %v387_v13  ;;  %v445_v42 = vld [vmem:[%s2367_s6 + $0x270] sm:$0xff]  ;;  %v447_v43 = vld [vmem:[%s2367_s6 + $0x278] sm:$0xff]  ;;  %v449_v44 = vld [vmem:[%s2367_s6 + $0x280] sm:$0xff] }
  0x1f   : > { %390 = vst [vmem:[%s2372_s7 + $0x70] sm:$0xff] %v389_v14  ;;  %v451_v45 = vld [vmem:[%s2367_s6 + $0x288] sm:$0xff]  ;;  %v453_v46 = vld [vmem:[%s2367_s6 + $0x290] sm:$0xff]  ;;  %v455_v47 = vld [vmem:[%s2367_s6 + $0x298] sm:$0xff] }
  0x20   : > { %392 = vst [vmem:[%s2372_s7 + $0x78] sm:$0xff] %v391_v15  ;;  %v457_v48 = vld [vmem:[%s2367_s6 + $0x2a0] sm:$0xff]  ;;  %v459_v49 = vld [vmem:[%s2367_s6 + $0x2a8] sm:$0xff]  ;;  %v461_v50 = vld [vmem:[%s2367_s6 + $0x2b0] sm:$0xff] }
  0x21   : > { %394 = vst [vmem:[%s2372_s7 + $0x80] sm:$0xff] %v393_v16  ;;  %v463_v51 = vld [vmem:[%s2367_s6 + $0x2b8] sm:$0xff]  ;;  %v465_v52 = vld [vmem:[%s2367_s6 + $0x2c0] sm:$0xff]  ;;  %v467_v53 = vld [vmem:[%s2367_s6 + $0x2c8] sm:$0xff] }
  0x22   : > { %396 = vst [vmem:[%s2372_s7 + $0x88] sm:$0xff] %v395_v17  ;;  %v469_v54 = vld [vmem:[%s2367_s6 + $0x360] sm:$0xff]  ;;  %v471_v55 = vld [vmem:[%s2367_s6 + $0x368] sm:$0xff]  ;;  %v473_v56 = vld [vmem:[%s2367_s6 + $0x370] sm:$0xff] }
  0x23   : > { %398 = vst [vmem:[%s2372_s7 + $0x90] sm:$0xff] %v397_v18  ;;  %v475_v57 = vld [vmem:[%s2367_s6 + $0x378] sm:$0xff]  ;;  %v477_v58 = vld [vmem:[%s2367_s6 + $0x380] sm:$0xff]  ;;  %v479_v59 = vld [vmem:[%s2367_s6 + $0x388] sm:$0xff] }
  0x24   : > { %400 = vst [vmem:[%s2372_s7 + $0x98] sm:$0xff] %v399_v19  ;;  %v481_v60 = vld [vmem:[%s2367_s6 + $0x390] sm:$0xff]  ;;  %v483_v61 = vld [vmem:[%s2367_s6 + $0x398] sm:$0xff]  ;;  %v485_v62 = vld [vmem:[%s2367_s6 + $0x3a0] sm:$0xff] }
  0x25   : > { %402 = vst [vmem:[%s2372_s7 + $0xa0] sm:$0xff] %v401_v20  ;;  %v487_v63 = vld [vmem:[%s2367_s6 + $0x3a8] sm:$0xff]  ;;  %v489_v0 = vld [vmem:[%s2367_s6 + $0x3b0] sm:$0xff]  ;;  %v491_v1 = vld [vmem:[%s2367_s6 + $0x3b8] sm:$0xff] }
  0x26   : > { %404 = vst [vmem:[%s2372_s7 + $0xa8] sm:$0xff] %v403_v21  ;;  %v493_v2 = vld [vmem:[%s2367_s6 + $0x3c0] sm:$0xff]  ;;  %v495_v3 = vld [vmem:[%s2367_s6 + $0x3c8] sm:$0xff]  ;;  %v497_v4 = vld [vmem:[%s2367_s6 + $0x3d0] sm:$0xff] }
  0x27   : > { %406 = vst [vmem:[%s2372_s7 + $0xb0] sm:$0xff] %v405_v22  ;;  %v499_v5 = vld [vmem:[%s2367_s6 + $0x3d8] sm:$0xff]  ;;  %v501_v6 = vld [vmem:[%s2367_s6 + $0x3e0] sm:$0xff]  ;;  %v503_v7 = vld [vmem:[%s2367_s6 + $0x3e8] sm:$0xff] }
  0x28   : > { %408 = vst [vmem:[%s2372_s7 + $0xb8] sm:$0xff] %v407_v23 }
  0x29   : > { %410 = vst [vmem:[%s2372_s7 + $0xc0] sm:$0xff] %v409_v24 }
  0x2a   : > { %412 = vst [vmem:[%s2372_s7 + $0xc8] sm:$0xff] %v411_v25 }
  0x2b   : > { %414 = vst [vmem:[%s2372_s7 + $0xd0] sm:$0xff] %v413_v26 }
  0x2c   : > { %416 = vst [vmem:[%s2372_s7 + $0xd8] sm:$0xff] %v415_v27 }
  0x2d   : > { %418 = vst [vmem:[%s2372_s7 + $0xe0] sm:$0xff] %v417_v28 }
  0x2e   : > { %420 = vst [vmem:[%s2372_s7 + $0xe8] sm:$0xff] %v419_v29 }
  0x2f   : > { %422 = vst [vmem:[%s2372_s7 + $0xf0] sm:$0xff] %v421_v30 }
  0x30   : > { %424 = vst [vmem:[%s2372_s7 + $0xf8] sm:$0xff] %v423_v31 }
  0x31   : > { %426 = vst [vmem:[%s2372_s7 + $0x100] sm:$0xff] %v425_v32 }
  0x32   : > { %428 = vst [vmem:[%s2372_s7 + $0x108] sm:$0xff] %v427_v33 }
  0x33   : > { %430 = vst [vmem:[%s2372_s7 + $0x110] sm:$0xff] %v429_v34 }
  0x34   : > { %432 = vst [vmem:[%s2372_s7 + $0x118] sm:$0xff] %v431_v35 }
  0x35   : > { %434 = vst [vmem:[%s2372_s7 + $0x120] sm:$0xff] %v433_v36 }
  0x36   : > { %436 = vst [vmem:[%s2372_s7 + $0x128] sm:$0xff] %v435_v37 }
  0x37   : > { %438 = vst [vmem:[%s2372_s7 + $0x130] sm:$0xff] %v437_v38 }
  0x38   : > { %440 = vst [vmem:[%s2372_s7 + $0x138] sm:$0xff] %v439_v39 }
  0x39   : > { %442 = vst [vmem:[%s2372_s7 + $0x140] sm:$0xff] %v441_v40 }
  0x3a   : > { %444 = vst [vmem:[%s2372_s7 + $0x148] sm:$0xff] %v443_v41 }
  0x3b   : > { %446 = vst [vmem:[%s2372_s7 + $0x150] sm:$0xff] %v445_v42 }
  0x3c   : > { %448 = vst [vmem:[%s2372_s7 + $0x158] sm:$0xff] %v447_v43 }
  0x3d   : > { %450 = vst [vmem:[%s2372_s7 + $0x160] sm:$0xff] %v449_v44 }
  0x3e   : > { %452 = vst [vmem:[%s2372_s7 + $0x168] sm:$0xff] %v451_v45 }
  0x3f   : > { %454 = vst [vmem:[%s2372_s7 + $0x170] sm:$0xff] %v453_v46 }
  0x40   : > { %456 = vst [vmem:[%s2372_s7 + $0x178] sm:$0xff] %v455_v47 }
  0x41   : > { %458 = vst [vmem:[%s2372_s7 + $0x180] sm:$0xff] %v457_v48 }
  0x42   : > { %460 = vst [vmem:[%s2372_s7 + $0x188] sm:$0xff] %v459_v49 }
  0x43   : > { %462 = vst [vmem:[%s2372_s7 + $0x190] sm:$0xff] %v461_v50 }
  0x44   : > { %464 = vst [vmem:[%s2372_s7 + $0x198] sm:$0xff] %v463_v51 }
  0x45   : > { %466 = vst [vmem:[%s2372_s7 + $0x1a0] sm:$0xff] %v465_v52 }
  0x46   : > { %468 = vst [vmem:[%s2372_s7 + $0x1a8] sm:$0xff] %v467_v53 }
  0x47   : > { %470 = vst [vmem:[%s2372_s7 + $0x1b0] sm:$0xff] %v469_v54 }
  0x48   : > { %472 = vst [vmem:[%s2372_s7 + $0x1b8] sm:$0xff] %v471_v55 }
  0x49   : > { %474 = vst [vmem:[%s2372_s7 + $0x1c0] sm:$0xff] %v473_v56 }
  0x4a   : > { %476 = vst [vmem:[%s2372_s7 + $0x1c8] sm:$0xff] %v475_v57 }
  0x4b   : > { %478 = vst [vmem:[%s2372_s7 + $0x1d0] sm:$0xff] %v477_v58 }
  0x4c   : > { %480 = vst [vmem:[%s2372_s7 + $0x1d8] sm:$0xff] %v479_v59 }
  0x4d   : > { %482 = vst [vmem:[%s2372_s7 + $0x1e0] sm:$0xff] %v481_v60 }
  0x4e   : > { %484 = vst [vmem:[%s2372_s7 + $0x1e8] sm:$0xff] %v483_v61 }
  0x4f   : > { %486 = vst [vmem:[%s2372_s7 + $0x1f0] sm:$0xff] %v485_v62 }
  0x50   : > { %488 = vst [vmem:[%s2372_s7 + $0x1f8] sm:$0xff] %v487_v63 }
  0x51   : > { %490 = vst [vmem:[%s2372_s7 + $0x200] sm:$0xff] %v489_v0 }
  0x52   : > { %492 = vst [vmem:[%s2372_s7 + $0x208] sm:$0xff] %v491_v1 }
  0x53   : > { %494 = vst [vmem:[%s2372_s7 + $0x210] sm:$0xff] %v493_v2 }
  0x54   : > { %496 = vst [vmem:[%s2372_s7 + $0x218] sm:$0xff] %v495_v3 }
  0x55   : > { %498 = vst [vmem:[%s2372_s7 + $0x220] sm:$0xff] %v497_v4 }
  0x56   : > { %500 = vst [vmem:[%s2372_s7 + $0x228] sm:$0xff] %v499_v5 }
  0x57   : > { %502 = vst [vmem:[%s2372_s7 + $0x230] sm:$0xff] %v501_v6 }
  0x58   : > { %504 = vst [vmem:[%s2372_s7 + $0x238] sm:$0xff] %v503_v7 }
  0x59 PF: > { %p2117_p5 = scmp.ge.s32.totalorder %s2300_s20, 1  ;;  %p509_p6 = scmp.lt.s32.totalorder %s2300_s20, 3 }
  0x5b   : > { %p510_p7 = pnand %p2117_p5, %p509_p6 }
  0x5c   : > { %s516_s8 = sand.u32 (!%p510_p7), 1, %s2292_s18   ;;  %s2302_s15 = smov (!%p510_p7), 120  }
  0x5d   : > { %513 = sbr.rel (%p510_p7) target bundleno = 661 (0x295), region = 70  ;;  %p547_p8 = scmp.lt.s32.totalorder (!%p510_p7), %s2112_s21, 1 }
  0x5e   : > { %s2250_s9 = smul.u32 (!%p510_p7), 576, %s516_s8 }
  0x60   : > { %s2528_s14 = scalar_lea.vmem (!%p510_p7), [#allocation2], %s2250_s9 }
  0x62   : > { %v2521_v8 = vld [vmem:[%s3357_s1] ss:$0 sm:$0xff]  ;;  %v569_v11 = vld [vmem:[%s2528_s14 + $0x50] sm:$0xff]  ;;  %v564_v44 = vld [vmem:[%s2528_s14 + $0x28] sm:$0x1]  ;;  %vm1021_vm0 = vcmask 1046528  }
  0x63   : > { %v2526_v9 = vld [vmem:[%s3358_s2] ss:$0 sm:$0xff]  ;;  %v590_v14 = vmul.f32 %v2521_v8, %v569_v11  ;;  %v561_v15 = vld [vmem:[%s2528_s14 + $0x10] sm:$0xff]  ;;  %v566_v48 = vld [vmem:[%s2528_s14 + $0x38] sm:$0x1]  ;;  %v585_v56 = vmul.f32 %v2521_v8, %v564_v44  ;;  %vm804_vm1 = vcmask 1043456  }
  0x64   : > { %v567_v10 = vld [vmem:[%s2528_s14 + $0x40] sm:$0xff]  ;;  %v573_v18 = vld [vmem:[%s2528_s14 + $0x70] sm:$0xff]  ;;  %v582_v19 = vmul.f32 %v2521_v8, %v561_v15  ;;  %v560_v57 = vld [vmem:[%s2528_s14 + $0x8] sm:$0x1]  ;;  %v587_v61 = vmul.f32 %v2521_v8, %v566_v48  ;;  %vm791_vm2 = vcmask 64512   ;;  %s3388_s21 = smov (!%p547_p8, %s2112_s21), 1 }
  0x65   : > { %v559_v12 = vld [vmem:[%s2528_s14] sm:$0xff]  ;;  %v588_v13 = vmul.f32 %v2521_v8, %v567_v10  ;;  %v594_v21 = vmul.f32 %v2521_v8, %v573_v18  ;;  %v565_v23 = vld [vmem:[%s2528_s14 + $0x30] sm:$0xff]  ;;  %v611_v25 = vadd.f32 %v2526_v9, %v590_v14  ;;  %v562_v62 = vld [vmem:[%s2528_s14 + $0x18] sm:$0x1]  ;;  %v606_v2 = vadd.f32 %v2526_v9, %v585_v56  ;;  %s2120_s20 = sshll.u32 %s3388_s21, 1 }
  0x66   : > { %v580_v16 = vmul.f32 %v2521_v8, %v559_v12  ;;  %v571_v17 = vld [vmem:[%s2528_s14 + $0x60] sm:$0xff]  ;;  %v603_v28 = vadd.f32 %v2526_v9, %v582_v19  ;;  %v586_v31 = vmul.f32 %v2521_v8, %v565_v23  ;;  %v2123_v32 = vld [vmem:[%s2528_s14 + $0xb0] sm:$0xff]  ;;  %v608_v4 = vadd.f32 %v2526_v9, %v587_v61  ;;  %v568_v7 = vld [vmem:[%s2528_s14 + $0x48] sm:$0x1]  ;;  %s555_s24 = scalar_lea.vmem %s3361_s5, %s2120_s20 }
  0x67   : > { %v592_v20 = vmul.f32 %v2521_v8, %v571_v17  ;;  %v563_v22 = vld [vmem:[%s2528_s14 + $0x20] sm:$0xff]  ;;  %v609_v24 = vadd.f32 %v2526_v9, %v588_v13  ;;  %v615_v30 = vadd.f32 %v2526_v9, %v594_v21  ;;  %v2555_v34 = vmax.f32 %v611_v25, 0.0  ;;  %v2121_v38 = vld [vmem:[%s2528_s14 + $0x90] sm:$0xff]  ;;  %v570_v14 = vld [vmem:[%s2528_s14 + $0x58] sm:$0x1] }
  0x68   : > { %v601_v26 = vadd.f32 %v2526_v9, %v580_v16  ;;  %v584_v27 = vmul.f32 %v2521_v8, %v563_v22  ;;  %v2124_v37 = vld [vmem:[%s2528_s14 + $0xc0] sm:$0xff]  ;;  %v2560_v39 = vmax.f32 %v603_v28, 0.0  ;;  %v607_v42 = vadd.f32 %v2526_v9, %v586_v31  ;;  %v2127_v23 = vld [vmem:[%s2528_s14 + $0xf0] sm:$0xff] }
  0x69   : > { %v613_v29 = vadd.f32 %v2526_v9, %v592_v20  ;;  %v2553_v33 = vmax.f32 %v609_v24, 0.0  ;;  %v2564_v41 = vmax.f32 %v615_v30, 0.0  ;;  %v2122_v43 = vld [vmem:[%s2528_s14 + $0xa0] sm:$0xff]  ;;  %v649_v47 = vmul.f32 %v2521_v8, %v2123_v32 }
  0x6a   : > { %v619_v35 = vmax.f32 %v601_v26, 0.0  ;;  %v605_v36 = vadd.f32 %v2526_v9, %v584_v27  ;;  %v2583_v51 = vmax.f32 %v607_v42, 0.0  ;;  %v650_v52 = vmul.f32 %v2521_v8, %v2124_v37  ;;  %v2128_v28 = vld [vmem:[%s2528_s14 + $0x100] sm:$0xff] }
  0x6b   : > { %v2562_v40 = vmax.f32 %v613_v29, 0.0  ;;  %v2571_v45 = vpack.c.bf16 %v2555_v34, %v2553_v33  ;;  %v2589_v53 = vadd.f32 %v2526_v9, %v649_v47  ;;  %v647_v54 = vmul.f32 %v2521_v8, %v2121_v38 }
  0x6c   : > { %v2573_v46 = vmax.f32 %v605_v36, 0.0  ;;  %v2577_v49 = vrot.slane %v619_v35, 1  ;;  %v648_v55 = vmul.f32 %v2521_v8, %v2122_v43  ;;  %v2596_v58 = vpack.c.bf16 %v2560_v39, %v619_v35  ;;  %v2125_v35 = vld [vmem:[%s2528_s14 + $0xd0] sm:$0xff]  ;;  %v2126_v43 = vld [vmem:[%s2528_s14 + $0xe0] sm:$0xff] }
  0x6d   : > { %v2581_v50 = vpack.c.bf16 %v2564_v41, %v2562_v40  ;;  %787 = vrot.lane.b32.xlu0 %v2571_v45, %s2302_s15  ;;  %v2605_v60 = vadd.f32 %v2526_v9, %v650_v52  ;;  %v3369_v63 = vmax.f32 %v2589_v53, 0.0  ;;  %v656_v0 = vadd.f32 %v2526_v9, %v647_v54 }
  0x6e   : > { %v2602_v59 = vpack.c.bf16 %v2583_v51, %v2573_v46  ;;  %v2612_v1 = vadd.f32 %v2526_v9, %v648_v55  ;;  %v1028_v5 = vrot.slane %v2573_v46, 1  ;;  %v581_v6 = vmul.f32 %v2521_v8, %v560_v57 }
  0x6f   : > { %789 = vrot.lane.b32.xlu1 %v2581_v50, %s2302_s15  ;;  %v3366_v3 = vmax.f32 %v2605_v60, 0.0  ;;  %v665_v10 = vmax.f32 %v656_v0, 0.0  ;;  %v624_v12 = vmax.f32 %v606_v2, 0.0  ;;  %v583_v13 = vmul.f32 %v2521_v8, %v562_v62 }
  0x70   : > { %v3370_v11 = vmax.f32 %v2612_v1, 0.0  ;;  %v626_v16 = vmax.f32 %v608_v4, 0.0  ;;  %v1031_v17 = vrot.slane %v2583_v51, 1  ;;  %v602_v18 = vadd.f32 %v2526_v9, %v581_v6  ;;  %v2130_v4 = vld [vmem:[%s2528_s14 + $0x120] sm:$0xff] }
  0x71   : > { %v2627_v15 = vpack.c.bf16 %v3366_v3, %v3369_v63  ;;  %v1029_v20 = vrot.slane %v624_v12, 1  ;;  %v604_v21 = vadd.f32 %v2526_v9, %v583_v13  ;;  %v589_v22 = vmul.f32 %v2521_v8, %v568_v7  ;;  %v2146_v13 = vld [vmem:[%s2528_s14 + $0x1b0] sm:$0xff] }
  0x72   : > { %v2633_v19 = vpack.c.bf16 %v3370_v11, %v665_v10  ;;  %v1032_v24 = vrot.slane %v626_v16, 1  ;;  %v620_v25 = vmax.f32 %v602_v18, 0.0  ;;  %v1025_v26 = vrot.slane %v2560_v39, 1  ;;  %v2132_v10 = vld [vmem:[%s2528_s14 + $0x130] sm:$0xff] }
  0x73   : > { %v591_v27 = vmul.f32 %v2521_v8, %v570_v14  ;;  %v2646_v29 = vsel %vm1021_vm0, %v1028_v5, %v1029_v20  ;;  %v622_v30 = vmax.f32 %v604_v21, 0.0  ;;  %v610_v31 = vadd.f32 %v2526_v9, %v589_v22  ;;  %v2147_v14 = vld [vmem:[%s2528_s14 + $0x1c0] sm:$0xff]  ;;  %v572_v21 = vld [vmem:[%s2528_s14 + $0x68] sm:$0x1] }
  0x74   : > { %945 = vrot.lane.b32.xlu2 %v2633_v19, %s2302_s15  ;;  %v1034_v32 = vrot.slane %v2553_v33, 1  ;;  %v2654_v36 = vsel %vm1021_vm0, %v1031_v17, %v1032_v24  ;;  %v1023_v37 = vrot.slane %v620_v25, 1  ;;  %v653_v42 = vmul.f32 %v2521_v8, %v2127_v23  ;;  %v776_v20 = vld [vmem:[%s3359_s3] sm:$0xf] }
  0x75   : > { %783 = vrot.lane.b32.xlu0 %v2596_v58, %s2302_s15  ;;  %v612_v38 = vadd.f32 %v2526_v9, %v591_v27  ;;  %v1026_v44 = vrot.slane %v622_v30, 1  ;;  %v628_v47 = vmax.f32 %v610_v31, 0.0  ;;  %v1037_v48 = vrot.slane %v2555_v34, 1 }
  0x76   : > { %v654_v52 = vmul.f32 %v2521_v8, %v2128_v28  ;;  %v1024_v54 = vsel %vm1021_vm0, %v2577_v49, %v1023_v37  ;;  %v2664_v56 = vadd.f32 %v2526_v9, %v653_v42  ;;  %v651_v57 = vmul.f32 %v2521_v8, %v2125_v35 }
  0x77   : > { %785 = vrot.lane.b32.xlu1 %v2602_v59, %s2302_s15  ;;  %v630_v55 = vmax.f32 %v612_v38, 0.0  ;;  %v2669_v61 = vpack.c.bf16 %v2654_v36, %v2646_v29  ;;  %v2672_v62 = vsel %vm1021_vm0, %v1025_v26, %v1026_v44  ;;  %v1035_v0 = vrot.slane %v628_v47, 1  ;;  %v574_v26 = vld [vmem:[%s2528_s14 + $0x78] sm:$0x1]  ;;  %v2154_v38 = vld [vmem:[%s3359_s3 + $0x4] sm:$0xf] }
  0x78   : > { %v652_v2 = vmul.f32 %v2521_v8, %v2126_v43  ;;  %v2677_v49 = vpack.c.bf16 %v2672_v62, %v1024_v54  ;;  %v2680_v6 = vadd.f32 %v2526_v9, %v654_v52  ;;  %v2683_v7 = vadd.f32 %v2526_v9, %v651_v57 }
  0x79   : > { %v1038_v5 = vrot.slane %v630_v55, 1  ;;  %v2692_v16 = vsel %vm1021_vm0, %v1034_v32, %v1035_v0  ;;  %v3362_v17 = vmax.f32 %v2664_v56, 0.0  ;;  %v691_v18 = vmul.f32 %v2521_v8, %v2130_v4 }
  0x7a   : > { %v2687_v12 = vadd.f32 %v2526_v9, %v652_v2  ;;  %v3365_v23 = vmax.f32 %v2683_v7, 0.0  ;;  %v693_v25 = vmul.f32 %v2521_v8, %v2132_v10  ;;  %v3364_v27 = vmax.f32 %v2680_v6, 0.0 }
  0x7b   : > { %v2705_v22 = vsel %vm1021_vm0, %v1037_v48, %v1038_v5  ;;  %v748_v28 = vmul.f32 %v2521_v8, %v2146_v13  ;;  %v749_v30 = vmul.f32 %v2521_v8, %v2147_v14  ;;  %v850_v31 = vsel %vm804_vm1, %v776_v20, 0 }
  0x7c   : > { %1118 = vrot.lane.b32.xlu2 %v2677_v49, %s2302_s15  ;;  %v3363_v24 = vmax.f32 %v2687_v12, 0.0  ;;  %v593_v32 = vmul.f32 %v2521_v8, %v572_v21  ;;  %v2720_v35 = vpack.c.bf16 %v2705_v22, %v2692_v16  ;;  %2247 = vmatpush.bf16.msra.mxu3 %v850_v31  ;;  %v595_v37 = vmul.f32 %v2521_v8, %v574_v26 }
  0x7d   : > { %947 = vrot.lane.b32.xlu0 %v2627_v15, %s2302_s15  ;;  %859 = vmatpush.bf16.msra.mxu1 %v850_v31  ;;  %v2733_v43 = vadd.f32 %v2526_v9, %v691_v18  ;;  %v2736_v44 = vadd.f32 %v2526_v9, %v693_v25  ;;  %v2743_v48 = vpack.c.bf16 %v3364_v27, %v3362_v17  ;;  %v1040_v0 = vrot.slane %v2562_v40, 1  ;;  %v2149_v31 = vld [vmem:[%s2528_s14 + $0x1e0] sm:$0xff] }
  0x7e   : > { %v2730_v42 = vpack.c.bf16 %v3363_v24, %v3365_v23  ;;  %v614_v47 = vadd.f32 %v2526_v9, %v593_v32  ;;  %v756_v52 = vadd.f32 %v2526_v9, %v748_v28  ;;  %v757_v54 = vadd.f32 %v2526_v9, %v749_v30  ;;  %v2148_v30 = vld [vmem:[%s2528_s14 + $0x1d0] sm:$0xff] }
  0x7f   : > { %1120 = vrot.lane.b32.xlu1 %v2669_v61, %s2302_s15  ;;  %v616_v55 = vadd.f32 %v2526_v9, %v595_v37  ;;  %v806_v2 = vsel %vm804_vm1, %v2154_v38, 0  ;;  %v1043_v5 = vrot.slane %v2564_v41, 1  ;;  %2161 = vmatmul.msk.bf16.vlgmr.msra.gmra.mxu3 %vm791_vm2, %v2571_v45  ;;  %v723_v10 = vmax.f32 %v2733_v43, 0.0 }
  0x80   : > { %v632_v57 = vmax.f32 %v614_v47, 0.0  ;;  %2246 = vmatpush.bf16.msra.mxu2 %v806_v2  ;;  %v725_v13 = vmax.f32 %v2736_v44, 0.0  ;;  %v764_v18 = vmax.f32 %v756_v52, 0.0  ;;  %v765_v20 = vmax.f32 %v757_v54, 0.0  ;;  %2159 = vmatmul.msk.bf16.vlgmr.msra.gmra.mxu1 %vm791_vm2, %v2596_v58 }
  0x81   : > { %v634_v4 = vmax.f32 %v616_v55, 0.0  ;;  %815 = vmatpush.bf16.msra.mxu0 %v806_v2  ;;  %v750_v32 = vmul.f32 %v2521_v8, %v2148_v30  ;;  %v751_v37 = vmul.f32 %v2521_v8, %v2149_v31  ;;  %v2138_v55 = vld [vmem:[%s2528_s14 + $0x160] sm:$0xff]  ;;  %v2163_v2 = vld [vmem:[%s3359_s3 + $0x8] sm:$0xf] }
  0x82   : > { %v1041_v14 = vrot.slane %v632_v57, 1  ;;  %v2773_v26 = vpack.c.bf16 %v725_v13, %v723_v10  ;;  %v2779_v58 = vpack.c.bf16 %v765_v20, %v764_v18  ;;  %v2140_v57 = vld [vmem:[%s2528_s14 + $0x170] sm:$0xff] }
  0x83   : > { %v1044_v45 = vrot.slane %v634_v4, 1  ;;  %v758_v38 = vadd.f32 %v2526_v9, %v750_v32  ;;  %v759_v47 = vadd.f32 %v2526_v9, %v751_v37  ;;  %v2168_v4 = vld [vmem:[%s3359_s3 + $0xc] sm:$0xf]  ;;  %v2134_v32 = vld [vmem:[%s2528_s14 + $0x140] sm:$0xff]  ;;  %v2136_v37 = vld [vmem:[%s2528_s14 + $0x150] sm:$0xff] }
  0x84   : > { %949 = vrot.lane.b32.xlu2 %v2730_v42, %s2302_s15  ;;  %v2764_v21 = vsel %vm1021_vm0, %v1040_v0, %v1041_v14  ;;  %v966_v14 = vsel %vm804_vm1, %v2168_v4, 0 }
  0x85   : > { %1122 = vrot.lane.b32.xlu0 %v2720_v35, %s2302_s15  ;;  %v2767_v25 = vsel %vm1021_vm0, %v1043_v5, %v1044_v45  ;;  %v766_v52 = vmax.f32 %v758_v38, 0.0  ;;  %v767_v54 = vmax.f32 %v759_v47, 0.0  ;;  %v900_v5 = vsel %vm804_vm1, %v2163_v2, 0  ;;  %975 = vmatpush.bf16.msrb.mxu3 %v966_v14  ;;  %v2142_v14 = vld [vmem:[%s2528_s14 + $0x180] sm:$0xff] }
  0x86   : > { %v2777_v28 = vpack.c.bf16 %v2767_v25, %v2764_v21  ;;  %909 = vmatpush.bf16.msrb.mxu2 %v900_v5  ;;  %v695_v38 = vmul.f32 %v2521_v8, %v2134_v32  ;;  %v697_v47 = vmul.f32 %v2521_v8, %v2136_v37  ;;  %v2144_v32 = vld [vmem:[%s2528_s14 + $0x190] sm:$0xff]  ;;  %v703_v37 = vmul.f32 %v2521_v8, %v2142_v14 }
  0x87   : > { %951 = vrot.lane.b32.xlu1 %v2743_v48, %s2302_s15  ;;  %v2799_v0 = vpack.c.bf16 %v767_v54, %v766_v52  ;;  %v2173_v52 = vld [vmem:[%s3359_s3 + $0x10] sm:$0xf]  ;;  %v2178_v54 = vld [vmem:[%s3359_s3 + $0x14] sm:$0xf] }
  0x8c   : > { %1124 = vrot.lane.b32.xlu2 %v2777_v28, %s2302_s15 }
  0x8d   : > { %1242 = vrot.lane.b32.xlu0 %v2773_v26, %s2302_s15 }
  0x8f   : > { %1366 = vrot.lane.b32.xlu1 %v2779_v58, %s2302_s15  ;;  %2162 = vmatmul.msk.bf16.gmra.mxu3 %vm791_vm2, %v2581_v50  ;;  %v699_v50 = vmul.f32 %v2521_v8, %v2138_v55  ;;  %v1073_v55 = vsel %vm804_vm1, %v2173_v52, 0 }
  0x90   : > { %2160 = vmatmul.msk.bf16.gmra.mxu1 %vm791_vm2, %v2602_v59  ;;  %v701_v59 = vmul.f32 %v2521_v8, %v2140_v57  ;;  %v1139_v57 = vsel %vm804_vm1, %v2178_v54, 0  ;;  %1082 = vmatpush.bf16.msrb.mxu0 %v1073_v55 }
  0x91   : > { %v2814_v18 = vadd.f32 %v2526_v9, %v699_v50  ;;  %v2842_v50 = vadd.f32 %v2526_v9, %v695_v38  ;;  %1148 = vmatpush.bf16.msrb.mxu1 %v1139_v57  ;;  %v705_v38 = vmul.f32 %v2521_v8, %v2144_v32  ;;  %v2152_v32 = vld [vmem:[%s2528_s14 + $0x210] sm:$0xff] }
  0x92   : > { %v2817_v20 = vadd.f32 %v2526_v9, %v701_v59  ;;  %v2845_v59 = vadd.f32 %v2526_v9, %v697_v47  ;;  %v2862_v47 = vadd.f32 %v2526_v9, %v703_v37  ;;  %v2153_v37 = vld [vmem:[%s2528_s14 + $0x220] sm:$0xff] }
  0x93   : > { %v3372_v45 = vmax.f32 %v2814_v18, 0.0  ;;  %v727_v2 = vmax.f32 %v2842_v50, 0.0  ;;  %v2865_v52 = vadd.f32 %v2526_v9, %v705_v38  ;;  %v754_v38 = vmul.f32 %v2521_v8, %v2152_v32  ;;  %v2188_v32 = vld [vmem:[%s3359_s3 + $0x1c] sm:$0xf]  ;;  %v2133_v50 = vld [vmem:[%s2528_s14 + $0x138] sm:$0x1] }
  0x94   : > { %v3371_v30 = vmax.f32 %v2817_v20, 0.0  ;;  %v729_v4 = vmax.f32 %v2845_v59, 0.0  ;;  %v3368_v54 = vmax.f32 %v2862_v47, 0.0  ;;  %v755_v17 = vmul.f32 %v2521_v8, %v2153_v37 }
  0x95   : > { %1368 = vrot.lane.b32.xlu0 %v2799_v0, %s2302_s15  ;;  %v3367_v55 = vmax.f32 %v2865_v52, 0.0  ;;  %v762_v24 = vadd.f32 %v2526_v9, %v754_v38  ;;  %v2150_v38 = vld [vmem:[%s2528_s14 + $0x1f0] sm:$0xff] }
  0x96   : > { %v2825_v31 = vpack.c.bf16 %v3371_v30, %v3372_v45  ;;  %v2853_v5 = vpack.c.bf16 %v729_v4, %v727_v2  ;;  %v763_v27 = vadd.f32 %v2526_v9, %v755_v17 }
  0x97   : > { %v2873_v57 = vpack.c.bf16 %v3367_v55, %v3368_v54  ;;  %v770_v23 = vmax.f32 %v762_v24, 0.0  ;;  %v752_v24 = vmul.f32 %v2521_v8, %v2150_v38  ;;  %v2193_v38 = vld [vmem:[%s3359_s3 + $0x20] sm:$0xf] }
  0x98   : > { %1246 = vrot.lane.b32.xlu1 %v2825_v31, %s2302_s15  ;;  %1244 = vrot.lane.b32.xlu2 %v2853_v5, %s2302_s15  ;;  %v771_v3 = vmax.f32 %v763_v27, 0.0 }
  0x9a   : > { %v2884_v54 = vpack.c.bf16 %v771_v3, %v770_v23  ;;  %v1263_v3 = vsel %vm804_vm1, %v2188_v32, 0  ;;  %v2151_v23 = vld [vmem:[%s2528_s14 + $0x200] sm:$0xff] }
  0x9b   : > { %1272 = vmatpush.bf16.msra.mxu3 %v1263_v3  ;;  %v753_v27 = vmul.f32 %v2521_v8, %v2151_v23  ;;  %v1321_v3 = vsel %vm804_vm1, %v2193_v38, 0  ;;  %v2925_v38 = vpack.c.bf16 %v2573_v46, %v2560_v39 }
  0x9d   : > { %1248 = vrot.lane.b32.xlu0 %v2873_v57, %s2302_s15 }
  0xa0   : > { %1372 = vrot.lane.b32.xlu1 %v2884_v54, %s2302_s15 }
  0xa5   : > { %1662 = vrot.lane.b32.xlu0 %v2925_v38, %s2302_s15 }
  0xce   : > { %v946_v14 = vpop.permute.xlu2 %945 }
  0xcf   : > { %2169 = vmatmul.msk.bf16.vlgmr.msrb.gmra.mxu3 %vm791_vm2, %v946_v14  ;;  %v2183_v14 = vld [vmem:[%s3359_s3 + $0x18] sm:$0xf] }
  0xd0   : > { %v1197_v17 = vsel %vm804_vm1, %v2183_v14, 0  ;;  %v761_v14 = vadd.f32 %v2526_v9, %v753_v27 }
  0xd2   : > { %v769_v30 = vmax.f32 %v761_v14, 0.0 }
  0xd6   : > { %v1119_v37 = vpop.permute.xlu2 %1118 }
  0xd7   : > { %2179 = vmatmul.msk.bf16.vlgmr.msrb.gmra.mxu1 %vm791_vm2, %v1119_v37 }
  0xdf   : > { %v788_v55 = vpop.permute.xlu0 %787 }
  0xe0   : > { %2157 = vmatmul.msk.bf16.vlgmr.msra.gmra.mxu2 %vm791_vm2, %v788_v55  ;;  %v760_v55 = vadd.f32 %v2526_v9, %v752_v24 }
  0xe1   : > { %v790_v63 = vpop.permute.xlu1 %789  ;;  %1206 = vmatpush.bf16.msra.mxu2 %v1197_v17  ;;  %v2198_v17 = vld [vmem:[%s3359_s3 + $0x24] sm:$0xf] }
  0xe2   : > { %v768_v11 = vmax.f32 %v760_v55, 0.0  ;;  %v1387_v23 = vsel %vm804_vm1, %v2198_v17, 0  ;;  %v1448_v17 = vrot.slane %v727_v2, 1 }
  0xe3   : > { %1396 = vmatpush.bf16.msra.mxu1 %v1387_v23 }
  0xe4   : > { %v2905_v37 = vpack.c.bf16 %v769_v30, %v768_v11  ;;  %v2137_v11 = vld [vmem:[%s2528_s14 + $0x158] sm:$0x1] }
  0xe5   : > { %v698_v24 = vmul.f32 %v2521_v8, %v2137_v11 }
  0xe6   : > { %1370 = vrot.lane.b32.xlu2 %v2905_v37, %s2302_s15 }
  0xe7   : > { %v784_v45 = vpop.permute.xlu0 %783  ;;  %v714_v55 = vadd.f32 %v2526_v9, %v698_v24 }
  0xe8   : > { %2155 = vmatmul.msk.bf16.vlgmr.msra.gmra.mxu0 %vm791_vm2, %v784_v45  ;;  %v2135_v45 = vld [vmem:[%s2528_s14 + $0x148] sm:$0x1] }
  0xe9   : > { %v786_v32 = vpop.permute.xlu1 %785  ;;  %1330 = vmatpush.bf16.msra.mxu0 %v1321_v3  ;;  %v696_v30 = vmul.f32 %v2521_v8, %v2135_v45  ;;  %v1451_v3 = vrot.slane %v729_v4, 1  ;;  %v730_v11 = vmax.f32 %v714_v55, 0.0  ;;  %v694_v4 = vmul.f32 %v2521_v8, %v2133_v50 }
  0xeb   : > { %v712_v27 = vadd.f32 %v2526_v9, %v696_v30  ;;  %v1452_v46 = vrot.slane %v730_v11, 1  ;;  %v2131_v30 = vld [vmem:[%s2528_s14 + $0x128] sm:$0x1]  ;;  %v710_v55 = vadd.f32 %v2526_v9, %v694_v4  ;;  %v3374_v4 = vmax.f32 %v2817_v20, 0.0 }
  0xec   : > { %v692_v2 = vmul.f32 %v2521_v8, %v2131_v30  ;;  %v2983_v20 = vpack.c.bf16 %v2562_v40, %v2555_v34  ;;  %v575_v34 = vld [vmem:[%s2528_s14 + $0x80] sm:$0xff] }
  0xed   : > { %v728_v45 = vmax.f32 %v712_v27, 0.0  ;;  %v596_v40 = vmul.f32 %v2521_v8, %v575_v34 }
  0xee   : > { %v708_v27 = vadd.f32 %v2526_v9, %v692_v2 }
  0xef   : > { %v948_v14 = vpop.permute.xlu0 %947  ;;  %v1449_v39 = vrot.slane %v728_v45, 1 }
  0xf0   : > { %2158 = vmatmul.msk.bf16.gmra.mxu2 %vm791_vm2, %v790_v63  ;;  %2170 = vmatmul.msk.bf16.gmra.mxu3 %vm791_vm2, %v948_v14  ;;  %v1453_v63 = vsel %vm1021_vm0, %v1451_v3, %v1452_v46  ;;  %v1442_v14 = vrot.slane %v723_v10, 1  ;;  %v724_v3 = vmax.f32 %v708_v27, 0.0  ;;  %v2141_v46 = vld [vmem:[%s2528_s14 + $0x178] sm:$0x1]  ;;  %v950_v10 = vpop.permute.xlu2 %949  ;;  %v1457_v27 = vrot.slane %v3374_v4, 1 }
  0xf1   : > { %v1121_v23 = vpop.permute.xlu1 %1120  ;;  %v1450_v59 = vsel %vm1021_vm0, %v1448_v17, %v1449_v39  ;;  %v1445_v17 = vrot.slane %v725_v13, 1  ;;  %v2139_v39 = vld [vmem:[%s2528_s14 + $0x168] sm:$0x1]  ;;  %v702_v43 = vmul.f32 %v2521_v8, %v2141_v46  ;;  %v2993_v46 = vpack.c.bf16 %v2553_v33, %v2583_v51 }
  0xf2   : > { %2180 = vmatmul.msk.bf16.gmra.mxu1 %vm791_vm2, %v1121_v23  ;;  %v2942_v24 = vpack.c.bf16 %v1453_v63, %v1450_v59  ;;  %v726_v23 = vmax.f32 %v710_v55, 0.0  ;;  %v1443_v45 = vrot.slane %v724_v3, 1  ;;  %v700_v59 = vmul.f32 %v2521_v8, %v2139_v39  ;;  %v2203_v51 = vld [vmem:[%s3359_s3 + $0x28] sm:$0xf] }
  0xf3   : > { %v718_v13 = vadd.f32 %v2526_v9, %v702_v43  ;;  %v3376_v43 = vmax.f32 %v2589_v53, 0.0  ;;  %v3377_v4 = vmax.f32 %v2862_v47, 0.0 }
  0xf4   : > { %1540 = vrot.lane.b32.xlu1 %v2942_v24, %s2302_s15  ;;  %v1446_v11 = vrot.slane %v726_v23, 1  ;;  %v1444_v30 = vsel %vm1021_vm0, %v1442_v14, %v1443_v45  ;;  %v716_v44 = vadd.f32 %v2526_v9, %v700_v59  ;;  %v3375_v59 = vmax.f32 %v2612_v1, 0.0  ;;  %v2145_v1 = vld [vmem:[%s2528_s14 + $0x198] sm:$0x1] }
  0xf6   : > { %v1447_v50 = vsel %vm1021_vm0, %v1445_v17, %v1446_v11  ;;  %v732_v14 = vmax.f32 %v716_v44, 0.0  ;;  %v734_v17 = vmax.f32 %v718_v13, 0.0  ;;  %v2143_v44 = vld [vmem:[%s2528_s14 + $0x188] sm:$0x1]  ;;  %v706_v13 = vmul.f32 %v2521_v8, %v2145_v1 }
  0xf7   : > { %v2959_v63 = vpack.c.bf16 %v1447_v50, %v1444_v30  ;;  %v1123_v55 = vpop.permute.xlu0 %1122  ;;  %v704_v53 = vmul.f32 %v2521_v8, %v2143_v44  ;;  %v3093_v44 = vpack.c.bf16 %v2764_v21, %v2705_v22  ;;  %v3381_v22 = vmax.f32 %v2680_v6, 0.0  ;;  %v2223_v6 = vld [vmem:[%s3359_s3 + $0x38] sm:$0xf] }
  0xf8   : > { %2156 = vmatmul.msk.bf16.gmra.mxu0 %vm791_vm2, %v786_v32  ;;  %v3373_v32 = vmax.f32 %v2814_v18, 0.0  ;;  %v1455_v3 = vrot.slane %v732_v14, 1  ;;  %v1458_v23 = vrot.slane %v734_v17, 1  ;;  %v1125_v39 = vpop.permute.xlu2 %1124  ;;  %v2213_v17 = vld [vmem:[%s3359_s3 + $0x30] sm:$0xf] }
  0xf9   : > { %1538 = vrot.lane.b32.xlu2 %v2959_v63, %s2302_s15 }
  0xfa   : > { %v1454_v2 = vrot.slane %v3373_v32, 1  ;;  %v1459_v18 = vsel %vm1021_vm0, %v1457_v27, %v1458_v23  ;;  %v720_v32 = vadd.f32 %v2526_v9, %v704_v53  ;;  %v1460_v27 = vrot.slane %v3377_v4, 1 }
  0xfb   : > { %v3383_v4 = vmax.f32 %v2664_v56, 0.0  ;;  %v2228_v56 = vld [vmem:[%s3359_s3 + $0x3c] sm:$0xf] }
  0xfc   : > { %v1456_v45 = vsel %vm1021_vm0, %v1454_v2, %v1455_v3  ;;  %1666 = vrot.lane.b32.xlu1 %v2983_v20, %s2302_s15  ;;  %v722_v2 = vadd.f32 %v2526_v9, %v706_v13  ;;  %v2218_v3 = vld [vmem:[%s3359_s3 + $0x34] sm:$0xf]  ;;  %v736_v23 = vmax.f32 %v720_v32, 0.0 }
  0xfd   : > { %v2975_v11 = vpack.c.bf16 %v1459_v18, %v1456_v45  ;;  %v1617_v18 = vsel %vm804_vm1, %v2213_v17, 0  ;;  %v1683_v47 = vsel %vm804_vm1, %v2218_v3, 0 }
  0xfe   : > { %v738_v45 = vmax.f32 %v722_v2, 0.0  ;;  %1692 = vmatpush.bf16.msrb.mxu1 %v1683_v47  ;;  %v3382_v2 = vmax.f32 %v2687_v12, 0.0  ;;  %v1741_v12 = vsel %vm804_vm1, %v2223_v6, 0  ;;  %v2233_v47 = vld [vmem:[%s3359_s3 + $0x40] sm:$0xf] }
  0xff   : > { %1542 = vrot.lane.b32.xlu0 %v2975_v11, %s2302_s15 }
 0x100   : > { %2164 = vmatmul.msk.bf16.vlgmr.msrb.gmra.mxu2 %vm791_vm2, %v2633_v19  ;;  %2171 = vmatmul.msk.bf16.gmra.mxu3 %vm791_vm2, %v950_v10  ;;  %v952_v19 = vpop.permute.xlu1 %951  ;;  %v1493_v10 = vsel %vm804_vm1, %v2203_v51, 0  ;;  %v1245_v34 = vpop.permute.xlu2 %1244  ;;  %v3380_v51 = vmax.f32 %v2683_v7, 0.0 }
 0x101   : > { %1664 = vrot.lane.b32.xlu2 %v2993_v46, %s2302_s15  ;;  %1502 = vmatpush.bf16.msrb.mxu2 %v1493_v10  ;;  %v3084_v10 = vpack.c.bf16 %v2646_v29, %v2672_v62 }
 0x102   : > { %2181 = vmatmul.msk.bf16.gmra.mxu1 %vm791_vm2, %v1123_v55  ;;  %v3378_v55 = vmax.f32 %v2865_v52, 0.0  ;;  %v1461_v52 = vrot.slane %v736_v23, 1 }
 0x104   : > { %v1463_v14 = vrot.slane %v3378_v55, 1 }
 0x108   : > { %2174 = vmatmul.msk.bf16.vlgmr.msrb.gmra.mxu0 %vm791_vm2, %v2677_v49  ;;  %v1243_v49 = vpop.permute.xlu0 %1242  ;;  %v1367_v50 = vpop.permute.xlu1 %1366 }
 0x109   : > { %1626 = vmatpush.bf16.msrb.mxu0 %v1617_v18 }
 0x110   : > { %2165 = vmatmul.msk.bf16.gmra.mxu2 %vm791_vm2, %v2627_v15  ;;  %2172 = vmatmul.msk.bf16.gmra.mxu3 %vm791_vm2, %v952_v19  ;;  %v3002_v15 = vadd.f32 %v2526_v9, %v596_v40  ;;  %v1464_v19 = vrot.slane %v738_v45, 1 }
 0x112   : > { %2182 = vmatmul.msk.bf16.gmra.mxu1 %vm791_vm2, %v1125_v39  ;;  %v635_v30 = vmax.f32 %v3002_v15, 0.0  ;;  %v1465_v39 = vsel %vm1021_vm0, %v1463_v14, %v1464_v19  ;;  %v1807_v14 = vsel %vm804_vm1, %v2228_v56, 0  ;;  %v1871_v19 = vsel %vm804_vm1, %v2233_v47, 0 }
 0x114   : > { %v3008_v33 = vpack.c.bf16 %v635_v30, %v2564_v41  ;;  %v3023_v41 = vpack.c.bf16 %v3376_v43, %v3375_v59  ;;  %v871_v59 = vpop.f32.mrf.mxu3  ;;  %v3074_v43 = vpack.c.bf16 %v2692_v16, %v2654_v36 }
 0x116   : > { %1668 = vrot.lane.b32.xlu0 %v3008_v33, %s2302_s15  ;;  %1786 = vrot.lane.b32.xlu1 %v3023_v41, %s2302_s15 }
 0x118   : > { %2175 = vmatmul.msk.bf16.gmra.mxu0 %vm791_vm2, %v2669_v61  ;;  %v2208_v61 = vld [vmem:[%s3359_s3 + $0x2c] sm:$0xf] }
 0x11e   : > { %1918 = vrot.lane.b32.xlu1 %v3074_v43, %s2302_s15 }
 0x120   : > { %2166 = vmatmul.msk.bf16.gmra.mxu2 %vm791_vm2, %v2730_v42  ;;  %2189 = vmatmul.msk.bf16.vlgmr.msra.gmra.mxu3 %vm791_vm2, %v1243_v49  ;;  %v1559_v42 = vsel %vm804_vm1, %v2208_v61, 0  ;;  %v3379_v49 = vmax.f32 %v2605_v60, 0.0  ;;  %v861_v60 = vpop.f32.mrf.mxu1 }
 0x121   : > { %1568 = vmatpush.bf16.msrb.mxu3 %v1559_v42  ;;  %v2129_v42 = vld [vmem:[%s2528_s14 + $0x110] sm:$0xff] }
 0x122   : > { %2199 = vmatmul.msk.bf16.vlgmr.msra.gmra.mxu1 %vm791_vm2, %v1367_v50  ;;  %v3065_v61 = vpack.c.bf16 %v3380_v51, %v3379_v49  ;;  %v1369_v50 = vpop.permute.xlu0 %1368  ;;  %v655_v1 = vmul.f32 %v2521_v8, %v2129_v42 }
 0x124   : > { %1788 = vrot.lane.b32.xlu0 %v3065_v61, %s2302_s15  ;;  %v664_v62 = vadd.f32 %v2526_v9, %v655_v1 }
 0x125   : > { %1816 = vmatpush.bf16.msra.mxu3 %v1807_v14 }
 0x126   : > { %v673_v53 = vmax.f32 %v664_v62, 0.0 }
 0x128   : > { %2176 = vmatmul.msk.bf16.gmra.mxu0 %vm791_vm2, %v2720_v35  ;;  %v1462_v35 = vsel %vm1021_vm0, %v1460_v27, %v1461_v52  ;;  %v863_v36 = vpop.f32.mrf.mxu1  ;;  %v3105_v21 = vpack.c.bf16 %v673_v53, %v3381_v22  ;;  %v3115_v27 = vpack.c.bf16 %v3383_v4, %v3382_v2 }
 0x129   : > { %v3054_v40 = vpack.c.bf16 %v1465_v39, %v1462_v35 }
 0x12a   : > { %v1249_v16 = vpop.permute.xlu0 %1248  ;;  %1792 = vrot.lane.b32.xlu1 %v3105_v21, %s2302_s15 }
 0x12b   : > { %1544 = vrot.lane.b32.xlu2 %v3054_v40, %s2302_s15 }
 0x12c   : > { %1920 = vrot.lane.b32.xlu0 %v3093_v44, %s2302_s15 }
 0x130   : > { %2167 = vmatmul.msk.bf16.gmra.mxu2 %vm791_vm2, %v2743_v48  ;;  %2190 = vmatmul.msk.bf16.gmra.mxu3 %vm791_vm2, %v1245_v34  ;;  %v1247_v48 = vpop.permute.xlu1 %1246  ;;  %v866_v29 = vpop.f32.mrf.mxu1  ;;  %v2238_v34 = vld [vmem:[%s3359_s3 + $0x44] sm:$0xf] }
 0x132   : > { %2200 = vmatmul.msk.bf16.gmra.mxu1 %vm791_vm2, %v1369_v50  ;;  %v576_v50 = vld [vmem:[%s2528_s14 + $0x88] sm:$0x1]  ;;  %s2245_s14 = sshll.u32 %s3388_s21, 6 }
 0x133   : > { %1916 = vrot.lane.b32.xlu2 %v3084_v10, %s2302_s15  ;;  %s3310_s17 = scalar_lea.vmem %s3360_s4, %s2245_s14 }
 0x138   : > { %2177 = vmatmul.msk.bf16.gmra.mxu0 %vm791_vm2, %v2777_v28  ;;  %v873_v28 = vpop.f32.mrf.mxu3 }
 0x13b   : > { %1790 = vrot.lane.b32.xlu2 %v3115_v27, %s2302_s15 }
 0x140   : > { %2184 = vmatmul.msk.bf16.vlgmr.msra.gmra.mxu2 %vm791_vm2, %v2773_v26  ;;  %2191 = vmatmul.msk.bf16.gmra.mxu3 %vm791_vm2, %v1247_v48  ;;  %v1371_v7 = vpop.permute.xlu2 %1370  ;;  %v876_v26 = vpop.f32.mrf.mxu3  ;;  %v597_v48 = vmul.f32 %v2521_v8, %v576_v50 }
 0x141   : > { %1750 = vmatpush.bf16.msra.mxu2 %v1741_v12 }
 0x142   : > { %2201 = vmatmul.msk.bf16.gmra.mxu1 %vm791_vm2, %v1371_v7  ;;  %v618_v7 = vadd.f32 %v2526_v9, %v597_v48 }
 0x148   : > { %2194 = vmatmul.msk.bf16.vlgmr.msra.gmra.mxu0 %vm791_vm2, %v2779_v58  ;;  %v1373_v58 = vpop.permute.xlu1 %1372  ;;  %v878_v13 = vpop.f32.mrf.mxu3 }
 0x149   : > { %1880 = vmatpush.bf16.msra.mxu0 %v1871_v19 }
 0x150   : > { %2185 = vmatmul.msk.bf16.gmra.mxu2 %vm791_vm2, %v2853_v5  ;;  %2192 = vmatmul.msk.bf16.gmra.mxu3 %vm791_vm2, %v1249_v16  ;;  %v868_v5 = vpop.f32.mrf.mxu1  ;;  %v636_v16 = vmax.f32 %v618_v7, 0.0 }
 0x152   : > { %2202 = vmatmul.msk.bf16.gmra.mxu1 %vm791_vm2, %v1373_v58  ;;  %v3117_v55 = vpop.f32.mrf.mxu3  ;;  %v1849_v58 = vrot.slane %v636_v16, 1 }
 0x153   : > { %v1539_v32 = vpop.permute.xlu2 %1538 }
 0x158   : > { %2195 = vmatmul.msk.bf16.gmra.mxu0 %vm791_vm2, %v2799_v0  ;;  %v3127_v0 = vpop.f32.mrf.mxu1 }
 0x15a   : > { %v979_v52 = vpop.f32.mrf.mxu3 }
 0x160   : > { %2186 = vmatmul.msk.bf16.gmra.mxu2 %vm791_vm2, %v2825_v31  ;;  %2209 = vmatmul.msk.bf16.vlgmr.msrb.gmra.mxu3 %vm791_vm2, %v1539_v32  ;;  %v1663_v31 = vpop.permute.xlu0 %1662  ;;  %v3139_v18 = vpop.f32.mrf.mxu1 }
 0x162   : > { %2219 = vmatmul.msk.bf16.vlgmr.msrb.gmra.mxu1 %vm791_vm2, %v1663_v31 }
 0x163   : > { %v827_v17 = vpop.f32.mrf.mxu2 }
 0x164   : > { %v3134_v3 = vadd.f32 %v871_v59, %v827_v17 }
 0x165   : > { %v817_v23 = vpop.f32.mrf.mxu0 }
 0x166   : > { %v862_v45 = vadd.f32 %v861_v60, %v817_v23  ;;  %v1541_v51 = vpop.permute.xlu1 %1540 }
 0x168   : > { %2196 = vmatmul.msk.bf16.gmra.mxu0 %vm791_vm2, %v2905_v37  ;;  %v1937_v37 = vsel %vm804_vm1, %v2238_v34, 0 }
 0x169   : > { %1946 = vmatpush.bf16.msra.mxu1 %v1937_v37 }
 0x16b   : > { %v829_v35 = vpop.f32.mrf.mxu2 }
 0x16c   : > { %v3145_v39 = vadd.f32 %v873_v28, %v829_v35  ;;  %v1848_v28 = vrot.slane %v635_v30, 1 }
 0x16d   : > { %v819_v49 = vpop.f32.mrf.mxu0 }
 0x16e   : > { %v864_v59 = vadd.f32 %v863_v36, %v819_v49  ;;  %v1665_v36 = vpop.permute.xlu2 %1664  ;;  %v1667_v56 = vpop.permute.xlu1 %1666 }
 0x16f   : > { %v1155_v60 = vpop.f32.mrf.mxu1 }
 0x170   : > { %2187 = vmatmul.msk.bf16.gmra.mxu2 %vm791_vm2, %v2873_v57  ;;  %2210 = vmatmul.msk.bf16.gmra.mxu3 %vm791_vm2, %v1541_v51  ;;  %v1850_v57 = vsel %vm1021_vm0, %v1848_v28, %v1849_v58 }
 0x171   : > { %v3164_v22 = vpack.c.bf16 %v1850_v57, %v2767_v25  ;;  %v1543_v2 = vpop.permute.xlu0 %1542 }
 0x172   : > { %2220 = vmatmul.msk.bf16.gmra.mxu1 %vm791_vm2, %v1665_v36 }
 0x173   : > { %v832_v42 = vpop.f32.mrf.mxu2  ;;  %v982_v1 = vpop.f32.mrf.mxu3  ;;  %1922 = vrot.lane.b32.xlu2 %v3164_v22, %s2302_s15 }
 0x174   : > { %v3159_v62 = vadd.f32 %v876_v26, %v832_v42 }
 0x175   : > { %v822_v53 = vpop.f32.mrf.mxu0 }
 0x176   : > { %v867_v8 = vadd.f32 %v866_v29, %v822_v53 }
 0x177   : > { %v1157_v9 = vpop.f32.mrf.mxu1 }
 0x178   : > { %2197 = vmatmul.msk.bf16.gmra.mxu0 %vm791_vm2, %v2884_v54 }
 0x17b   : > { %v834_v15 = vpop.f32.mrf.mxu2  ;;  %v984_v30 = vpop.f32.mrf.mxu3 }
 0x17c   : > { %v3170_v26 = vadd.f32 %v878_v13, %v834_v15 }
 0x17d   : > { %v824_v32 = vpop.f32.mrf.mxu0 }
 0x17e   : > { %v869_v4 = vadd.f32 %v868_v5, %v824_v32 }
 0x17f   : > { %v1160_v25 = vpop.f32.mrf.mxu1 }
 0x180   : > { %2204 = vmatmul.msk.bf16.vlgmr.msrb.gmra.mxu2 %vm791_vm2, %v2959_v63  ;;  %2211 = vmatmul.msk.bf16.gmra.mxu3 %vm791_vm2, %v1543_v2 }
 0x182   : > { %2221 = vmatmul.msk.bf16.gmra.mxu1 %vm791_vm2, %v1667_v56 }
 0x183   : > { %v911_v29 = vpop.f32.mrf.mxu2  ;;  %v987_v6 = vpop.f32.mrf.mxu3 }
 0x184   : > { %v931_v54 = vadd.f32 %v911_v29, %v862_v45 }
 0x185   : > { %v1084_v12 = vpop.f32.mrf.mxu0  ;;  %v1545_v19 = vpop.permute.xlu2 %1544 }
 0x186   : > { %v997_v14 = vadd.f32 %v3117_v55, %v931_v54 }
 0x187   : > { %v1162_v5 = vpop.f32.mrf.mxu1 }
 0x188   : > { %v1104_v13 = vadd.f32 %v1084_v12, %v997_v14  ;;  %2214 = vmatmul.msk.bf16.vlgmr.msrb.gmra.mxu0 %vm791_vm2, %v2925_v38  ;;  %v1669_v51 = vpop.permute.xlu0 %1668  ;;  %v1787_v16 = vpop.permute.xlu1 %1786 }
 0x18a   : > { %v3180_v17 = vadd.f32 %v3127_v0, %v1104_v13 }
 0x18b   : > { %v913_v63 = vpop.f32.mrf.mxu2  ;;  %v989_v31 = vpop.f32.mrf.mxu3 }
 0x18c   : > { %v932_v23 = vadd.f32 %v913_v63, %v864_v59 }
 0x18d   : > { %v1086_v47 = vpop.f32.mrf.mxu0 }
 0x18e   : > { %v998_v45 = vadd.f32 %v979_v52, %v932_v23 }
 0x18f   : > { %v1165_v55 = vpop.f32.mrf.mxu1 }
 0x190   : > { %v1105_v35 = vadd.f32 %v1086_v47, %v998_v45  ;;  %2205 = vmatmul.msk.bf16.gmra.mxu2 %vm791_vm2, %v2942_v24  ;;  %2212 = vmatmul.msk.bf16.gmra.mxu3 %vm791_vm2, %v1545_v19  ;;  %v1919_v13 = vpop.permute.xlu1 %1918 }
 0x192   : > { %v3186_v34 = vadd.f32 %v3139_v18, %v1105_v35  ;;  %2222 = vmatmul.msk.bf16.gmra.mxu1 %vm791_vm2, %v1669_v51 }
 0x193   : > { %v916_v38 = vpop.f32.mrf.mxu2  ;;  %v992_v49 = vpop.f32.mrf.mxu3 }
 0x194   : > { %v933_v0 = vadd.f32 %v916_v38, %v867_v8  ;;  %v1917_v8 = vpop.permute.xlu2 %1916 }
 0x195   : > { %v1089_v37 = vpop.f32.mrf.mxu0 }
 0x196   : > { %v999_v50 = vadd.f32 %v982_v1, %v933_v0  ;;  %v1789_v54 = vpop.permute.xlu0 %1788 }
 0x197   : > { %v1167_v52 = vpop.f32.mrf.mxu1 }
 0x198   : > { %v1106_v59 = vadd.f32 %v1089_v37, %v999_v50  ;;  %2215 = vmatmul.msk.bf16.gmra.mxu0 %vm791_vm2, %v2993_v46 }
 0x19a   : > { %v3191_v24 = vadd.f32 %v1155_v60, %v1106_v59 }
 0x19b   : > { %v918_v48 = vpop.f32.mrf.mxu2  ;;  %v994_v7 = vpop.f32.mrf.mxu3 }
 0x19c   : > { %v934_v28 = vadd.f32 %v918_v48, %v869_v4  ;;  %v1791_v35 = vpop.permute.xlu2 %1790 }
 0x19d   : > { %v1091_v18 = vpop.f32.mrf.mxu0 }
 0x19e   : > { %v1000_v42 = vadd.f32 %v984_v30, %v934_v28  ;;  %v1921_v37 = vpop.permute.xlu0 %1920  ;;  %v1793_v28 = vpop.permute.xlu1 %1792 }
 0x19f   : > { %v1398_v1 = vpop.f32.mrf.mxu1 }
 0x1a0   : > { %v1107_v36 = vadd.f32 %v1091_v18, %v1000_v42  ;;  %2206 = vmatmul.msk.bf16.gmra.mxu2 %vm791_vm2, %v2975_v11  ;;  %2229 = vmatmul.msk.bf16.vlgmr.msra.gmra.mxu3 %vm791_vm2, %v1787_v16 }
 0x1a2   : > { %v3196_v58 = vadd.f32 %v1157_v9, %v1107_v36  ;;  %2239 = vmatmul.msk.bf16.vlgmr.msra.gmra.mxu1 %vm791_vm2, %v1917_v8 }
 0x1a3   : > { %v921_v53 = vpop.f32.mrf.mxu2  ;;  %v1274_v46 = vpop.f32.mrf.mxu3 }
 0x1a4   : > { %v935_v60 = vadd.f32 %v921_v53, %v3134_v3 }
 0x1a5   : > { %v1094_v57 = vpop.f32.mrf.mxu0 }
 0x1a6   : > { %v1001_v15 = vadd.f32 %v987_v6, %v935_v60 }
 0x1a7   : > { %v1400_v30 = vpop.f32.mrf.mxu1 }
 0x1a8   : > { %v1108_v32 = vadd.f32 %v1094_v57, %v1001_v15  ;;  %2216 = vmatmul.msk.bf16.gmra.mxu0 %vm791_vm2, %v2983_v20 }
 0x1aa   : > { %v3202_v11 = vadd.f32 %v1160_v25, %v1108_v32 }
 0x1ab   : > { %v923_v2 = vpop.f32.mrf.mxu2  ;;  %v1276_v4 = vpop.f32.mrf.mxu3 }
 0x1ac   : > { %v936_v9 = vadd.f32 %v923_v2, %v3145_v39 }
 0x1ad   : > { %v1096_v29 = vpop.f32.mrf.mxu0 }
 0x1ae   : > { %v1002_v56 = vadd.f32 %v989_v31, %v936_v9 }
 0x1af   : > { %v1403_v6 = vpop.f32.mrf.mxu1 }
 0x1b0   : > { %v1109_v3 = vadd.f32 %v1096_v29, %v1002_v56  ;;  %2207 = vmatmul.msk.bf16.gmra.mxu2 %vm791_vm2, %v3054_v40  ;;  %2230 = vmatmul.msk.bf16.gmra.mxu3 %vm791_vm2, %v1789_v54 }
 0x1b2   : > { %v3208_v12 = vadd.f32 %v1162_v5, %v1109_v3  ;;  %2240 = vmatmul.msk.bf16.gmra.mxu1 %vm791_vm2, %v1919_v13 }
 0x1b3   : > { %v926_v20 = vpop.f32.mrf.mxu2  ;;  %v1279_v14 = vpop.f32.mrf.mxu3 }
 0x1b4   : > { %v937_v25 = vadd.f32 %v926_v20, %v3159_v62 }
 0x1b5   : > { %v1099_v63 = vpop.f32.mrf.mxu0 }
 0x1b6   : > { %v1003_v39 = vadd.f32 %v992_v49, %v937_v25 }
 0x1b7   : > { %v1405_v31 = vpop.f32.mrf.mxu1 }
 0x1b8   : > { %v1110_v23 = vadd.f32 %v1099_v63, %v1003_v39  ;;  %2217 = vmatmul.msk.bf16.gmra.mxu0 %vm791_vm2, %v3008_v33 }
 0x1ba   : > { %v3214_v40 = vadd.f32 %v1165_v55, %v1110_v23 }
 0x1bb   : > { %v928_v47 = vpop.f32.mrf.mxu2  ;;  %v1281_v19 = vpop.f32.mrf.mxu3 }
 0x1bc   : > { %v938_v5 = vadd.f32 %v928_v47, %v3170_v26 }
 0x1bd   : > { %v1101_v45 = vpop.f32.mrf.mxu0 }
 0x1be   : > { %v1004_v38 = vadd.f32 %v994_v7, %v938_v5 }
 0x1bf   : > { %v1408_v49 = vpop.f32.mrf.mxu1 }
 0x1c0   : > { %v1111_v62 = vadd.f32 %v1101_v45, %v1004_v38  ;;  %2224 = vmatmul.msk.bf16.vlgmr.msra.gmra.mxu2 %vm791_vm2, %v3023_v41  ;;  %2231 = vmatmul.msk.bf16.gmra.mxu3 %vm791_vm2, %v1791_v35 }
 0x1c2   : > { %v3220_v0 = vadd.f32 %v1167_v52, %v1111_v62  ;;  %2241 = vmatmul.msk.bf16.gmra.mxu1 %vm791_vm2, %v1921_v37 }
 0x1c3   : > { %v1208_v33 = vpop.f32.mrf.mxu2  ;;  %v1284_v51 = vpop.f32.mrf.mxu3 }
 0x1c4   : > { %v1228_v55 = vadd.f32 %v1208_v33, %v3180_v17 }
 0x1c5   : > { %v1332_v50 = vpop.f32.mrf.mxu0 }
 0x1c6   : > { %v1294_v26 = vadd.f32 %v1274_v46, %v1228_v55 }
 0x1c7   : > { %v1410_v16 = vpop.f32.mrf.mxu1 }
 0x1c8   : > { %v1352_v59 = vadd.f32 %v1332_v50, %v1294_v26  ;;  %2234 = vmatmul.msk.bf16.vlgmr.msra.gmra.mxu0 %vm791_vm2, %v3084_v10 }
 0x1ca   : > { %v3226_v48 = vadd.f32 %v1398_v1, %v1352_v59 }
 0x1cb   : > { %v1210_v41 = vpop.f32.mrf.mxu2  ;;  %v1286_v7 = vpop.f32.mrf.mxu3 }
 0x1cc   : > { %v1229_v52 = vadd.f32 %v1210_v41, %v3186_v34 }
 0x1cd   : > { %v1334_v18 = vpop.f32.mrf.mxu0  ;;  %v1923_v46 = vpop.permute.xlu2 %1922 }
 0x1ce   : > { %v1295_v42 = vadd.f32 %v1276_v4, %v1229_v52 }
 0x1cf   : > { %v1413_v8 = vpop.f32.mrf.mxu1 }
 0x1d0   : > { %v1353_v17 = vadd.f32 %v1334_v18, %v1295_v42  ;;  %2225 = vmatmul.msk.bf16.gmra.mxu2 %vm791_vm2, %v3065_v61  ;;  %2232 = vmatmul.msk.bf16.gmra.mxu3 %vm791_vm2, %v1793_v28 }
 0x1d2   : > { %v3232_v36 = vadd.f32 %v1400_v30, %v1353_v17  ;;  %2242 = vmatmul.msk.bf16.gmra.mxu1 %vm791_vm2, %v1923_v46 }
 0x1d3   : > { %v1213_v53 = vpop.f32.mrf.mxu2  ;;  %v1289_v10 = vpop.f32.mrf.mxu3 }
 0x1d4   : > { %v1230_v1 = vadd.f32 %v1213_v53, %v3191_v24 }
 0x1d5   : > { %v1337_v60 = vpop.f32.mrf.mxu0 }
 0x1d6   : > { %v1296_v34 = vadd.f32 %v1279_v14, %v1230_v1 }
 0x1d7   : > { %v1415_v24 = vpop.f32.mrf.mxu1 }
 0x1d8   : > { %v1354_v57 = vadd.f32 %v1337_v60, %v1296_v34  ;;  %2235 = vmatmul.msk.bf16.gmra.mxu0 %vm791_vm2, %v3074_v43 }
 0x1da   : > { %v3238_v15 = vadd.f32 %v1403_v6, %v1354_v57 }
 0x1db   : > { %v1215_v61 = vpop.f32.mrf.mxu2  ;;  %v1291_v2 = vpop.f32.mrf.mxu3 }
 0x1dc   : > { %v1231_v32 = vadd.f32 %v1215_v61, %v3196_v58 }
 0x1dd   : > { %v1339_v30 = vpop.f32.mrf.mxu0 }
 0x1de   : > { %v1297_v4 = vadd.f32 %v1281_v19, %v1231_v32 }
 0x1df   : > { %v1694_v25 = vpop.f32.mrf.mxu1 }
 0x1e0   : > { %v1355_v9 = vadd.f32 %v1339_v30, %v1297_v4  ;;  %2226 = vmatmul.msk.bf16.gmra.mxu2 %vm791_vm2, %v3115_v27 }
 0x1e2   : > { %v3243_v29 = vadd.f32 %v1405_v31, %v1355_v9 }
 0x1e3   : > { %v1218_v54 = vpop.f32.mrf.mxu2  ;;  %v1570_v6 = vpop.f32.mrf.mxu3 }
 0x1e4   : > { %v1232_v56 = vadd.f32 %v1218_v54, %v3202_v11 }
 0x1e5   : > { %v1342_v3 = vpop.f32.mrf.mxu0 }
 0x1e6   : > { %v1298_v43 = vadd.f32 %v1284_v51, %v1232_v56 }
 0x1e8   : > { %v1356_v20 = vadd.f32 %v1342_v3, %v1298_v43  ;;  %2236 = vmatmul.msk.bf16.gmra.mxu0 %vm791_vm2, %v3093_v44  ;;  %v1696_v44 = vpop.f32.mrf.mxu1 }
 0x1ea   : > { %v3248_v58 = vadd.f32 %v1408_v49, %v1356_v20 }
 0x1eb   : > { %v1220_v14 = vpop.f32.mrf.mxu2  ;;  %v1572_v11 = vpop.f32.mrf.mxu3 }
 0x1ec   : > { %v1233_v13 = vadd.f32 %v1220_v14, %v3208_v12 }
 0x1ed   : > { %v1344_v27 = vpop.f32.mrf.mxu0 }
 0x1ee   : > { %v1299_v63 = vadd.f32 %v1286_v7, %v1233_v13 }
 0x1f0   : > { %v1357_v39 = vadd.f32 %v1344_v27, %v1299_v63  ;;  %2227 = vmatmul.msk.bf16.gmra.mxu2 %vm791_vm2, %v3105_v21  ;;  %v3261_v33 = vpop.f32.mrf.mxu1 }
 0x1f2   : > { %v3253_v23 = vadd.f32 %v1410_v16, %v1357_v39 }
 0x1f3   : > { %v1223_v31 = vpop.f32.mrf.mxu2  ;;  %v1575_v38 = vpop.f32.mrf.mxu3 }
 0x1f4   : > { %v1234_v47 = vadd.f32 %v1223_v31, %v3214_v40 }
 0x1f5   : > { %v1347_v19 = vpop.f32.mrf.mxu0 }
 0x1f6   : > { %v1300_v5 = vadd.f32 %v1289_v10, %v1234_v47 }
 0x1f8   : > { %v1358_v45 = vadd.f32 %v1347_v19, %v1300_v5  ;;  %2237 = vmatmul.msk.bf16.gmra.mxu0 %vm791_vm2, %v3164_v22  ;;  %v3265_v26 = vpop.f32.mrf.mxu1 }
 0x1fa   : > { %v3258_v12 = vadd.f32 %v1413_v8, %v1358_v45 }
 0x1fb   : > { %v1225_v35 = vpop.f32.mrf.mxu2  ;;  %v1577_v50 = vpop.f32.mrf.mxu3 }
 0x1fc   : > { %v1235_v62 = vadd.f32 %v1225_v35, %v3220_v0 }
 0x1fd   : > { %v1349_v21 = vpop.f32.mrf.mxu0 }
 0x1fe   : > { %v1301_v49 = vadd.f32 %v1291_v2, %v1235_v62 }
 0x200   : > { %v1359_v51 = vadd.f32 %v1349_v21, %v1301_v49  ;;  %v3269_v52 = vpop.f32.mrf.mxu1 }
 0x202   : > { %v3263_v55 = vadd.f32 %v1415_v24, %v1359_v51 }
 0x203   : > { %v1504_v40 = vpop.f32.mrf.mxu2  ;;  %v3267_v41 = vpop.f32.mrf.mxu3 }
 0x204   : > { %v1524_v32 = vadd.f32 %v1504_v40, %v3226_v48 }
 0x205   : > { %v1628_v37 = vpop.f32.mrf.mxu0 }
 0x206   : > { %v1590_v2 = vadd.f32 %v1570_v6, %v1524_v32 }
 0x208   : > { %v3273_v42 = vpop.f32.mrf.mxu1  ;;  %v1648_v54 = vadd.f32 %v1628_v37, %v1590_v2 }
 0x20a   : > { %v1714_v20 = vadd.f32 %v1694_v25, %v1648_v54 }
 0x20b   : > { %v1506_v59 = vpop.f32.mrf.mxu2  ;;  %v3271_v28 = vpop.f32.mrf.mxu3 }
 0x20c   : > { %v1525_v56 = vadd.f32 %v1506_v59, %v3232_v36 }
 0x20d   : > { %v1630_v22 = vpop.f32.mrf.mxu0 }
 0x20e   : > { %v1591_v43 = vadd.f32 %v1572_v11, %v1525_v56 }
 0x210   : > { %v3279_v1 = vpop.f32.mrf.mxu1  ;;  %v1649_v27 = vadd.f32 %v1630_v22, %v1591_v43 }
 0x212   : > { %v1715_v11 = vadd.f32 %v1696_v44, %v1649_v27 }
 0x213   : > { %v1509_v7 = vpop.f32.mrf.mxu2  ;;  %v3275_v53 = vpop.f32.mrf.mxu3 }
 0x214   : > { %v1526_v63 = vadd.f32 %v1509_v7, %v3238_v15 }
 0x215   : > { %v1633_v0 = vpop.f32.mrf.mxu0 }
 0x216   : > { %v1592_v36 = vadd.f32 %v1575_v38, %v1526_v63 }
 0x218   : > { %v3287_v8 = vpop.f32.mrf.mxu1  ;;  %v1650_v35 = vadd.f32 %v1633_v0, %v1592_v36 }
 0x21a   : > { %v1716_v37 = vadd.f32 %v3261_v33, %v1650_v35 }
 0x21b   : > { %v1511_v18 = vpop.f32.mrf.mxu2  ;;  %v3285_v34 = vpop.f32.mrf.mxu3 }
 0x21c   : > { %v1527_v15 = vadd.f32 %v1511_v18, %v3243_v29 }
 0x21d   : > { %v1635_v16 = vpop.f32.mrf.mxu0 }
 0x21e   : > { %v1593_v51 = vadd.f32 %v1577_v50, %v1527_v15 }
 0x220   : > { %v1948_v9 = vpop.f32.mrf.mxu1  ;;  %v1651_v2 = vadd.f32 %v1635_v16, %v1593_v51 }
 0x222   : > { %v1717_v33 = vadd.f32 %v3265_v26, %v1651_v2 }
 0x223   : > { %v1514_v17 = vpop.f32.mrf.mxu2  ;;  %v1818_v30 = vpop.f32.mrf.mxu3 }
 0x224   : > { %v1528_v0 = vadd.f32 %v1514_v17, %v3248_v58 }
 0x225   : > { %v3277_v10 = vpop.f32.mrf.mxu0 }
 0x226   : > { %v1594_v50 = vadd.f32 %v3267_v41, %v1528_v0 }
 0x228   : > { %v1950_v13 = vpop.f32.mrf.mxu1  ;;  %v1652_v16 = vadd.f32 %v3277_v10, %v1594_v50 }
 0x22a   : > { %v1718_v26 = vadd.f32 %v3269_v52, %v1652_v16 }
 0x22b   : > { %v3281_v46 = vpop.f32.mrf.mxu2  ;;  %v1820_v3 = vpop.f32.mrf.mxu3 }
 0x22c   : > { %v1529_v58 = vadd.f32 %v3281_v46, %v3253_v23 }
 0x22d   : > { %v3283_v60 = vpop.f32.mrf.mxu0 }
 0x22e   : > { %v1595_v41 = vadd.f32 %v3271_v28, %v1529_v58 }
 0x230   : > { %v1953_v21 = vpop.f32.mrf.mxu1 }
 0x233   : > { %v3289_v57 = vpop.f32.mrf.mxu2  ;;  %v1823_v19 = vpop.f32.mrf.mxu3 }
 0x234   : > { %v1530_v23 = vadd.f32 %v3289_v57, %v3258_v12 }
 0x235   : > { %v3291_v61 = vpop.f32.mrf.mxu0 }
 0x238   : > { %v1955_v54 = vpop.f32.mrf.mxu1 }
 0x23b   : > { %v3294_v4 = vpop.f32.mrf.mxu2  ;;  %v1825_v32 = vpop.f32.mrf.mxu3 }
 0x23c   : > { %v1531_v12 = vadd.f32 %v3294_v4, %v3263_v55 }
 0x23d   : > { %v3296_v24 = vpop.f32.mrf.mxu0 }
 0x243   : > { %v1752_v48 = vpop.f32.mrf.mxu2 }
 0x244   : > { %v1772_v14 = vadd.f32 %v1752_v48, %v1714_v20 }
 0x245   : > { %v1882_v6 = vpop.f32.mrf.mxu0 }
 0x246   : > { %v1838_v39 = vadd.f32 %v1818_v30, %v1772_v14 }
 0x248   : > { %v1902_v31 = vadd.f32 %v1882_v6, %v1838_v39  ;;  %v1958_v39 = vpop.f32.mrf.mxu1 }
 0x24a   : > { %v1968_v25 = vadd.f32 %v1948_v9, %v1902_v31 }
 0x24b   : > { %v1754_v47 = vpop.f32.mrf.mxu2 }
 0x24c   : > { %1976 = vst [vmem:[%s3310_s17] sm:$0xff] %v1968_v25  ;;  %v1773_v5 = vadd.f32 %v1754_v47, %v1715_v11  ;;  %v1998_v38 = vmul.f32 %v1968_v25, %v1968_v25  ;;  %v1653_v47 = vadd.f32 %v3283_v60, %v1595_v41 }
 0x24d   : > { %v1884_v45 = vpop.f32.mrf.mxu0 }
 0x24e   : > { %v1839_v62 = vadd.f32 %v1820_v3, %v1773_v5  ;;  %v1719_v35 = vadd.f32 %v3273_v42, %v1653_v47 }
 0x250   : > { %v1903_v49 = vadd.f32 %v1884_v45, %v1839_v62  ;;  %v1596_v45 = vadd.f32 %v3275_v53, %v1530_v23  ;;  %v1960_v51 = vpop.f32.mrf.mxu1  ;;  %v1597_v53 = vadd.f32 %v3285_v34, %v1531_v12 }
 0x252   : > { %v1969_v40 = vadd.f32 %v1950_v13, %v1903_v49  ;;  %v1828_v13 = vpop.f32.mrf.mxu3 }
 0x253   : > { %v1757_v59 = vpop.f32.mrf.mxu2 }
 0x254   : > { %1977 = vst [vmem:[%s3310_s17 + $0x8] sm:$0xff] %v1969_v40  ;;  %v1984_v44 = vadd.f32 %v1969_v40, %v1968_v25  ;;  %v1999_v22 = vmul.f32 %v1969_v40, %v1969_v40  ;;  %v1774_v7 = vadd.f32 %v1757_v59, %v1716_v37  ;;  %v1654_v40 = vadd.f32 %v3291_v61, %v1596_v45 }
 0x255   : > { %v1887_v30 = vpop.f32.mrf.mxu0  ;;  %v1655_v61 = vadd.f32 %v3296_v24, %v1597_v53 }
 0x256   : > { %v2006_v29 = vadd.f32 %v1999_v22, %v1998_v38  ;;  %v1840_v18 = vadd.f32 %v1823_v19, %v1774_v7  ;;  %v1720_v42 = vadd.f32 %v3279_v1, %v1654_v40 }
 0x257   : > { %v1721_v34 = vadd.f32 %v3287_v8, %v1655_v61 }
 0x258   : > { %v1904_v9 = vadd.f32 %v1887_v30, %v1840_v18  ;;  %v1963_v4 = vpop.f32.mrf.mxu1 }
 0x25a   : > { %v1970_v56 = vadd.f32 %v1953_v21, %v1904_v9  ;;  %v1830_v28 = vpop.f32.mrf.mxu3 }
 0x25b   : > { %v1759_v3 = vpop.f32.mrf.mxu2 }
 0x25c   : > { %1978 = vst [vmem:[%s3310_s17 + $0x10] sm:$0xff] %v1970_v56  ;;  %v1985_v43 = vadd.f32 %v1984_v44, %v1970_v56  ;;  %v2000_v20 = vmul.f32 %v1970_v56, %v1970_v56  ;;  %v1775_v48 = vadd.f32 %v1759_v3, %v1717_v33 }
 0x25d   : > { %v1889_v14 = vpop.f32.mrf.mxu0 }
 0x25e   : > { %v2007_v17 = vadd.f32 %v2006_v29, %v2000_v20  ;;  %v1841_v6 = vadd.f32 %v1825_v32, %v1775_v48 }
 0x260   : > { %v1905_v27 = vadd.f32 %v1889_v14, %v1841_v6  ;;  %v1965_v24 = vpop.f32.mrf.mxu1 }
 0x262   : > { %v1971_v63 = vadd.f32 %v1955_v54, %v1905_v27  ;;  %v1833_v44 = vpop.f32.mrf.mxu3 }
 0x263   : > { %v1762_v31 = vpop.f32.mrf.mxu2 }
 0x264   : > { %1979 = vst [vmem:[%s3310_s17 + $0x18] sm:$0xff] %v1971_v63  ;;  %v1986_v36 = vadd.f32 %v1985_v43, %v1971_v63  ;;  %v2001_v25 = vmul.f32 %v1971_v63, %v1971_v63  ;;  %v1776_v11 = vadd.f32 %v1762_v31, %v1718_v26 }
 0x265   : > { %v1892_v10 = vpop.f32.mrf.mxu0 }
 0x266   : > { %v2008_v46 = vadd.f32 %v2007_v17, %v2001_v25  ;;  %v1842_v19 = vadd.f32 %v1828_v13, %v1776_v11 }
 0x268   : > { %v1906_v5 = vadd.f32 %v1892_v10, %v1842_v19 }
 0x26a   : > { %v1972_v52 = vadd.f32 %v1958_v39, %v1906_v5  ;;  %v1835_v56 = vpop.f32.mrf.mxu3 }
 0x26b   : > { %v1764_v15 = vpop.f32.mrf.mxu2 }
 0x26c   : > { %1980 = vst [vmem:[%s3310_s17 + $0x20] sm:$0xff] %v1972_v52  ;;  %v1987_v62 = vadd.f32 %v1986_v36, %v1972_v52  ;;  %v2002_v21 = vmul.f32 %v1972_v52, %v1972_v52  ;;  %v1777_v49 = vadd.f32 %v1764_v15, %v1719_v35 }
 0x26d   : > { %v1894_v60 = vpop.f32.mrf.mxu0 }
 0x26e   : > { %v2009_v57 = vadd.f32 %v2008_v46, %v2002_v21  ;;  %v1843_v37 = vadd.f32 %v1830_v28, %v1777_v49 }
 0x270   : > { %v1907_v59 = vadd.f32 %v1894_v60, %v1843_v37 }
 0x272   : > { %v1973_v38 = vadd.f32 %v1960_v51, %v1907_v59 }
 0x273   : > { %v1767_v22 = vpop.f32.mrf.mxu2 }
 0x274   : > { %1981 = vst [vmem:[%s3310_s17 + $0x28] sm:$0xff] %v1973_v38  ;;  %v1988_v7 = vadd.f32 %v1987_v62, %v1973_v38  ;;  %v2003_v32 = vmul.f32 %v1973_v38, %v1973_v38  ;;  %v1778_v30 = vadd.f32 %v1767_v22, %v1720_v42 }
 0x275   : > { %v1897_v2 = vpop.f32.mrf.mxu0 }
 0x276   : > { %v2010_v0 = vadd.f32 %v2009_v57, %v2003_v32  ;;  %v1844_v55 = vadd.f32 %v1833_v44, %v1778_v30 }
 0x278   : > { %v1908_v29 = vadd.f32 %v1897_v2, %v1844_v55 }
 0x27a   : > { %v1974_v18 = vadd.f32 %v1963_v4, %v1908_v29 }
 0x27b   : > { %v1769_v9 = vpop.f32.mrf.mxu2 }
 0x27c   : > { %1982 = vst [vmem:[%s3310_s17 + $0x30] sm:$0xff] %v1974_v18  ;;  %v1989_v1 = vadd.f32 %v1988_v7, %v1974_v18  ;;  %v2004_v54 = vmul.f32 %v1974_v18, %v1974_v18  ;;  %v1779_v50 = vadd.f32 %v1769_v9, %v1721_v34 }
 0x27d   : > { %v1899_v43 = vpop.f32.mrf.mxu0 }
 0x27e   : > { %v2011_v33 = vadd.f32 %v2010_v0, %v2004_v54  ;;  %v1845_v3 = vadd.f32 %v1835_v56, %v1779_v50 }
 0x280   : > { %v1909_v20 = vadd.f32 %v1899_v43, %v1845_v3 }
 0x282   : > { %v1975_v48 = vadd.f32 %v1965_v24, %v1909_v20 }
 0x284   : > { %1983 = vst [vmem:[%s3310_s17 + $0x38] sm:$0xff] %v1975_v48  ;;  %v1990_v14 = vadd.f32 %v1989_v1, %v1975_v48  ;;  %v2005_v16 = vmul.f32 %v1975_v48, %v1975_v48 }
 0x286   : > { %v1991_v58 = vrot.slane %v1990_v14, 4  ;;  %v2012_v17 = vadd.f32 %v2011_v33, %v2005_v16 }
 0x288   : > { %v1992_v6 = vadd.f32 %v1991_v58, %v1990_v14  ;;  %v2013_v8 = vrot.slane %v2012_v17, 4 }
 0x28a   : > { %v1993_v13 = vrot.slane %v1992_v6, 2  ;;  %v2014_v27 = vadd.f32 %v2013_v8, %v2012_v17 }
 0x28c   : > { %v1994_v41 = vadd.f32 %v1993_v13, %v1992_v6  ;;  %v2015_v63 = vrot.slane %v2014_v27, 2 }
 0x28e   : > { %v1995_v26 = vrot.slane %v1994_v41, 1  ;;  %v2016_v39 = vadd.f32 %v2015_v63, %v2014_v27 }
 0x290   : > { %v1996_v31 = vadd.f32 %v1995_v26, %v1994_v41  ;;  %v2017_v36 = vrot.slane %v2016_v39, 1 }
 0x292   : > { %1997 = vst [vmem:[%s555_s24] sm:$0x1] %v1996_v31  ;;  %v2018_v25 = vadd.f32 %v2017_v36, %v2016_v39 }
 0x294   : > { %2019 = vst [vmem:[%s555_s24 + $0x1] sm:$0x1] %v2018_v25 }
 0x295 PF: > { %p13_p9 = scmp.ge.s32.totalorder %s2350_s22, 4   ;;  %s3384_s18 = smov %s2296_s19 }
 0x296   : > { %s3385_s19 = smov %s2359_s25  ;;  %s3386_s20 = smov %s2350_s22 }
 0x297   :  { %15 = sbr.rel (!%p13_p9) target bundleno = 2 (0x2), region = 141 }

// kernel: regstage_forward.15
= control target key start
LH: loop header
LB: loop body
LE: loop exit
PB: predicated region body
PF: predicated region fallthrough
CT: control target
= control target key end

     0   :  { %s818_s21 = smov 0   ;;  %s820_s22 = smov 0   ;;  %s911_s0 = inlined_call_operand.vmem [shape: f32[2,64,128], index: 0, kind: input, shape index: {}]   ;;  %s912_s1 = inlined_call_operand.vmem [shape: bf16[128,128], index: 1, kind: input, shape index: {}]   ;;  %s913_s2 = inlined_call_operand.vmem [shape: f32[1,128], index: 2, kind: input, shape index: {}]   ;;  %s914_s3 = inlined_call_operand.vmem [shape: f32[1,128], index: 3, kind: input, shape index: {}]   ;;  %s915_s4 = inlined_call_operand.vmem [shape: f32[2,1,128], index: 4, kind: input, shape index: {}]   ;;  %s916_s5 = inlined_call_operand.vmem [shape: f32[2,64,128], index: 5, kind: output, shape index: {0}]   ;;  %s917_s6 = inlined_call_operand.vmem [shape: f32[2,1,2,128], index: 6, kind: output, shape index: {1}]  }
   0x1   :  { %s822_s23 = smov 0  }
   0x2 LB: > { %s29_s24 = sadd.s32 1, %s777_s22  ;;  %p658_p0 = scmp.ge.s32.totalorder %s781_s23, 1  ;;  %s781_s23 = sphi %s822_s23, %s17_s23   ;;  %s777_s22 = sphi %s820_s22, %s919_s22   ;;  %s773_s21 = sphi %s818_s21, %s918_s21  }
   0x3   : > { %p31_p1 = scmp.ge.s32.totalorder %s29_s24, 2  ;;  %p246_p2 = scmp.lt.s32.totalorder %s781_s23, 3 }
   0x5   : > { %s921_s24 = smov (%p31_p1, %s29_s24), 0  ;;  %p247_p3 = pnand %p658_p0, %p246_p2 }
   0x6   : > { %p295_p4 = scmp.lt.s32.totalorder (!%p247_p3), %s773_s21, 1 }
   0x7   : > { %250 = sbr.rel (%p247_p3) target bundleno = 207 (0xcf), region = 40 }
   0xc   : > { %v707_v0 = vld [vmem:[%s912_s1 + $0x38] sm:$0xff]  ;;  %v706_v1 = vld [vmem:[%s912_s1 + $0x30] sm:$0xff]  ;;  %s923_s21 = smov (!%p295_p4, %s773_s21), 1  ;;  %v705_v2 = vld [vmem:[%s912_s1 + $0x28] sm:$0xff] }
   0xd   : > { %444 = vmatpush.bf16.msra.mxu0 %v707_v0  ;;  %708 = vmatpush.bf16.msra.mxu1 %v707_v0  ;;  %s698_s29 = sshll.u32 %s923_s21, 6  ;;  %s306_s8 = scalar_lea.vmem %s915_s4, %s923_s21  ;;  %v756_v3 = vld [vmem:[%s913_s2] ss:$0 sm:$0xff]  ;;  %v703_v19 = vld [vmem:[%s912_s1 + $0x18] sm:$0xff]  ;;  %v702_v28 = vld [vmem:[%s912_s1 + $0x10] sm:$0xff] }
   0xe   : > { %709 = vmatpush.bf16.msra.mxu2 %v707_v0  ;;  %710 = vmatpush.bf16.msra.mxu3 %v707_v0  ;;  %s302_s13 = scalar_lea.vmem %s911_s0, %s698_s29  ;;  %v704_v4 = vld [vmem:[%s912_s1 + $0x20] sm:$0xff]  ;;  %v701_v38 = vld [vmem:[%s912_s1 + $0x8] sm:$0xff] }
   0xf   : > { %v324_v5 = vld [vmem:[%s302_s13] sm:$0xff]  ;;  %v325_v6 = vld [vmem:[%s302_s13 + $0x8] sm:$0xff]  ;;  %v326_v7 = vld [vmem:[%s302_s13 + $0x10] sm:$0xff] }
  0x10   : > { %v327_v8 = vld [vmem:[%s302_s13 + $0x18] sm:$0xff]  ;;  %v328_v9 = vld [vmem:[%s302_s13 + $0x20] sm:$0xff]  ;;  %v329_v10 = vld [vmem:[%s302_s13 + $0x28] sm:$0xff]  ;;  %v336_v13 = vmul.f32 %v756_v3, %v324_v5  ;;  %v337_v15 = vmul.f32 %v756_v3, %v325_v6  ;;  %v338_v16 = vmul.f32 %v756_v3, %v326_v7 }
  0x11   : > { %445 = vmatpush.bf16.msra.mxu0 %v706_v1  ;;  %711 = vmatpush.bf16.msra.mxu1 %v706_v1  ;;  %v330_v11 = vld [vmem:[%s302_s13 + $0x30] sm:$0xff]  ;;  %v331_v12 = vld [vmem:[%s302_s13 + $0x38] sm:$0xff]  ;;  %v757_v14 = vld [vmem:[%s914_s3] ss:$0 sm:$0xff]  ;;  %v339_v17 = vmul.f32 %v756_v3, %v327_v8  ;;  %v340_v18 = vmul.f32 %v756_v3, %v328_v9  ;;  %v341_v20 = vmul.f32 %v756_v3, %v329_v10  ;;  %s888_s13 = scalar_lea.vmem %s916_s5, %s698_s29  ;;  %s663_s29 = sshll.u32 %s923_s21, 1 }
  0x12   : > { %712 = vmatpush.bf16.msra.mxu2 %v706_v1  ;;  %713 = vmatpush.bf16.msra.mxu3 %v706_v1  ;;  %v342_v21 = vmul.f32 %v756_v3, %v330_v11  ;;  %v343_v22 = vmul.f32 %v756_v3, %v331_v12  ;;  %v348_v23 = vadd.f32 %v757_v14, %v336_v13  ;;  %v758_v33 = vld [vmem:[%s306_s8] ss:$0 sm:$0xff]  ;;  %s323_s16 = scalar_lea.vmem %s917_s6, %s663_s29 }
  0x13   : > { %v349_v24 = vadd.f32 %v757_v14, %v337_v15  ;;  %v350_v25 = vadd.f32 %v757_v14, %v338_v16  ;;  %v351_v26 = vadd.f32 %v757_v14, %v339_v17  ;;  %v352_v27 = vadd.f32 %v757_v14, %v340_v18  ;;  %v700_v47 = vld [vmem:[%s912_s1] sm:$0xff] }
  0x14   : > { %v353_v29 = vadd.f32 %v757_v14, %v341_v20  ;;  %v354_v30 = vadd.f32 %v757_v14, %v342_v21  ;;  %v355_v31 = vadd.f32 %v757_v14, %v343_v22  ;;  %v356_v32 = vmax.f32 %v348_v23, 0.0 }
  0x15   : > { %446 = vmatpush.bf16.msra.mxu0 %v705_v2  ;;  %714 = vmatpush.bf16.msra.mxu1 %v705_v2  ;;  %v357_v34 = vmax.f32 %v349_v24, 0.0  ;;  %v358_v35 = vmax.f32 %v350_v25, 0.0  ;;  %v359_v36 = vmax.f32 %v351_v26, 0.0  ;;  %v360_v37 = vmax.f32 %v352_v27, 0.0 }
  0x16   : > { %715 = vmatpush.bf16.msra.mxu2 %v705_v2  ;;  %716 = vmatpush.bf16.msra.mxu3 %v705_v2  ;;  %v361_v39 = vmax.f32 %v353_v29, 0.0  ;;  %v362_v40 = vmax.f32 %v354_v30, 0.0  ;;  %v363_v41 = vmax.f32 %v355_v31, 0.0  ;;  %v368_v42 = vmul.f32 %v758_v33, %v356_v32 }
  0x17   : > { %v369_v43 = vmul.f32 %v758_v33, %v357_v34  ;;  %v370_v44 = vmul.f32 %v758_v33, %v358_v35  ;;  %v371_v45 = vmul.f32 %v758_v33, %v359_v36  ;;  %v372_v46 = vmul.f32 %v758_v33, %v360_v37 }
  0x18   : > { %v373_v48 = vmul.f32 %v758_v33, %v361_v39  ;;  %v374_v49 = vmul.f32 %v758_v33, %v362_v40  ;;  %v375_v50 = vmul.f32 %v758_v33, %v363_v41 }
  0x19   : > { %447 = vmatpush.bf16.msra.mxu0 %v704_v4  ;;  %717 = vmatpush.bf16.msra.mxu1 %v704_v4  ;;  %v376_v51 = vpack.c.bf16 %v369_v43, %v368_v42  ;;  %v377_v52 = vpack.c.bf16 %v371_v45, %v370_v44 }
  0x1a   : > { %718 = vmatpush.bf16.msra.mxu2 %v704_v4  ;;  %719 = vmatpush.bf16.msra.mxu3 %v704_v4  ;;  %v378_v53 = vpack.c.bf16 %v373_v48, %v372_v46  ;;  %v379_v54 = vpack.c.bf16 %v375_v50, %v374_v49 }
  0x1d   : > { %448 = vmatpush.bf16.msra.mxu0 %v703_v19  ;;  %720 = vmatpush.bf16.msra.mxu1 %v703_v19 }
  0x1e   : > { %721 = vmatpush.bf16.msra.mxu2 %v703_v19  ;;  %722 = vmatpush.bf16.msra.mxu3 %v703_v19 }
  0x21   : > { %449 = vmatpush.bf16.msra.mxu0 %v702_v28  ;;  %723 = vmatpush.bf16.msra.mxu1 %v702_v28 }
  0x22   : > { %724 = vmatpush.bf16.msra.mxu2 %v702_v28  ;;  %725 = vmatpush.bf16.msra.mxu3 %v702_v28 }
  0x25   : > { %450 = vmatpush.bf16.msra.mxu0 %v701_v38  ;;  %726 = vmatpush.bf16.msra.mxu1 %v701_v38 }
  0x26   : > { %727 = vmatpush.bf16.msra.mxu2 %v701_v38  ;;  %728 = vmatpush.bf16.msra.mxu3 %v701_v38 }
  0x29   : > { %451 = vmatpush.bf16.msra.mxu0 %v700_v47  ;;  %729 = vmatpush.bf16.msra.mxu1 %v700_v47 }
  0x2a   : > { %730 = vmatpush.bf16.msra.mxu2 %v700_v47  ;;  %731 = vmatpush.bf16.msra.mxu3 %v700_v47 }
  0x2c   : > { %452 = vmatmul.bf16.vlgmr.msra.gmra.mxu0 %v376_v51  ;;  %457 = vmatmul.bf16.vlgmr.msra.gmra.mxu1 %v377_v52 }
  0x2d   : > { %462 = vmatmul.bf16.vlgmr.msra.gmra.mxu2 %v378_v53  ;;  %467 = vmatmul.bf16.vlgmr.msra.gmra.mxu3 %v379_v54 }
  0xa9   : > { %v453_v55 = vpop.f32.mrf.mxu0  ;;  %v458_v56 = vpop.f32.mrf.mxu1 }
  0xaa   : > { %473 = vst [vmem:[%s888_s13] sm:$0xff] %v453_v55  ;;  %v495_v61 = vmul.f32 %v453_v55, %v453_v55  ;;  %v497_v0 = vmul.f32 %v458_v56, %v458_v56 }
  0xab   : > { %475 = vst [vmem:[%s888_s13 + $0x10] sm:$0xff] %v458_v56 }
  0xb0   : > { %v463_v57 = vpop.f32.mrf.mxu2  ;;  %v468_v58 = vpop.f32.mrf.mxu3 }
  0xb1   : > { %477 = vst [vmem:[%s888_s13 + $0x20] sm:$0xff] %v463_v57  ;;  %v455_v59 = vpop.f32.mrf.mxu0  ;;  %v460_v60 = vpop.f32.mrf.mxu1  ;;  %v499_v6 = vmul.f32 %v463_v57, %v463_v57  ;;  %v501_v14 = vmul.f32 %v468_v58, %v468_v58 }
  0xb2   : > { %479 = vst [vmem:[%s888_s13 + $0x30] sm:$0xff] %v468_v58  ;;  %v481_v62 = vadd.f32 %v455_v59, %v453_v55  ;;  %v496_v63 = vmul.f32 %v455_v59, %v455_v59  ;;  %v498_v4 = vmul.f32 %v460_v60, %v460_v60 }
  0xb3   : > { %474 = vst [vmem:[%s888_s13 + $0x8] sm:$0xff] %v455_v59 }
  0xb4   : > { %v503_v1 = vadd.f32 %v496_v63, %v495_v61  ;;  %476 = vst [vmem:[%s888_s13 + $0x18] sm:$0xff] %v460_v60  ;;  %v482_v2 = vadd.f32 %v481_v62, %v458_v56 }
  0xb6   : > { %v483_v3 = vadd.f32 %v482_v2, %v460_v60  ;;  %v504_v5 = vadd.f32 %v503_v1, %v497_v0 }
  0xb8   : > { %v505_v7 = vadd.f32 %v504_v5, %v498_v4  ;;  %v465_v8 = vpop.f32.mrf.mxu2  ;;  %v484_v9 = vadd.f32 %v483_v3, %v463_v57  ;;  %v470_v10 = vpop.f32.mrf.mxu3 }
  0xb9   : > { %478 = vst [vmem:[%s888_s13 + $0x28] sm:$0xff] %v465_v8  ;;  %v500_v12 = vmul.f32 %v465_v8, %v465_v8  ;;  %v502_v18 = vmul.f32 %v470_v10, %v470_v10 }
  0xba   : > { %v485_v11 = vadd.f32 %v484_v9, %v465_v8  ;;  %v506_v13 = vadd.f32 %v505_v7, %v499_v6  ;;  %480 = vst [vmem:[%s888_s13 + $0x38] sm:$0xff] %v470_v10 }
  0xbc   : > { %v507_v15 = vadd.f32 %v506_v13, %v500_v12  ;;  %v486_v16 = vadd.f32 %v485_v11, %v468_v58 }
  0xbe   : > { %v487_v17 = vadd.f32 %v486_v16, %v470_v10  ;;  %v508_v19 = vadd.f32 %v507_v15, %v501_v14 }
  0xc0   : > { %v488_v20 = vrot.slane %v487_v17, 4  ;;  %v509_v21 = vadd.f32 %v508_v19, %v502_v18 }
  0xc2   : > { %v489_v22 = vadd.f32 %v488_v20, %v487_v17  ;;  %v510_v23 = vrot.slane %v509_v21, 4 }
  0xc4   : > { %v490_v24 = vrot.slane %v489_v22, 2  ;;  %v511_v25 = vadd.f32 %v510_v23, %v509_v21 }
  0xc6   : > { %v491_v26 = vadd.f32 %v490_v24, %v489_v22  ;;  %v512_v27 = vrot.slane %v511_v25, 2 }
  0xc8   : > { %v492_v28 = vrot.slane %v491_v26, 1  ;;  %v513_v29 = vadd.f32 %v512_v27, %v511_v25 }
  0xca   : > { %v493_v30 = vadd.f32 %v492_v28, %v491_v26  ;;  %v514_v31 = vrot.slane %v513_v29, 1 }
  0xcc   : > { %494 = vst [vmem:[%s323_s16] sm:$0x1] %v493_v30  ;;  %v515_v32 = vadd.f32 %v514_v31, %v513_v29 }
  0xce   : > { %516 = vst [vmem:[%s323_s16 + $0x1] sm:$0x1] %v515_v32 }
  0xcf PF: > { %s17_s23 = sadd.s32 1, %s781_s23   ;;  %s918_s21 = smov %s777_s22 }
  0xd0   : > { %p14_p5 = scmp.ge.s32.totalorder %s17_s23, 4   ;;  %s919_s22 = smov %s921_s24 }
  0xd2   :  { %16 = sbr.rel (!%p14_p5) target bundleno = 2 (0x2), region = 85 }

// kernel: regstage_forward.16
= control target key start
LH: loop header
LB: loop body
LE: loop exit
PB: predicated region body
PF: predicated region fallthrough
CT: control target
= control target key end

     0   :  { %s623_s21 = smov 0   ;;  %s625_s22 = smov 0   ;;  %s726_s0 = inlined_call_operand.vmem [shape: f32[2,64,128], index: 0, kind: input, shape index: {}]   ;;  %s727_s1 = inlined_call_operand.vmem [shape: f32[1,128], index: 1, kind: input, shape index: {}]   ;;  %s728_s2 = inlined_call_operand.vmem [shape: f32[1,128], index: 2, kind: input, shape index: {}]   ;;  %s729_s3 = inlined_call_operand.vmem [shape: f32[2,64,128], index: 3, kind: input, shape index: {}]   ;;  %s730_s4 = inlined_call_operand.vmem [shape: f32[1,128], index: 4, kind: input, shape index: {}]   ;;  %s731_s5 = inlined_call_operand.vmem [shape: f32[1,128], index: 5, kind: input, shape index: {}]   ;;  %s732_s6 = inlined_call_operand.vmem [shape: f32[2,64,128], index: 6, kind: output, shape index: {}]  }
   0x1   :  { %s627_s23 = smov 0  }
   0x2 LB: > { %s28_s24 = sadd.s32 1, %s582_s22  ;;  %p524_p0 = scmp.ge.s32.totalorder %s586_s23, 1  ;;  %s586_s23 = sphi %s627_s23, %s16_s23   ;;  %s582_s22 = sphi %s625_s22, %s734_s22   ;;  %s578_s21 = sphi %s623_s21, %s733_s21  }
   0x3   : > { %p30_p1 = scmp.ge.s32.totalorder %s28_s24, 2  ;;  %p250_p2 = scmp.lt.s32.totalorder %s586_s23, 3 }
   0x5   : > { %s736_s24 = smov (%p30_p1, %s28_s24), 0  ;;  %p251_p3 = pnand %p524_p0, %p250_p2 }
   0x6   : > { %p298_p4 = scmp.lt.s32.totalorder (!%p251_p3), %s578_s21, 1 }
   0x7   : > { %254 = sbr.rel (%p251_p3) target bundleno = 35 (0x23), region = 44 }
   0xc   : > { %s738_s21 = smov (!%p298_p4, %s578_s21), 1  ;;  %v560_v0 = vld [vmem:[%s727_s1] ss:$0 sm:$0xff] }
   0xd   : > { %v562_v1 = vld [vmem:[%s730_s4] ss:$0 sm:$0xff]  ;;  %s647_s29 = sshll.u32 %s738_s21, 6 }
   0xe   : > { %s653_s8 = scalar_lea.vmem %s726_s0, %s647_s29  ;;  %s659_s11 = scalar_lea.vmem %s729_s3, %s647_s29  ;;  %v664_v2 = vld [vmem:[%s728_s2] ss:$0 sm:$0xff] }
   0xf   : > { %v669_v3 = vld [vmem:[%s731_s5] ss:$0 sm:$0xff]  ;;  %v328_v6 = vld [vmem:[%s653_s8 + $0x8] sm:$0xff]  ;;  %v329_v11 = vld [vmem:[%s653_s8 + $0x10] sm:$0xff]  ;;  %s694_s18 = scalar_lea.vmem %s732_s6, %s647_s29 }
  0x10   : > { %v327_v4 = vld [vmem:[%s653_s8] sm:$0xff]  ;;  %v340_v9 = vmul.f32 %v560_v0, %v328_v6  ;;  %v360_v10 = vld [vmem:[%s659_s11 + $0x8] sm:$0xff]  ;;  %v361_v12 = vld [vmem:[%s659_s11 + $0x10] sm:$0xff]  ;;  %v341_v14 = vmul.f32 %v560_v0, %v329_v11 }
  0x11   : > { %v359_v5 = vld [vmem:[%s659_s11] sm:$0xff]  ;;  %v339_v7 = vmul.f32 %v560_v0, %v327_v4  ;;  %v372_v13 = vmul.f32 %v562_v1, %v360_v10  ;;  %v373_v15 = vmul.f32 %v562_v1, %v361_v12  ;;  %v330_v16 = vld [vmem:[%s653_s8 + $0x18] sm:$0xff]  ;;  %v332_v24 = vld [vmem:[%s653_s8 + $0x28] sm:$0xff] }
  0x12   : > { %v371_v8 = vmul.f32 %v562_v1, %v359_v5  ;;  %v362_v17 = vld [vmem:[%s659_s11 + $0x18] sm:$0xff]  ;;  %v331_v18 = vld [vmem:[%s653_s8 + $0x20] sm:$0xff]  ;;  %v352_v21 = vadd.f32 %v664_v2, %v340_v9  ;;  %v342_v22 = vmul.f32 %v560_v0, %v330_v16  ;;  %v353_v26 = vadd.f32 %v664_v2, %v341_v14  ;;  %v364_v29 = vld [vmem:[%s659_s11 + $0x28] sm:$0xff] }
  0x13   : > { %v351_v19 = vadd.f32 %v664_v2, %v339_v7  ;;  %v363_v23 = vld [vmem:[%s659_s11 + $0x20] sm:$0xff]  ;;  %v384_v25 = vadd.f32 %v669_v3, %v372_v13  ;;  %v385_v27 = vadd.f32 %v669_v3, %v373_v15  ;;  %v374_v28 = vmul.f32 %v562_v1, %v362_v17  ;;  %v333_v38 = vld [vmem:[%s653_s8 + $0x30] sm:$0xff]  ;;  %v334_v44 = vld [vmem:[%s653_s8 + $0x38] sm:$0xff] }
  0x14   : > { %v383_v20 = vadd.f32 %v669_v3, %v371_v8  ;;  %v354_v31 = vadd.f32 %v664_v2, %v342_v22  ;;  %v343_v32 = vmul.f32 %v560_v0, %v331_v18  ;;  %v375_v33 = vmul.f32 %v562_v1, %v363_v23  ;;  %v365_v39 = vld [vmem:[%s659_s11 + $0x30] sm:$0xff]  ;;  %v366_v45 = vld [vmem:[%s659_s11 + $0x38] sm:$0xff] }
  0x15   : > { %v392_v34 = vadd.f32 %v384_v25, %v352_v21  ;;  %v393_v35 = vadd.f32 %v385_v27, %v353_v26  ;;  %v386_v36 = vadd.f32 %v669_v3, %v374_v28  ;;  %v344_v37 = vmul.f32 %v560_v0, %v332_v24 }
  0x16   : > { %v391_v30 = vadd.f32 %v383_v20, %v351_v19  ;;  %v355_v41 = vadd.f32 %v664_v2, %v343_v32  ;;  %v387_v42 = vadd.f32 %v669_v3, %v375_v33  ;;  %v376_v43 = vmul.f32 %v562_v1, %v364_v29 }
  0x17   : > { %v400_v46 = vmax.f32 %v392_v34, 0.0  ;;  %v401_v47 = vmax.f32 %v393_v35, 0.0  ;;  %v394_v48 = vadd.f32 %v386_v36, %v354_v31  ;;  %v356_v49 = vadd.f32 %v664_v2, %v344_v37 }
  0x18   : > { %v399_v40 = vmax.f32 %v391_v30, 0.0  ;;  %v395_v50 = vadd.f32 %v387_v42, %v355_v41  ;;  %v388_v51 = vadd.f32 %v669_v3, %v376_v43  ;;  %v345_v52 = vmul.f32 %v560_v0, %v333_v38 }
  0x19   : > { %v377_v53 = vmul.f32 %v562_v1, %v365_v39  ;;  %408 = vst [vmem:[%s694_s18 + $0x8] sm:$0xff] %v400_v46  ;;  %v402_v54 = vmax.f32 %v394_v48, 0.0  ;;  %v346_v55 = vmul.f32 %v560_v0, %v334_v44  ;;  %v378_v56 = vmul.f32 %v562_v1, %v366_v45 }
  0x1a   : > { %407 = vst [vmem:[%s694_s18] sm:$0xff] %v399_v40  ;;  %v403_v57 = vmax.f32 %v395_v50, 0.0  ;;  %v396_v58 = vadd.f32 %v388_v51, %v356_v49  ;;  %v357_v59 = vadd.f32 %v664_v2, %v345_v52 }
  0x1b   : > { %409 = vst [vmem:[%s694_s18 + $0x10] sm:$0xff] %v401_v47  ;;  %v389_v60 = vadd.f32 %v669_v3, %v377_v53  ;;  %v358_v61 = vadd.f32 %v664_v2, %v346_v55  ;;  %v390_v62 = vadd.f32 %v669_v3, %v378_v56 }
  0x1c   : > { %410 = vst [vmem:[%s694_s18 + $0x18] sm:$0xff] %v402_v54  ;;  %v404_v63 = vmax.f32 %v396_v58, 0.0 }
  0x1d   : > { %411 = vst [vmem:[%s694_s18 + $0x20] sm:$0xff] %v403_v57  ;;  %v397_v4 = vadd.f32 %v389_v60, %v357_v59  ;;  %v398_v5 = vadd.f32 %v390_v62, %v358_v61 }
  0x1e   : > { %412 = vst [vmem:[%s694_s18 + $0x28] sm:$0xff] %v404_v63 }
  0x1f   : > { %v405_v0 = vmax.f32 %v397_v4, 0.0  ;;  %v406_v1 = vmax.f32 %v398_v5, 0.0 }
  0x21   : > { %413 = vst [vmem:[%s694_s18 + $0x30] sm:$0xff] %v405_v0 }
  0x22   : > { %414 = vst [vmem:[%s694_s18 + $0x38] sm:$0xff] %v406_v1 }
  0x23 PF: > { %s16_s23 = sadd.s32 1, %s586_s23   ;;  %s733_s21 = smov %s582_s22 }
  0x24   : > { %p13_p5 = scmp.ge.s32.totalorder %s16_s23, 4   ;;  %s734_s22 = smov %s736_s24 }
  0x26   :  { %15 = sbr.rel (!%p13_p5) target bundleno = 2 (0x2), region = 77 }

// kernel: regstage_forward.14
= control target key start
LH: loop header
LB: loop body
LE: loop exit
PB: predicated region body
PF: predicated region fallthrough
CT: control target
= control target key end

     0   :  { %s761_s21 = smov 0   ;;  %s763_s22 = smov 0   ;;  %s842_s0 = inlined_call_operand.vmem [shape: f32[2,64,128], index: 0, kind: input, shape index: {}]   ;;  %s843_s1 = inlined_call_operand.vmem [shape: bf16[128,128], index: 1, kind: input, shape index: {}]   ;;  %s844_s2 = inlined_call_operand.vmem [shape: f32[1,128], index: 2, kind: input, shape index: {}]   ;;  %s845_s3 = inlined_call_operand.vmem [shape: f32[1,128], index: 3, kind: input, shape index: {}]   ;;  %s846_s4 = inlined_call_operand.vmem [shape: f32[1,1,128], index: 4, kind: input, shape index: {}]   ;;  %s847_s5 = inlined_call_operand.vmem [shape: f32[2,64,128], index: 5, kind: output, shape index: {0}]   ;;  %s848_s6 = inlined_call_operand.vmem [shape: f32[2,1,2,128], index: 6, kind: output, shape index: {1}]  }
   0x1   :  { %s765_s23 = smov 0  }
   0x2 LB: > { %s29_s2 = sadd.s32 1, %s720_s22  ;;  %p603_p0 = scmp.ge.s32.totalorder %s724_s23, 1  ;;  %s724_s23 = sphi %s765_s23, %s17_s23   ;;  %s720_s22 = sphi %s763_s22, %s850_s22   ;;  %s716_s21 = sphi %s761_s21, %s849_s21  }
   0x3   : > { %p31_p1 = scmp.ge.s32.totalorder %s29_s2, 2  ;;  %p238_p2 = scmp.lt.s32.totalorder %s724_s23, 3 }
   0x5   : > { %s852_s2 = smov (%p31_p1, %s29_s2), 0  ;;  %p239_p3 = pnand %p603_p0, %p238_p2 }
   0x6   : > { %p284_p4 = scmp.lt.s32.totalorder (!%p239_p3), %s716_s21, 1 }
   0x7   : > { %242 = sbr.rel (%p239_p3) target bundleno = 207 (0xcf), region = 40 }
   0xc   : > { %v652_v0 = vld [vmem:[%s843_s1 + $0x38] sm:$0xff]  ;;  %v651_v1 = vld [vmem:[%s843_s1 + $0x30] sm:$0xff]  ;;  %v650_v2 = vld [vmem:[%s843_s1 + $0x28] sm:$0xff]  ;;  %s854_s21 = smov (!%p284_p4, %s716_s21), 1 }
   0xd   : > { %398 = vmatpush.bf16.msra.mxu0 %v652_v0  ;;  %653 = vmatpush.bf16.msra.mxu1 %v652_v0  ;;  %v649_v3 = vld [vmem:[%s843_s1 + $0x20] sm:$0xff]  ;;  %v648_v4 = vld [vmem:[%s843_s1 + $0x18] sm:$0xff]  ;;  %s643_s9 = sshll.u32 %s854_s21, 6  ;;  %v647_v5 = vld [vmem:[%s843_s1 + $0x10] sm:$0xff]  ;;  %s608_s26 = sshll.u32 %s854_s21, 1 }
   0xe   : > { %654 = vmatpush.bf16.msra.mxu2 %v652_v0  ;;  %655 = vmatpush.bf16.msra.mxu3 %v652_v0  ;;  %s291_s14 = scalar_lea.vmem %s842_s0, %s643_s9  ;;  %v701_v6 = vld [vmem:[%s846_s4] ss:$0 sm:$0xff]  ;;  %v646_v7 = vld [vmem:[%s843_s1 + $0x8] sm:$0xff]  ;;  %s819_s25 = scalar_lea.vmem %s847_s5, %s643_s9 }
   0xf   : > { %v310_v8 = vld [vmem:[%s291_s14] sm:$0xff]  ;;  %v311_v9 = vld [vmem:[%s291_s14 + $0x8] sm:$0xff]  ;;  %v312_v10 = vld [vmem:[%s291_s14 + $0x10] sm:$0xff]  ;;  %s309_s29 = scalar_lea.vmem %s848_s6, %s608_s26 }
  0x10   : > { %v313_v11 = vld [vmem:[%s291_s14 + $0x18] sm:$0xff]  ;;  %v314_v12 = vld [vmem:[%s291_s14 + $0x20] sm:$0xff]  ;;  %v315_v13 = vld [vmem:[%s291_s14 + $0x28] sm:$0xff]  ;;  %v322_v16 = vmul.f32 %v701_v6, %v310_v8  ;;  %v323_v17 = vmul.f32 %v701_v6, %v311_v9  ;;  %v324_v18 = vmul.f32 %v701_v6, %v312_v10 }
  0x11   : > { %399 = vmatpush.bf16.msra.mxu0 %v651_v1  ;;  %656 = vmatpush.bf16.msra.mxu1 %v651_v1  ;;  %v316_v14 = vld [vmem:[%s291_s14 + $0x30] sm:$0xff]  ;;  %v317_v15 = vld [vmem:[%s291_s14 + $0x38] sm:$0xff]  ;;  %v325_v19 = vmul.f32 %v701_v6, %v313_v11  ;;  %v326_v20 = vmul.f32 %v701_v6, %v314_v12  ;;  %v645_v21 = vld [vmem:[%s843_s1] sm:$0xff]  ;;  %v327_v22 = vmul.f32 %v701_v6, %v315_v13 }
  0x12   : > { %657 = vmatpush.bf16.msra.mxu2 %v651_v1  ;;  %658 = vmatpush.bf16.msra.mxu3 %v651_v1  ;;  %v328_v23 = vmul.f32 %v701_v6, %v316_v14  ;;  %v329_v24 = vmul.f32 %v701_v6, %v317_v15  ;;  %v330_v25 = vpack.c.bf16 %v323_v17, %v322_v16 }
  0x13   : > { %v331_v26 = vpack.c.bf16 %v325_v19, %v324_v18  ;;  %v332_v27 = vpack.c.bf16 %v327_v22, %v326_v20 }
  0x14   : > { %v333_v28 = vpack.c.bf16 %v329_v24, %v328_v23 }
  0x15   : > { %400 = vmatpush.bf16.msra.mxu0 %v650_v2  ;;  %659 = vmatpush.bf16.msra.mxu1 %v650_v2 }
  0x16   : > { %660 = vmatpush.bf16.msra.mxu2 %v650_v2  ;;  %661 = vmatpush.bf16.msra.mxu3 %v650_v2 }
  0x19   : > { %401 = vmatpush.bf16.msra.mxu0 %v649_v3  ;;  %662 = vmatpush.bf16.msra.mxu1 %v649_v3 }
  0x1a   : > { %663 = vmatpush.bf16.msra.mxu2 %v649_v3  ;;  %664 = vmatpush.bf16.msra.mxu3 %v649_v3 }
  0x1d   : > { %402 = vmatpush.bf16.msra.mxu0 %v648_v4  ;;  %665 = vmatpush.bf16.msra.mxu1 %v648_v4 }
  0x1e   : > { %666 = vmatpush.bf16.msra.mxu2 %v648_v4  ;;  %667 = vmatpush.bf16.msra.mxu3 %v648_v4 }
  0x21   : > { %403 = vmatpush.bf16.msra.mxu0 %v647_v5  ;;  %668 = vmatpush.bf16.msra.mxu1 %v647_v5 }
  0x22   : > { %669 = vmatpush.bf16.msra.mxu2 %v647_v5  ;;  %670 = vmatpush.bf16.msra.mxu3 %v647_v5 }
  0x25   : > { %404 = vmatpush.bf16.msra.mxu0 %v646_v7  ;;  %671 = vmatpush.bf16.msra.mxu1 %v646_v7 }
  0x26   : > { %672 = vmatpush.bf16.msra.mxu2 %v646_v7  ;;  %673 = vmatpush.bf16.msra.mxu3 %v646_v7 }
  0x29   : > { %405 = vmatpush.bf16.msra.mxu0 %v645_v21  ;;  %674 = vmatpush.bf16.msra.mxu1 %v645_v21 }
  0x2a   : > { %675 = vmatpush.bf16.msra.mxu2 %v645_v21  ;;  %676 = vmatpush.bf16.msra.mxu3 %v645_v21 }
  0x2c   : > { %406 = vmatmul.bf16.vlgmr.msra.gmra.mxu0 %v330_v25  ;;  %411 = vmatmul.bf16.vlgmr.msra.gmra.mxu1 %v331_v26 }
  0x2d   : > { %416 = vmatmul.bf16.vlgmr.msra.gmra.mxu2 %v332_v27  ;;  %421 = vmatmul.bf16.vlgmr.msra.gmra.mxu3 %v333_v28 }
  0xa9   : > { %v407_v29 = vpop.f32.mrf.mxu0  ;;  %v412_v30 = vpop.f32.mrf.mxu1 }
  0xaa   : > { %427 = vst [vmem:[%s819_s25] sm:$0xff] %v407_v29  ;;  %v449_v35 = vmul.f32 %v407_v29, %v407_v29  ;;  %v451_v38 = vmul.f32 %v412_v30, %v412_v30 }
  0xab   : > { %429 = vst [vmem:[%s819_s25 + $0x10] sm:$0xff] %v412_v30 }
  0xb0   : > { %v417_v31 = vpop.f32.mrf.mxu2  ;;  %v422_v32 = vpop.f32.mrf.mxu3 }
  0xb1   : > { %431 = vst [vmem:[%s819_s25 + $0x20] sm:$0xff] %v417_v31  ;;  %v409_v33 = vpop.f32.mrf.mxu0  ;;  %v414_v34 = vpop.f32.mrf.mxu1  ;;  %v453_v44 = vmul.f32 %v417_v31, %v417_v31  ;;  %v455_v52 = vmul.f32 %v422_v32, %v422_v32 }
  0xb2   : > { %433 = vst [vmem:[%s819_s25 + $0x30] sm:$0xff] %v422_v32  ;;  %v435_v36 = vadd.f32 %v409_v33, %v407_v29  ;;  %v450_v37 = vmul.f32 %v409_v33, %v409_v33  ;;  %v452_v42 = vmul.f32 %v414_v34, %v414_v34 }
  0xb3   : > { %428 = vst [vmem:[%s819_s25 + $0x8] sm:$0xff] %v409_v33 }
  0xb4   : > { %v457_v39 = vadd.f32 %v450_v37, %v449_v35  ;;  %430 = vst [vmem:[%s819_s25 + $0x18] sm:$0xff] %v414_v34  ;;  %v436_v40 = vadd.f32 %v435_v36, %v412_v30 }
  0xb6   : > { %v437_v41 = vadd.f32 %v436_v40, %v414_v34  ;;  %v458_v43 = vadd.f32 %v457_v39, %v451_v38 }
  0xb8   : > { %v459_v45 = vadd.f32 %v458_v43, %v452_v42  ;;  %v419_v46 = vpop.f32.mrf.mxu2  ;;  %v438_v47 = vadd.f32 %v437_v41, %v417_v31  ;;  %v424_v48 = vpop.f32.mrf.mxu3 }
  0xb9   : > { %432 = vst [vmem:[%s819_s25 + $0x28] sm:$0xff] %v419_v46  ;;  %v454_v50 = vmul.f32 %v419_v46, %v419_v46  ;;  %v456_v56 = vmul.f32 %v424_v48, %v424_v48 }
  0xba   : > { %v439_v49 = vadd.f32 %v438_v47, %v419_v46  ;;  %v460_v51 = vadd.f32 %v459_v45, %v453_v44  ;;  %434 = vst [vmem:[%s819_s25 + $0x38] sm:$0xff] %v424_v48 }
  0xbc   : > { %v461_v53 = vadd.f32 %v460_v51, %v454_v50  ;;  %v440_v54 = vadd.f32 %v439_v49, %v422_v32 }
  0xbe   : > { %v441_v55 = vadd.f32 %v440_v54, %v424_v48  ;;  %v462_v57 = vadd.f32 %v461_v53, %v455_v52 }
  0xc0   : > { %v442_v58 = vrot.slane %v441_v55, 4  ;;  %v463_v59 = vadd.f32 %v462_v57, %v456_v56 }
  0xc2   : > { %v443_v60 = vadd.f32 %v442_v58, %v441_v55  ;;  %v464_v61 = vrot.slane %v463_v59, 4 }
  0xc4   : > { %v444_v62 = vrot.slane %v443_v60, 2  ;;  %v465_v63 = vadd.f32 %v464_v61, %v463_v59 }
  0xc6   : > { %v445_v0 = vadd.f32 %v444_v62, %v443_v60  ;;  %v466_v1 = vrot.slane %v465_v63, 2 }
  0xc8   : > { %v446_v2 = vrot.slane %v445_v0, 1  ;;  %v467_v3 = vadd.f32 %v466_v1, %v465_v63 }
  0xca   : > { %v447_v4 = vadd.f32 %v446_v2, %v445_v0  ;;  %v468_v5 = vrot.slane %v467_v3, 1 }
  0xcc   : > { %448 = vst [vmem:[%s309_s29] sm:$0x1] %v447_v4  ;;  %v469_v6 = vadd.f32 %v468_v5, %v467_v3 }
  0xce   : > { %470 = vst [vmem:[%s309_s29 + $0x1] sm:$0x1] %v469_v6 }
  0xcf PF: > { %s17_s23 = sadd.s32 1, %s724_s23   ;;  %s849_s21 = smov %s720_s22 }
  0xd0   : > { %p14_p5 = scmp.ge.s32.totalorder %s17_s23, 4   ;;  %s850_s22 = smov %s852_s2 }
  0xd2   :  { %16 = sbr.rel (!%p14_p5) target bundleno = 2 (0x2), region = 82 }

// kernel: regstage_forward.18
= control target key start
LH: loop header
LB: loop body
LE: loop exit
PB: predicated region body
PF: predicated region fallthrough
CT: control target
= control target key end

     0   :  { %s1722_s18 = smov 0   ;;  %s2412_s0 = inlined_call_operand.vmem [shape: f32[1,2,10,10,128], index: 0, kind: input, shape index: {}]   ;;  %s2413_s1 = inlined_call_operand.vmem [shape: f32[1,128], index: 1, kind: input, shape index: {}]   ;;  %s2414_s2 = inlined_call_operand.vmem [shape: f32[1,128], index: 2, kind: input, shape index: {}]   ;;  %s2415_s3 = inlined_call_operand.vmem [shape: bf16[9,2,8,128], index: 3, kind: input, shape index: {}]   ;;  %s2416_s4 = inlined_call_operand.vmem [shape: f32[2,64,128], index: 4, kind: output, shape index: {0}]   ;;  %s2417_s5 = inlined_call_operand.vmem [shape: f32[2,2,128], index: 5, kind: output, shape index: {1}]  }
   0x1 LB: > { %s1568_s19 = sadd.s32 4294967295, %s1689_s18   ;;  %p1572_p0 = scmp.ge.s32.totalorder %s1689_s18, 1  ;;  %s1689_s18 = sphi %s1722_s18, %s16_s18  }
   0x2   : > { %p190_p1 = scmp.lt.s32.totalorder %s1689_s18, 3 }
   0x4   : > { %p191_p2 = pnand %p1572_p0, %p190_p1 }
   0x5   : > { %p222_p3 = scmp.lt.s32.totalorder (!%p191_p2), %s1568_s19, 1  ;;  %s1691_s28 = smov (!%p191_p2), 120  }
   0x6   : > { %194 = sbr.rel (%p191_p2) target bundleno = 577 (0x241), region = 36 }
   0xb   : > { %s2419_s19 = smov (!%p222_p3, %s1568_s19), 1  ;;  %v1736_v0 = vld [vmem:[%s2413_s1] ss:$0 sm:$0xff]  ;;  %vm607_vm0 = vcmask 1045504   ;;  %vm450_vm1 = vcmask 1046528   ;;  %vm357_vm2 = vcmask 1043456  }
   0xc   : > { %s1671_s20 = smul.u32 160, %s2419_s19  ;;  %v1746_v1 = vld [vmem:[%s2414_s2] ss:$0 sm:$0xff]  ;;  %vm344_vm3 = vcmask 64512   ;;  %s1576_s23 = sshll.u32 %s2419_s19, 1 }
   0xd   : > { %s235_s27 = scalar_lea.vmem %s2417_s5, %s1576_s23 }
   0xe   : > { %s1741_s25 = scalar_lea.vmem %s2412_s0, %s1671_s20 }
   0xf   : > { %v251_v2 = vld [vmem:[%s1741_s25 + $0x60] sm:$0xff]  ;;  %v253_v3 = vld [vmem:[%s1741_s25 + $0x70] sm:$0xff]  ;;  %v244_v24 = vld [vmem:[%s1741_s25 + $0x28] sm:$0x3] }
  0x10   : > { %v247_v4 = vld [vmem:[%s1741_s25 + $0x40] sm:$0xff]  ;;  %v274_v5 = vmul.f32 %v1736_v0, %v251_v2  ;;  %v276_v6 = vmul.f32 %v1736_v0, %v253_v3  ;;  %v249_v7 = vld [vmem:[%s1741_s25 + $0x50] sm:$0xff]  ;;  %v246_v25 = vld [vmem:[%s1741_s25 + $0x38] sm:$0x3]  ;;  %v267_v37 = vmul.f32 %v1736_v0, %v244_v24 }
  0x11   : > { %v270_v8 = vmul.f32 %v1736_v0, %v247_v4  ;;  %v243_v9 = vld [vmem:[%s1741_s25 + $0x20] sm:$0xff]  ;;  %v245_v10 = vld [vmem:[%s1741_s25 + $0x30] sm:$0xff]  ;;  %v272_v11 = vmul.f32 %v1736_v0, %v249_v7  ;;  %v240_v34 = vld [vmem:[%s1741_s25 + $0x8] sm:$0x3]  ;;  %v269_v38 = vmul.f32 %v1736_v0, %v246_v25 }
  0x12   : > { %v266_v12 = vmul.f32 %v1736_v0, %v243_v9  ;;  %v268_v13 = vmul.f32 %v1736_v0, %v245_v10  ;;  %v239_v14 = vld [vmem:[%s1741_s25] sm:$0xff]  ;;  %v241_v15 = vld [vmem:[%s1741_s25 + $0x10] sm:$0xff]  ;;  %v297_v16 = vadd.f32 %v1746_v1, %v274_v5  ;;  %v299_v17 = vadd.f32 %v1746_v1, %v276_v6  ;;  %v242_v39 = vld [vmem:[%s1741_s25 + $0x18] sm:$0x3] }
  0x13   : > { %v293_v18 = vadd.f32 %v1746_v1, %v270_v8  ;;  %v262_v19 = vmul.f32 %v1736_v0, %v239_v14  ;;  %v295_v20 = vadd.f32 %v1746_v1, %v272_v11  ;;  %v264_v23 = vmul.f32 %v1736_v0, %v241_v15  ;;  %v248_v50 = vld [vmem:[%s1741_s25 + $0x48] sm:$0x3]  ;;  %v250_v55 = vld [vmem:[%s1741_s25 + $0x58] sm:$0x3] }
  0x14   : > { %v289_v21 = vadd.f32 %v1746_v1, %v266_v12  ;;  %v291_v22 = vadd.f32 %v1746_v1, %v268_v13  ;;  %v1772_v26 = vmax.f32 %v297_v16, 0.0  ;;  %v1774_v27 = vmax.f32 %v299_v17, 0.0  ;;  %v252_v16 = vld [vmem:[%s1741_s25 + $0x68] sm:$0x3] }
  0x15   : > { %v1776_v28 = vmax.f32 %v293_v18, 0.0  ;;  %v285_v29 = vadd.f32 %v1746_v1, %v262_v19  ;;  %v1779_v30 = vmax.f32 %v295_v20, 0.0  ;;  %v287_v33 = vadd.f32 %v1746_v1, %v264_v23 }
  0x16   : > { %v1781_v31 = vmax.f32 %v289_v21, 0.0  ;;  %v1783_v32 = vmax.f32 %v291_v22, 0.0  ;;  %v1789_v35 = vpack.c.bf16 %v1774_v27, %v1772_v26  ;;  %v290_v43 = vadd.f32 %v1746_v1, %v267_v37  ;;  %v254_v21 = vld [vmem:[%s1741_s25 + $0x78] sm:$0x3] }
  0x17   : > { %v1791_v36 = vmax.f32 %v285_v29, 0.0  ;;  %v1798_v40 = vpack.c.bf16 %v1779_v30, %v1776_v28  ;;  %v1800_v41 = vmax.f32 %v287_v33, 0.0  ;;  %v292_v44 = vadd.f32 %v1746_v1, %v269_v38 }
  0x18   : > { %342 = vrot.lane.b32.xlu1 %v1789_v35, %s1691_s28  ;;  %v1806_v42 = vpack.c.bf16 %v1783_v32, %v1781_v31  ;;  %v263_v45 = vmul.f32 %v1736_v0, %v240_v34  ;;  %v614_v47 = vrot.slane %v1781_v31, 2  ;;  %v617_v48 = vrot.slane %v1783_v32, 2 }
  0x19   : > { %340 = vrot.lane.b32.xlu0 %v1798_v40, %s1691_s28  ;;  %v1815_v46 = vpack.c.bf16 %v1800_v41, %v1791_v36  ;;  %v265_v49 = vmul.f32 %v1736_v0, %v242_v39  ;;  %v310_v51 = vmax.f32 %v290_v43, 0.0  ;;  %v312_v52 = vmax.f32 %v292_v44, 0.0 }
  0x1a   : > { %v286_v53 = vadd.f32 %v1746_v1, %v263_v45  ;;  %v451_v54 = vrot.slane %v1791_v36, 1  ;;  %v454_v57 = vrot.slane %v1800_v41, 1  ;;  %v457_v58 = vrot.slane %v1781_v31, 1 }
  0x1b   : > { %v288_v56 = vadd.f32 %v1746_v1, %v265_v49  ;;  %v460_v59 = vrot.slane %v1783_v32, 1  ;;  %v615_v60 = vrot.slane %v310_v51, 2  ;;  %v618_v61 = vrot.slane %v312_v52, 2 }
  0x1c   : > { %v306_v62 = vmax.f32 %v286_v53, 0.0  ;;  %v458_v63 = vrot.slane %v310_v51, 1  ;;  %v461_v3 = vrot.slane %v312_v52, 1  ;;  %v271_v4 = vmul.f32 %v1736_v0, %v248_v50 }
  0x1d   : > { %v308_v2 = vmax.f32 %v288_v56, 0.0  ;;  %v273_v5 = vmul.f32 %v1736_v0, %v250_v55  ;;  %v608_v7 = vrot.slane %v1791_v36, 2  ;;  %v1832_v8 = vsel %vm607_vm0, %v614_v47, %v615_v60 }
  0x1e   : > { %v452_v6 = vrot.slane %v306_v62, 1  ;;  %v1835_v9 = vsel %vm607_vm0, %v617_v48, %v618_v61  ;;  %v611_v11 = vrot.slane %v1800_v41, 2  ;;  %v1842_v13 = vsel %vm450_vm1, %v457_v58, %v458_v63 }
  0x1f   : > { %v455_v10 = vrot.slane %v308_v2, 1  ;;  %v1845_v14 = vsel %vm450_vm1, %v460_v59, %v461_v3  ;;  %v294_v15 = vadd.f32 %v1746_v1, %v271_v4  ;;  %v609_v18 = vrot.slane %v306_v62, 2 }
  0x20   : > { %338 = vrot.lane.b32.xlu1 %v1806_v42, %s1691_s28  ;;  %v453_v12 = vsel %vm450_vm1, %v451_v54, %v452_v6  ;;  %v612_v19 = vrot.slane %v308_v2, 2  ;;  %v296_v20 = vadd.f32 %v1746_v1, %v273_v5  ;;  %v275_v25 = vmul.f32 %v1736_v0, %v252_v16  ;;  %v329_v54 = vld [vmem:[%s2415_s3] sm:$0xf] }
  0x21   : > { %336 = vrot.lane.b32.xlu0 %v1815_v46, %s1691_s28  ;;  %v456_v17 = vsel %vm450_vm1, %v454_v57, %v455_v10  ;;  %v314_v23 = vmax.f32 %v294_v15, 0.0  ;;  %v1859_v29 = vpack.c.bf16 %v1835_v9, %v1832_v8  ;;  %v1865_v33 = vpack.c.bf16 %v1845_v14, %v1842_v13 }
  0x22   : > { %v1854_v22 = vpack.c.bf16 %v456_v17, %v453_v12  ;;  %v316_v24 = vmax.f32 %v296_v20, 0.0  ;;  %v277_v34 = vmul.f32 %v1736_v0, %v254_v21  ;;  %v610_v36 = vsel %vm607_vm0, %v608_v7, %v609_v18  ;;  %v1591_v20 = vld [vmem:[%s2415_s3 + $0xc] sm:$0xf] }
  0x23   : > { %v1870_v37 = vsel %vm607_vm0, %v611_v11, %v612_v19  ;;  %v620_v38 = vrot.slane %v1776_v28, 2  ;;  %v298_v39 = vadd.f32 %v1746_v1, %v275_v25  ;;  %v621_v43 = vrot.slane %v314_v23, 2 }
  0x24   : > { %547 = vrot.lane.b32.xlu2 %v1854_v22, %s1691_s28  ;;  %v623_v44 = vrot.slane %v1779_v30, 2  ;;  %v624_v45 = vrot.slane %v316_v24, 2  ;;  %v300_v47 = vadd.f32 %v1746_v1, %v277_v34  ;;  %v469_v49 = vrot.slane %v1772_v26, 1 }
  0x25   : > { %v318_v48 = vmax.f32 %v298_v39, 0.0  ;;  %v1880_v50 = vpack.c.bf16 %v1870_v37, %v610_v36  ;;  %v472_v52 = vrot.slane %v1774_v27, 1  ;;  %v463_v53 = vrot.slane %v1776_v28, 1 }
  0x26   : > { %v320_v51 = vmax.f32 %v300_v47, 0.0  ;;  %v464_v56 = vrot.slane %v314_v23, 1  ;;  %v466_v57 = vrot.slane %v1779_v30, 1  ;;  %v467_v58 = vrot.slane %v316_v24, 1 }
  0x27   : > { %v470_v55 = vrot.slane %v318_v48, 1  ;;  %v1891_v59 = vsel %vm607_vm0, %v620_v38, %v621_v43  ;;  %v1894_v60 = vsel %vm607_vm0, %v623_v44, %v624_v45  ;;  %v403_v63 = vsel %vm357_vm2, %v329_v54, 0 }
  0x28   : > { %706 = vrot.lane.b32.xlu1 %v1859_v29, %s1691_s28  ;;  %v473_v61 = vrot.slane %v320_v51, 1  ;;  %412 = vmatpush.bf16.msra.mxu1 %v403_v63  ;;  %v1905_v3 = vpack.c.bf16 %v1894_v60, %v1891_v59  ;;  %v465_v5 = vsel %vm450_vm1, %v463_v53, %v464_v56  ;;  %v468_v6 = vsel %vm450_vm1, %v466_v57, %v467_v58 }
  0x29   : > { %549 = vrot.lane.b32.xlu0 %v1865_v33, %s1691_s28  ;;  %v1897_v62 = vsel %vm450_vm1, %v469_v49, %v470_v55  ;;  %1670 = vmatpush.bf16.msra.mxu3 %v403_v63  ;;  %v1916_v7 = vpack.c.bf16 %v468_v6, %v465_v5  ;;  %v626_v10 = vrot.slane %v1772_v26, 2  ;;  %v627_v11 = vrot.slane %v318_v48, 2  ;;  %v1586_v49 = vld [vmem:[%s2415_s3 + $0x8] sm:$0xf] }
  0x2a   : > { %v474_v2 = vsel %vm450_vm1, %v472_v52, %v473_v61  ;;  %v629_v12 = vrot.slane %v1774_v27, 2  ;;  %v630_v15 = vrot.slane %v320_v51, 2  ;;  %v1925_v16 = vpack.c.bf16 %v1842_v13, %v456_v17  ;;  %v1596_v52 = vld [vmem:[%s2415_s3 + $0x10] sm:$0xf]  ;;  %v1606_v61 = vld [vmem:[%s2415_s3 + $0x18] sm:$0xf] }
  0x2b   : > { %v1908_v4 = vpack.c.bf16 %v474_v2, %v1897_v62  ;;  %1582 = vmatmul.msk.bf16.vlgmr.msra.gmra.mxu1 %vm344_vm3, %v1815_v46  ;;  %v1931_v46 = vpack.c.bf16 %v1781_v31, %v1800_v41  ;;  %v1934_v18 = vsel %vm607_vm0, %v626_v10, %v627_v11  ;;  %v1951_v31 = vpack.c.bf16 %v1772_v26, %v1779_v30  ;;  %v255_v26 = vld [vmem:[%s1741_s25 + $0x80] sm:$0xff]  ;;  %v256_v30 = vld [vmem:[%s1741_s25 + $0x88] sm:$0x3] }
  0x2c   : > { %704 = vrot.lane.b32.xlu2 %v1880_v50, %s1691_s28  ;;  %1584 = vmatmul.msk.bf16.vlgmr.msra.gmra.mxu3 %vm344_vm3, %v1798_v40  ;;  %v1937_v19 = vsel %vm607_vm0, %v629_v12, %v630_v15  ;;  %v1954_v41 = vpack.c.bf16 %v465_v5, %v1845_v14  ;;  %v1964_v17 = vpack.c.bf16 %v1776_v28, %v1783_v32  ;;  %v1577_v14 = vld [vmem:[%s2415_s3 + $0x4] sm:$0xf]  ;;  %v1601_v28 = vld [vmem:[%s2415_s3 + $0x14] sm:$0xf]  ;;  %v568_v24 = vsel %vm357_vm2, %v1591_v20, 0 }
  0x2d   : > { %v1943_v13 = vpack.c.bf16 %v1937_v19, %v1934_v18  ;;  %v278_v32 = vmul.f32 %v1736_v0, %v255_v26  ;;  %v279_v21 = vmul.f32 %v1736_v0, %v256_v30  ;;  %v359_v23 = vsel %vm357_vm2, %v1577_v14, 0  ;;  %577 = vmatpush.bf16.msrb.mxu3 %v568_v24 }
  0x2e   : > { %v725_v25 = vsel %vm357_vm2, %v1601_v28, 0  ;;  %1669 = vmatpush.bf16.msra.mxu2 %v359_v23  ;;  %368 = vmatpush.bf16.msra.mxu0 %v359_v23  ;;  %v2014_v51 = vpack.c.bf16 %v1897_v62, %v468_v6  ;;  %v659_v53 = vsel %vm357_vm2, %v1596_v52, 0  ;;  %v2026_v55 = vpack.c.bf16 %v1891_v59, %v1835_v9  ;;  %v1611_v9 = vld [vmem:[%s2415_s3 + $0x1c] sm:$0xf] }
  0x2f   : > { %v301_v34 = vadd.f32 %v1746_v1, %v278_v32  ;;  %v1988_v36 = vadd.f32 %v1746_v1, %v279_v21  ;;  %734 = vmatpush.bf16.msrb.mxu1 %v725_v25  ;;  %v2045_v59 = vpack.c.bf16 %v1832_v8, %v1870_v37  ;;  %v783_v62 = vsel %vm357_vm2, %v1606_v61, 0  ;;  %v1616_v8 = vld [vmem:[%s2415_s3 + $0x20] sm:$0xf]  ;;  %v1621_v37 = vld [vmem:[%s2415_s3 + $0x24] sm:$0xf] }
  0x30   : > { %553 = vrot.lane.b32.xlu1 %v1908_v4, %s1691_s28  ;;  %v849_v63 = vsel %vm357_vm2, %v1611_v9, 0  ;;  %v2062_v6 = vpack.c.bf16 %v1934_v18, %v1894_v60  ;;  %v913_v10 = vsel %vm357_vm2, %v1616_v8, 0  ;;  %v979_v11 = vsel %vm357_vm2, %v1621_v37, 0  ;;  %v257_v60 = vld [vmem:[%s1741_s25 + $0x90] sm:$0xff]  ;;  %v258_v37 = vld [vmem:[%s1741_s25 + $0x98] sm:$0x3] }
  0x31   : > { %708 = vrot.lane.b32.xlu0 %v1905_v3, %s1691_s28  ;;  %v1990_v38 = vmax.f32 %v301_v34, 0.0  ;;  %v322_v39 = vmax.f32 %v1988_v36, 0.0  ;;  %858 = vmatpush.bf16.msra.mxu3 %v849_v63  ;;  %v280_v18 = vmul.f32 %v1736_v0, %v257_v60  ;;  %v1631_v36 = vld [vmem:[%s2415_s3 + $0x2c] sm:$0xf] }
  0x32   : > { %668 = vmatpush.bf16.msrb.mxu0 %v659_v53 }
  0x33   : > { %v890_v43 = vrot.slane %v1990_v38, 1  ;;  %v891_v44 = vrot.slane %v322_v39, 1  ;;  %v1998_v45 = vpack.c.bf16 %v1990_v38, %v1774_v27  ;;  %v502_v27 = vsel %vm357_vm2, %v1586_v49, 0  ;;  %988 = vmatpush.bf16.msra.mxu1 %v979_v11 }
  0x34   : > { %551 = vrot.lane.b32.xlu2 %v1916_v7, %s1691_s28  ;;  %511 = vmatpush.bf16.msrb.mxu2 %v502_v27  ;;  %v303_v26 = vadd.f32 %v1746_v1, %v280_v18  ;;  %v1019_v23 = vrot.slane %v322_v39, 2  ;;  %v1107_v39 = vsel %vm357_vm2, %v1631_v36, 0  ;;  %v281_v11 = vmul.f32 %v1736_v0, %v258_v37 }
  0x35   : > { %v2001_v47 = vsel %vm450_vm1, %v890_v43, %v891_v44  ;;  %v1636_v43 = vld [vmem:[%s2415_s3 + $0x30] sm:$0xf]  ;;  %v1641_v44 = vld [vmem:[%s2415_s3 + $0x34] sm:$0xf] }
  0x36   : > { %v2006_v48 = vpack.c.bf16 %v2001_v47, %v474_v2  ;;  %v2083_v30 = vmax.f32 %v303_v26, 0.0  ;;  %v1153_v49 = vsel %vm357_vm2, %v1636_v43, 0  ;;  %v1201_v27 = vsel %vm357_vm2, %v1641_v44, 0  ;;  %v1656_v43 = vld [vmem:[%s2415_s3 + $0x40] sm:$0xf] }
  0x37   : > { %v304_v26 = vadd.f32 %v1746_v1, %v281_v11 }
  0x38   : > { %958 = vrot.lane.b32.xlu1 %v1925_v16, %s1691_s28  ;;  %v2087_v14 = vpack.c.bf16 %v2083_v30, %v1990_v38 }
  0x39   : > { %828 = vrot.lane.b32.xlu0 %v1931_v46, %s1691_s28 }
  0x3b   : > { %1583 = vmatmul.msk.bf16.gmra.mxu1 %vm344_vm3, %v1806_v42 }
  0x3c   : > { %710 = vrot.lane.b32.xlu2 %v1943_v13, %s1691_s28  ;;  %1585 = vmatmul.msk.bf16.gmra.mxu3 %vm344_vm3, %v1789_v35 }
  0x40   : > { %832 = vrot.lane.b32.xlu1 %v1951_v31, %s1691_s28 }
  0x41   : > { %960 = vrot.lane.b32.xlu0 %v1954_v41, %s1691_s28 }
  0x44   : > { %830 = vrot.lane.b32.xlu2 %v1964_v17, %s1691_s28 }
  0x48   : > { %964 = vrot.lane.b32.xlu1 %v2006_v48, %s1691_s28 }
  0x49   : > { %834 = vrot.lane.b32.xlu0 %v1998_v45, %s1691_s28 }
  0x4c   : > { %962 = vrot.lane.b32.xlu2 %v2014_v51, %s1691_s28 }
  0x50   : > { %1090 = vrot.lane.b32.xlu1 %v2062_v6, %s1691_s28 }
  0x51   : > { %1088 = vrot.lane.b32.xlu0 %v2026_v55, %s1691_s28 }
  0x54   : > { %1086 = vrot.lane.b32.xlu2 %v2045_v59, %s1691_s28 }
  0x59   : > { %1195 = vrot.lane.b32.xlu0 %v2087_v14, %s1691_s28 }
  0x7e   : > { %v548_v54 = vpop.permute.xlu2 %547 }
  0x7f   : > { %1592 = vmatmul.msk.bf16.vlgmr.msrb.gmra.mxu3 %vm344_vm3, %v548_v54 }
  0x80   : > { %1116 = vmatpush.bf16.msrb.mxu3 %v1107_v39 }
  0x86   : > { %v705_v56 = vpop.permute.xlu2 %704 }
  0x87   : > { %1602 = vmatmul.msk.bf16.vlgmr.msrb.gmra.mxu1 %vm344_vm3, %v705_v56 }
  0x88   : > { %1210 = vmatpush.bf16.msrb.mxu1 %v1201_v27 }
  0x8a   : > { %v2031_v57 = vpop.permute.xlu1 %342 }
  0x8b   : > { %v2033_v58 = vpop.permute.xlu0 %340 }
  0x8c   : > { %1580 = vmatmul.msk.bf16.vlgmr.msra.gmra.mxu2 %vm344_vm3, %v2033_v58 }
  0x8d   : > { %792 = vmatpush.bf16.msra.mxu2 %v783_v62 }
  0x8e   : > { %v2091_v28 = vpop.permute.xlu2 %551 }
  0x92   : > { %v2051_v2 = vpop.permute.xlu1 %338 }
  0x93   : > { %v337_v5 = vpop.permute.xlu0 %336 }
  0x94   : > { %1578 = vmatmul.msk.bf16.vlgmr.msra.gmra.mxu0 %vm344_vm3, %v337_v5 }
  0x95   : > { %922 = vmatpush.bf16.msra.mxu0 %v913_v10 }
  0x96   : > { %v2103_v32 = vpop.permute.xlu2 %710 }
  0x9a   : > { %v2068_v12 = vpop.permute.xlu1 %706 }
  0x9b   : > { %v2070_v15 = vpop.permute.xlu0 %549  ;;  %1603 = vmatmul.msk.bf16.gmra.mxu1 %vm344_vm3, %v2068_v12 }
  0x9c   : > { %1581 = vmatmul.msk.bf16.gmra.mxu2 %vm344_vm3, %v2031_v57  ;;  %1593 = vmatmul.msk.bf16.gmra.mxu3 %vm344_vm3, %v2070_v15 }
  0x9e   : > { %v831_v53 = vpop.permute.xlu2 %830 }
  0xa2   : > { %v2105_v21 = vpop.permute.xlu1 %553 }
  0xa3   : > { %v2089_v20 = vpop.permute.xlu0 %708 }
  0xa4   : > { %1579 = vmatmul.msk.bf16.gmra.mxu0 %vm344_vm3, %v2051_v2 }
  0xa6   : > { %v963_v9 = vpop.permute.xlu2 %962 }
  0xa8   : > { %v2153_v54 = vpop.f32.mrf.mxu1 }
  0xaa   : > { %v959_v25 = vpop.permute.xlu1 %958 }
  0xab   : > { %1604 = vmatmul.msk.bf16.gmra.mxu1 %vm344_vm3, %v2089_v20  ;;  %v829_v34 = vpop.permute.xlu0 %828 }
  0xac   : > { %1587 = vmatmul.msk.bf16.vlgmr.msrb.gmra.mxu2 %vm344_vm3, %v1854_v22  ;;  %1594 = vmatmul.msk.bf16.gmra.mxu3 %vm344_vm3, %v2091_v28  ;;  %v1018_v22 = vrot.slane %v1990_v38, 2 }
  0xaf   : > { %v424_v56 = vpop.f32.mrf.mxu3 }
  0xb0   : > { %v2157_v61 = vpop.f32.mrf.mxu1 }
  0xb2   : > { %v833_v62 = vpop.permute.xlu1 %832 }
  0xb3   : > { %v961_v52 = vpop.permute.xlu0 %960 }
  0xb4   : > { %1597 = vmatmul.msk.bf16.vlgmr.msrb.gmra.mxu0 %vm344_vm3, %v1880_v50  ;;  %v2117_v50 = vsel %vm607_vm0, %v1018_v22, %v1019_v23  ;;  %v1242_v22 = vrot.slane %v2083_v30, 1 }
  0xb5   : > { %v2121_v24 = vpack.c.bf16 %v2117_v50, %v1937_v19  ;;  %v1626_v19 = vld [vmem:[%s2415_s3 + $0x28] sm:$0xf]  ;;  %1162 = vmatpush.bf16.msrb.mxu0 %v1153_v49  ;;  %v1351_v49 = vsel %vm357_vm2, %v1656_v43, 0 }
  0xb6   : > { %v1041_v38 = vsel %vm357_vm2, %v1626_v19, 0  ;;  %v1651_v19 = vld [vmem:[%s2415_s3 + $0x3c] sm:$0xf] }
  0xb7   : > { %1092 = vrot.lane.b32.xlu2 %v2121_v24, %s1691_s28  ;;  %1050 = vmatpush.bf16.msrb.mxu2 %v1041_v38  ;;  %v2163_v63 = vpop.f32.mrf.mxu3  ;;  %v1301_v36 = vsel %vm357_vm2, %v1651_v19, 0 }
  0xb8   : > { %v2165_v5 = vpop.f32.mrf.mxu1 }
  0xba   : > { %v965_v10 = vpop.permute.xlu1 %964 }
  0xbb   : > { %1605 = vmatmul.msk.bf16.gmra.mxu1 %vm344_vm3, %v2103_v32  ;;  %v835_v60 = vpop.permute.xlu0 %834 }
  0xbc   : > { %1588 = vmatmul.msk.bf16.gmra.mxu2 %vm344_vm3, %v1865_v33  ;;  %1595 = vmatmul.msk.bf16.gmra.mxu3 %vm344_vm3, %v2105_v21 }
  0xbf   : > { %v429_v8 = vpop.f32.mrf.mxu3 }
  0xc0   : > { %v421_v18 = vpop.f32.mrf.mxu1 }
  0xc4   : > { %1598 = vmatmul.msk.bf16.gmra.mxu0 %vm344_vm3, %v1859_v29 }
  0xcb   : > { %1622 = vmatmul.msk.bf16.vlgmr.msra.gmra.mxu1 %vm344_vm3, %v959_v25  ;;  %v431_v25 = vpop.f32.mrf.mxu3 }
  0xcc   : > { %1589 = vmatmul.msk.bf16.gmra.mxu2 %vm344_vm3, %v1916_v7  ;;  %1612 = vmatmul.msk.bf16.vlgmr.msra.gmra.mxu3 %vm344_vm3, %v829_v34 }
  0xcd   : > { %1310 = vmatpush.bf16.msra.mxu3 %v1301_v36 }
  0xd4   : > { %1599 = vmatmul.msk.bf16.gmra.mxu0 %vm344_vm3, %v1905_v3 }
  0xdb   : > { %1623 = vmatmul.msk.bf16.gmra.mxu1 %vm344_vm3, %v961_v52 }
  0xdc   : > { %1590 = vmatmul.msk.bf16.gmra.mxu2 %vm344_vm3, %v1908_v4  ;;  %1613 = vmatmul.msk.bf16.gmra.mxu3 %vm344_vm3, %v831_v53  ;;  %v1661_v53 = vld [vmem:[%s2415_s3 + $0x44] sm:$0xf] }
  0xe4   : > { %1600 = vmatmul.msk.bf16.gmra.mxu0 %vm344_vm3, %v1943_v13 }
  0xeb   : > { %1624 = vmatmul.msk.bf16.gmra.mxu1 %vm344_vm3, %v963_v9  ;;  %v1089_v9 = vpop.permute.xlu0 %1088 }
  0xec   : > { %1607 = vmatmul.msk.bf16.vlgmr.msra.gmra.mxu2 %vm344_vm3, %v1931_v46  ;;  %1614 = vmatmul.msk.bf16.gmra.mxu3 %vm344_vm3, %v833_v62  ;;  %v324_v46 = vmax.f32 %v304_v26, 0.0 }
  0xee   : > { %v1341_v26 = vrot.slane %v324_v46, 2 }
  0xf4   : > { %1617 = vmatmul.msk.bf16.vlgmr.msra.gmra.mxu0 %vm344_vm3, %v1925_v16  ;;  %v1243_v16 = vrot.slane %v324_v46, 1 }
  0xf5   : > { %1360 = vmatpush.bf16.msra.mxu0 %v1351_v49 }
  0xf6   : > { %v1244_v23 = vsel %vm450_vm1, %v1242_v22, %v1243_v16 }
  0xf7   : > { %v2179_v0 = vpack.c.bf16 %v1244_v23, %v2001_v47  ;;  %v1646_v47 = vld [vmem:[%s2415_s3 + $0x38] sm:$0xf] }
  0xf9   : > { %1295 = vrot.lane.b32.xlu1 %v2179_v0, %s1691_s28 }
  0xfb   : > { %1625 = vmatmul.msk.bf16.gmra.mxu1 %vm344_vm3, %v965_v10 }
  0xfc   : > { %1608 = vmatmul.msk.bf16.gmra.mxu2 %vm344_vm3, %v1964_v17  ;;  %1615 = vmatmul.msk.bf16.gmra.mxu3 %vm344_vm3, %v835_v60  ;;  %v1087_v17 = vpop.permute.xlu2 %1086  ;;  %v1340_v60 = vrot.slane %v2083_v30, 2  ;;  %v1091_v30 = vpop.permute.xlu1 %1090 }
  0xfe   : > { %v1342_v16 = vsel %vm607_vm0, %v1340_v60, %v1341_v26 }
  0xff   : > { %v2226_v23 = vpack.c.bf16 %v1342_v16, %v2117_v50 }
 0x101   : > { %1393 = vrot.lane.b32.xlu2 %v2226_v23, %s1691_s28  ;;  %s1668_s28 = sshll.u32 %s2419_s19, 6 }
 0x102   : > { %v579_v34 = vpop.f32.mrf.mxu3  ;;  %s2374_s22 = scalar_lea.vmem %s2416_s4, %s1668_s28 }
 0x104   : > { %1618 = vmatmul.msk.bf16.gmra.mxu0 %vm344_vm3, %v1954_v41  ;;  %v736_v1 = vpop.f32.mrf.mxu1  ;;  %v1253_v41 = vsel %vm357_vm2, %v1646_v47, 0 }
 0x105   : > { %1262 = vmatpush.bf16.msra.mxu2 %v1253_v41 }
 0x10a   : > { %v581_v44 = vpop.f32.mrf.mxu3 }
 0x10b   : > { %1642 = vmatmul.msk.bf16.vlgmr.msrb.gmra.mxu1 %vm344_vm3, %v2051_v2 }
 0x10c   : > { %1609 = vmatmul.msk.bf16.gmra.mxu2 %vm344_vm3, %v1951_v31  ;;  %1632 = vmatmul.msk.bf16.vlgmr.msrb.gmra.mxu3 %vm344_vm3, %v1087_v17  ;;  %v2198_v38 = vpop.f32.mrf.mxu1 }
 0x10f   : > { %v380_v2 = vpop.f32.mrf.mxu2 }
 0x110   : > { %v2200_v31 = vadd.f32 %v424_v56, %v380_v2 }
 0x111   : > { %v370_v39 = vpop.f32.mrf.mxu0 }
 0x114   : > { %1619 = vmatmul.msk.bf16.gmra.mxu0 %vm344_vm3, %v2014_v51  ;;  %v1399_v51 = vsel %vm357_vm2, %v1661_v53, 0 }
 0x115   : > { %1408 = vmatpush.bf16.msra.mxu1 %v1399_v51  ;;  %v1196_v51 = vpop.permute.xlu0 %1195 }
 0x117   : > { %v2208_v27 = vpop.f32.mrf.mxu2 }
 0x118   : > { %v2210_v52 = vpop.f32.mrf.mxu1 }
 0x119   : > { %v372_v56 = vpop.f32.mrf.mxu0 }
 0x11b   : > { %1643 = vmatmul.msk.bf16.gmra.mxu1 %vm344_vm3, %v2033_v58 }
 0x11c   : > { %1610 = vmatmul.msk.bf16.gmra.mxu2 %vm344_vm3, %v1998_v45  ;;  %1633 = vmatmul.msk.bf16.gmra.mxu3 %vm344_vm3, %v1089_v9 }
 0x11f   : > { %v385_v62 = vpop.f32.mrf.mxu2  ;;  %v584_v37 = vpop.f32.mrf.mxu3 }
 0x120   : > { %v2221_v10 = vadd.f32 %v429_v8, %v385_v62  ;;  %v743_v11 = vpop.f32.mrf.mxu1 }
 0x121   : > { %v375_v22 = vpop.f32.mrf.mxu0 }
 0x124   : > { %1620 = vmatmul.msk.bf16.gmra.mxu0 %vm344_vm3, %v2006_v48  ;;  %v415_v48 = vadd.f32 %v2153_v54, %v370_v39  ;;  %v1093_v39 = vpop.permute.xlu2 %1092 }
 0x127   : > { %v387_v45 = vpop.f32.mrf.mxu2  ;;  %v586_v58 = vpop.f32.mrf.mxu3 }
 0x128   : > { %v2232_v8 = vadd.f32 %v431_v25, %v387_v45  ;;  %v746_v17 = vpop.f32.mrf.mxu1 }
 0x129   : > { %v377_v47 = vpop.f32.mrf.mxu0 }
 0x12a   : > { %v422_v46 = vadd.f32 %v421_v18, %v377_v47  ;;  %v417_v18 = vadd.f32 %v2157_v61, %v372_v56 }
 0x12b   : > { %1644 = vmatmul.msk.bf16.gmra.mxu1 %vm344_vm3, %v2031_v57 }
 0x12c   : > { %1627 = vmatmul.msk.bf16.vlgmr.msrb.gmra.mxu2 %vm344_vm3, %v2045_v59  ;;  %1634 = vmatmul.msk.bf16.gmra.mxu3 %vm344_vm3, %v1091_v30 }
 0x12f   : > { %v513_v50 = vpop.f32.mrf.mxu2  ;;  %v589_v19 = vpop.f32.mrf.mxu3 }
 0x130   : > { %v533_v41 = vadd.f32 %v513_v50, %v415_v48  ;;  %v748_v36 = vpop.f32.mrf.mxu1 }
 0x131   : > { %v670_v25 = vpop.f32.mrf.mxu0 }
 0x132   : > { %v599_v2 = vadd.f32 %v579_v34, %v533_v41 }
 0x134   : > { %v690_v43 = vadd.f32 %v670_v25, %v599_v2  ;;  %1637 = vmatmul.msk.bf16.vlgmr.msrb.gmra.mxu0 %vm344_vm3, %v1806_v42  ;;  %v420_v42 = vadd.f32 %v2165_v5, %v375_v22 }
 0x136   : > { %v2243_v57 = vadd.f32 %v736_v1, %v690_v43 }
 0x137   : > { %v515_v49 = vpop.f32.mrf.mxu2  ;;  %v591_v59 = vpop.f32.mrf.mxu3 }
 0x138   : > { %v534_v53 = vadd.f32 %v515_v49, %v417_v18  ;;  %v751_v9 = vpop.f32.mrf.mxu1 }
 0x139   : > { %v672_v54 = vpop.f32.mrf.mxu0 }
 0x13a   : > { %v600_v62 = vadd.f32 %v581_v44, %v534_v53 }
 0x13b   : > { %1645 = vmatmul.msk.bf16.gmra.mxu1 %vm344_vm3, %v1196_v51 }
 0x13c   : > { %v691_v60 = vadd.f32 %v672_v54, %v600_v62  ;;  %1628 = vmatmul.msk.bf16.gmra.mxu2 %vm344_vm3, %v2026_v55  ;;  %1635 = vmatmul.msk.bf16.gmra.mxu3 %vm344_vm3, %v1093_v39 }
 0x13e   : > { %v2251_v61 = vadd.f32 %v2198_v38, %v691_v60 }
 0x13f   : > { %v518_v1 = vpop.f32.mrf.mxu2  ;;  %v594_v34 = vpop.f32.mrf.mxu3 }
 0x140   : > { %v535_v56 = vadd.f32 %v518_v1, %v420_v42  ;;  %v753_v26 = vpop.f32.mrf.mxu1 }
 0x141   : > { %v675_v16 = vpop.f32.mrf.mxu0 }
 0x142   : > { %v601_v45 = vadd.f32 %v584_v37, %v535_v56 }
 0x144   : > { %v692_v44 = vadd.f32 %v675_v16, %v601_v45  ;;  %1638 = vmatmul.msk.bf16.gmra.mxu0 %vm344_vm3, %v1798_v40 }
 0x146   : > { %v2256_v47 = vadd.f32 %v2210_v52, %v692_v44 }
 0x147   : > { %v520_v55 = vpop.f32.mrf.mxu2  ;;  %v596_v30 = vpop.f32.mrf.mxu3 }
 0x148   : > { %v536_v48 = vadd.f32 %v520_v55, %v422_v46  ;;  %v990_v5 = vpop.f32.mrf.mxu1 }
 0x149   : > { %v677_v22 = vpop.f32.mrf.mxu0 }
 0x14a   : > { %v602_v38 = vadd.f32 %v586_v58, %v536_v48 }
 0x14b   : > { %1662 = vmatmul.msk.bf16.vlgmr.msra.gmra.mxu1 %vm344_vm3, %v2068_v12  ;;  %v427_v12 = vadd.f32 %v2163_v63, %v2208_v27 }
 0x14c   : > { %v693_v50 = vadd.f32 %v677_v22, %v602_v38  ;;  %1629 = vmatmul.msk.bf16.gmra.mxu2 %vm344_vm3, %v2062_v6  ;;  %1652 = vmatmul.msk.bf16.vlgmr.msra.gmra.mxu3 %vm344_vm3, %v2070_v15 }
 0x14e   : > { %v2264_v40 = vadd.f32 %v743_v11, %v693_v50 }
 0x14f   : > { %v523_v52 = vpop.f32.mrf.mxu2  ;;  %v860_v37 = vpop.f32.mrf.mxu3 }
 0x150   : > { %v537_v41 = vadd.f32 %v523_v52, %v2200_v31  ;;  %v992_v2 = vpop.f32.mrf.mxu1 }
 0x151   : > { %v680_v46 = vpop.f32.mrf.mxu0 }
 0x152   : > { %v603_v25 = vadd.f32 %v589_v19, %v537_v41 }
 0x154   : > { %v694_v58 = vadd.f32 %v680_v46, %v603_v25  ;;  %1639 = vmatmul.msk.bf16.gmra.mxu0 %vm344_vm3, %v1789_v35 }
 0x156   : > { %v2271_v6 = vadd.f32 %v746_v17, %v694_v58 }
 0x157   : > { %v525_v43 = vpop.f32.mrf.mxu2  ;;  %v862_v15 = vpop.f32.mrf.mxu3 }
 0x158   : > { %v538_v11 = vadd.f32 %v525_v43, %v427_v12  ;;  %v995_v19 = vpop.f32.mrf.mxu1 }
 0x159   : > { %v682_v18 = vpop.f32.mrf.mxu0 }
 0x15a   : > { %v604_v49 = vadd.f32 %v591_v59, %v538_v11 }
 0x15b   : > { %1663 = vmatmul.msk.bf16.gmra.mxu1 %vm344_vm3, %v2089_v20 }
 0x15c   : > { %v695_v31 = vadd.f32 %v682_v18, %v604_v49  ;;  %1630 = vmatmul.msk.bf16.gmra.mxu2 %vm344_vm3, %v2121_v24  ;;  %1653 = vmatmul.msk.bf16.gmra.mxu3 %vm344_vm3, %v2091_v28 }
 0x15e   : > { %v2279_v35 = vadd.f32 %v748_v36, %v695_v31 }
 0x15f   : > { %v528_v63 = vpop.f32.mrf.mxu2  ;;  %v865_v27 = vpop.f32.mrf.mxu3 }
 0x160   : > { %v539_v17 = vadd.f32 %v528_v63, %v2221_v10  ;;  %v997_v20 = vpop.f32.mrf.mxu1 }
 0x161   : > { %v685_v53 = vpop.f32.mrf.mxu0 }
 0x162   : > { %v605_v51 = vadd.f32 %v594_v34, %v539_v17 }
 0x164   : > { %v696_v59 = vadd.f32 %v685_v53, %v605_v51  ;;  %1640 = vmatmul.msk.bf16.gmra.mxu0 %vm344_vm3, %v2087_v14 }
 0x166   : > { %v2284_v54 = vadd.f32 %v751_v9, %v696_v59 }
 0x167   : > { %v530_v39 = vpop.f32.mrf.mxu2  ;;  %v867_v24 = vpop.f32.mrf.mxu3 }
 0x168   : > { %v540_v62 = vadd.f32 %v530_v39, %v2232_v8  ;;  %v1000_v1 = vpop.f32.mrf.mxu1 }
 0x169   : > { %v687_v28 = vpop.f32.mrf.mxu0 }
 0x16a   : > { %v606_v36 = vadd.f32 %v596_v30, %v540_v62 }
 0x16b   : > { %1664 = vmatmul.msk.bf16.gmra.mxu1 %vm344_vm3, %v2103_v32 }
 0x16c   : > { %v697_v60 = vadd.f32 %v687_v28, %v606_v36  ;;  %1647 = vmatmul.msk.bf16.vlgmr.msra.gmra.mxu2 %vm344_vm3, %v1865_v33  ;;  %1654 = vmatmul.msk.bf16.gmra.mxu3 %vm344_vm3, %v2105_v21 }
 0x16e   : > { %v2293_v14 = vadd.f32 %v753_v26, %v697_v60  ;;  %v1296_v26 = vpop.permute.xlu1 %1295 }
 0x16f   : > { %v794_v10 = vpop.f32.mrf.mxu2  ;;  %v870_v9 = vpop.f32.mrf.mxu3 }
 0x170   : > { %v814_v42 = vadd.f32 %v794_v10, %v2243_v57  ;;  %v1002_v55 = vpop.f32.mrf.mxu1 }
 0x171   : > { %v924_v8 = vpop.f32.mrf.mxu0 }
 0x172   : > { %v880_v34 = vadd.f32 %v860_v37, %v814_v42 }
 0x174   : > { %v944_v56 = vadd.f32 %v924_v8, %v880_v34  ;;  %1657 = vmatmul.msk.bf16.vlgmr.msra.gmra.mxu0 %vm344_vm3, %v1859_v29 }
 0x176   : > { %v2298_v32 = vadd.f32 %v990_v5, %v944_v56  ;;  %v1394_v5 = vpop.permute.xlu2 %1393 }
 0x177   : > { %v796_v16 = vpop.f32.mrf.mxu2  ;;  %v872_v33 = vpop.f32.mrf.mxu3 }
 0x178   : > { %v815_v45 = vadd.f32 %v796_v16, %v2251_v61  ;;  %v1005_v52 = vpop.f32.mrf.mxu1 }
 0x179   : > { %v926_v21 = vpop.f32.mrf.mxu0 }
 0x17a   : > { %v881_v44 = vadd.f32 %v862_v15, %v815_v45 }
 0x17b   : > { %1665 = vmatmul.msk.bf16.gmra.mxu1 %vm344_vm3, %v1394_v5 }
 0x17c   : > { %v945_v30 = vadd.f32 %v926_v21, %v881_v44  ;;  %1648 = vmatmul.msk.bf16.gmra.mxu2 %vm344_vm3, %v1916_v7  ;;  %1655 = vmatmul.msk.bf16.gmra.mxu3 %vm344_vm3, %v1296_v26 }
 0x17e   : > { %v2304_v57 = vadd.f32 %v992_v2, %v945_v30 }
 0x17f   : > { %v799_v48 = vpop.f32.mrf.mxu2  ;;  %v875_v22 = vpop.f32.mrf.mxu3 }
 0x180   : > { %v816_v29 = vadd.f32 %v799_v48, %v2256_v47  ;;  %v1007_v12 = vpop.f32.mrf.mxu1 }
 0x181   : > { %v929_v38 = vpop.f32.mrf.mxu0 }
 0x182   : > { %v882_v61 = vadd.f32 %v865_v27, %v816_v29 }
 0x184   : > { %v946_v50 = vadd.f32 %v929_v38, %v882_v61  ;;  %1658 = vmatmul.msk.bf16.gmra.mxu0 %vm344_vm3, %v1905_v3 }
 0x186   : > { %v2310_v37 = vadd.f32 %v995_v19, %v946_v50 }
 0x187   : > { %v801_v7 = vpop.f32.mrf.mxu2  ;;  %v877_v2 = vpop.f32.mrf.mxu3 }
 0x188   : > { %v817_v41 = vadd.f32 %v801_v7, %v2264_v40  ;;  %v1212_v63 = vpop.f32.mrf.mxu1 }
 0x189   : > { %v931_v46 = vpop.f32.mrf.mxu0 }
 0x18a   : > { %v883_v25 = vadd.f32 %v867_v24, %v817_v41 }
 0x18c   : > { %v947_v47 = vadd.f32 %v931_v46, %v883_v25  ;;  %1649 = vmatmul.msk.bf16.gmra.mxu2 %vm344_vm3, %v1908_v4 }
 0x18e   : > { %v2315_v58 = vadd.f32 %v997_v20, %v947_v47 }
 0x18f   : > { %v804_v43 = vpop.f32.mrf.mxu2  ;;  %v1118_v40 = vpop.f32.mrf.mxu3 }
 0x190   : > { %v818_v15 = vadd.f32 %v804_v43, %v2271_v6  ;;  %v1214_v39 = vpop.f32.mrf.mxu1 }
 0x191   : > { %v934_v3 = vpop.f32.mrf.mxu0 }
 0x192   : > { %v884_v11 = vadd.f32 %v870_v9, %v818_v15 }
 0x194   : > { %v948_v18 = vadd.f32 %v934_v3, %v884_v11  ;;  %1659 = vmatmul.msk.bf16.gmra.mxu0 %vm344_vm3, %v1943_v13 }
 0x196   : > { %v2320_v49 = vadd.f32 %v1000_v1, %v948_v18 }
 0x197   : > { %v806_v31 = vpop.f32.mrf.mxu2  ;;  %v1120_v53 = vpop.f32.mrf.mxu3 }
 0x198   : > { %v819_v19 = vadd.f32 %v806_v31, %v2279_v35  ;;  %v1217_v9 = vpop.f32.mrf.mxu1 }
 0x199   : > { %v936_v4 = vpop.f32.mrf.mxu0 }
 0x19a   : > { %v885_v27 = vadd.f32 %v872_v33, %v819_v19 }
 0x19c   : > { %v949_v17 = vadd.f32 %v936_v4, %v885_v27  ;;  %1650 = vmatmul.msk.bf16.gmra.mxu2 %vm344_vm3, %v2179_v0 }
 0x19e   : > { %v2325_v6 = vadd.f32 %v1002_v55, %v949_v17 }
 0x19f   : > { %v809_v51 = vpop.f32.mrf.mxu2  ;;  %v1123_v36 = vpop.f32.mrf.mxu3 }
 0x1a0   : > { %v820_v59 = vadd.f32 %v809_v51, %v2284_v54  ;;  %v2335_v34 = vpop.f32.mrf.mxu1 }
 0x1a1   : > { %v939_v13 = vpop.f32.mrf.mxu0 }
 0x1a2   : > { %v886_v20 = vadd.f32 %v875_v22, %v820_v59 }
 0x1a4   : > { %v950_v24 = vadd.f32 %v939_v13, %v886_v20  ;;  %1660 = vmatmul.msk.bf16.gmra.mxu0 %vm344_vm3, %v2226_v23 }
 0x1a6   : > { %v2330_v35 = vadd.f32 %v1005_v52, %v950_v24 }
 0x1a7   : > { %v811_v62 = vpop.f32.mrf.mxu2  ;;  %v1125_v8 = vpop.f32.mrf.mxu3 }
 0x1a8   : > { %v821_v28 = vadd.f32 %v811_v62, %v2293_v14  ;;  %v2339_v45 = vpop.f32.mrf.mxu1 }
 0x1a9   : > { %v941_v0 = vpop.f32.mrf.mxu0 }
 0x1aa   : > { %v887_v60 = vadd.f32 %v877_v2, %v821_v28 }
 0x1ac   : > { %v951_v10 = vadd.f32 %v941_v0, %v887_v60 }
 0x1ae   : > { %v2333_v42 = vadd.f32 %v1007_v12, %v951_v10 }
 0x1af   : > { %v1052_v54 = vpop.f32.mrf.mxu2  ;;  %v2337_v23 = vpop.f32.mrf.mxu3 }
 0x1b0   : > { %v2343_v55 = vpop.f32.mrf.mxu1  ;;  %v1072_v41 = vadd.f32 %v1052_v54, %v2298_v32 }
 0x1b1   : > { %v1164_v1 = vpop.f32.mrf.mxu0 }
 0x1b2   : > { %v1138_v25 = vadd.f32 %v1118_v40, %v1072_v41 }
 0x1b4   : > { %v1184_v43 = vadd.f32 %v1164_v1, %v1138_v25 }
 0x1b6   : > { %v1232_v11 = vadd.f32 %v1212_v63, %v1184_v43 }
 0x1b7   : > { %v1054_v56 = vpop.f32.mrf.mxu2  ;;  %v2341_v21 = vpop.f32.mrf.mxu3 }
 0x1b8   : > { %v2349_v5 = vpop.f32.mrf.mxu1  ;;  %v1073_v15 = vadd.f32 %v1054_v56, %v2304_v57 }
 0x1b9   : > { %v1166_v16 = vpop.f32.mrf.mxu0 }
 0x1ba   : > { %v1139_v3 = vadd.f32 %v1120_v53, %v1073_v15 }
 0x1bc   : > { %v1185_v27 = vadd.f32 %v1166_v16, %v1139_v3 }
 0x1be   : > { %v1233_v63 = vadd.f32 %v1214_v39, %v1185_v27 }
 0x1bf   : > { %v1057_v33 = vpop.f32.mrf.mxu2  ;;  %v2345_v48 = vpop.f32.mrf.mxu3 }
 0x1c0   : > { %v2357_v50 = vpop.f32.mrf.mxu1  ;;  %v1074_v32 = vadd.f32 %v1057_v33, %v2310_v37 }
 0x1c1   : > { %v1169_v14 = vpop.f32.mrf.mxu0 }
 0x1c2   : > { %v1140_v57 = vadd.f32 %v1123_v36, %v1074_v32 }
 0x1c4   : > { %v1186_v37 = vadd.f32 %v1169_v14, %v1140_v57 }
 0x1c6   : > { %v1234_v1 = vadd.f32 %v1217_v9, %v1186_v37 }
 0x1c7   : > { %v1059_v26 = vpop.f32.mrf.mxu2  ;;  %v2355_v61 = vpop.f32.mrf.mxu3 }
 0x1c8   : > { %v1410_v47 = vpop.f32.mrf.mxu1  ;;  %v1075_v62 = vadd.f32 %v1059_v26, %v2315_v58 }
 0x1c9   : > { %v1171_v44 = vpop.f32.mrf.mxu0 }
 0x1ca   : > { %v1141_v10 = vadd.f32 %v1125_v8, %v1075_v62 }
 0x1cf   : > { %v1062_v30 = vpop.f32.mrf.mxu2  ;;  %v1312_v46 = vpop.f32.mrf.mxu3 }
 0x1d0   : > { %v1412_v40 = vpop.f32.mrf.mxu1  ;;  %v1076_v25 = vadd.f32 %v1062_v30, %v2320_v49 }
 0x1d1   : > { %v2347_v29 = vpop.f32.mrf.mxu0 }
 0x1d2   : > { %v1142_v43 = vadd.f32 %v2337_v23, %v1076_v25 }
 0x1d7   : > { %v2351_v22 = vpop.f32.mrf.mxu2  ;;  %v1314_v18 = vpop.f32.mrf.mxu3 }
 0x1d8   : > { %v1415_v60 = vpop.f32.mrf.mxu1  ;;  %v1077_v49 = vadd.f32 %v2351_v22, %v2325_v6 }
 0x1d9   : > { %v2353_v38 = vpop.f32.mrf.mxu0 }
 0x1da   : > { %v1143_v32 = vadd.f32 %v2341_v21, %v1077_v49 }
 0x1df   : > { %v2359_v52 = vpop.f32.mrf.mxu2  ;;  %v1317_v20 = vpop.f32.mrf.mxu3 }
 0x1e0   : > { %v1417_v15 = vpop.f32.mrf.mxu1  ;;  %v1078_v6 = vadd.f32 %v2359_v52, %v2330_v35 }
 0x1e1   : > { %v2361_v7 = vpop.f32.mrf.mxu0 }
 0x1e2   : > { %v1144_v21 = vadd.f32 %v2345_v48, %v1078_v6 }
 0x1e7   : > { %v2364_v2 = vpop.f32.mrf.mxu2  ;;  %v1319_v58 = vpop.f32.mrf.mxu3 }
 0x1e8   : > { %v1079_v35 = vadd.f32 %v2364_v2, %v2333_v42 }
 0x1e9   : > { %v2366_v12 = vpop.f32.mrf.mxu0 }
 0x1ef   : > { %v1264_v31 = vpop.f32.mrf.mxu2  ;;  %v1322_v23 = vpop.f32.mrf.mxu3 }
 0x1f0   : > { %v1284_v19 = vadd.f32 %v1264_v31, %v1232_v11 }
 0x1f1   : > { %v1362_v4 = vpop.f32.mrf.mxu0 }
 0x1f2   : > { %v1332_v17 = vadd.f32 %v1312_v46, %v1284_v19  ;;  %v1187_v46 = vadd.f32 %v1171_v44, %v1141_v10  ;;  %v1188_v44 = vadd.f32 %v2347_v29, %v1142_v43 }
 0x1f4   : > { %v1382_v51 = vadd.f32 %v1362_v4, %v1332_v17  ;;  %v1235_v9 = vadd.f32 %v2335_v34, %v1187_v46  ;;  %v1236_v17 = vadd.f32 %v2339_v45, %v1188_v44 }
 0x1f6   : > { %v1430_v53 = vadd.f32 %v1410_v47, %v1382_v51 }
 0x1f7   : > { %v1266_v59 = vpop.f32.mrf.mxu2  ;;  %v1324_v37 = vpop.f32.mrf.mxu3 }
 0x1f8   : > { %1438 = vst [vmem:[%s2374_s22] sm:$0xff] %v1430_v53  ;;  %v1285_v13 = vadd.f32 %v1266_v59, %v1233_v63  ;;  %v1460_v16 = vmul.f32 %v1430_v53, %v1430_v53  ;;  %v1420_v63 = vpop.f32.mrf.mxu1  ;;  %v1189_v59 = vadd.f32 %v2353_v38, %v1143_v32  ;;  %v1190_v38 = vadd.f32 %v2361_v7, %v1144_v21 }
 0x1f9   : > { %v1364_v24 = vpop.f32.mrf.mxu0 }
 0x1fa   : > { %v1333_v28 = vadd.f32 %v1314_v18, %v1285_v13  ;;  %v1237_v45 = vadd.f32 %v2343_v55, %v1189_v59 }
 0x1fc   : > { %v1383_v0 = vadd.f32 %v1364_v24, %v1333_v28 }
 0x1fe   : > { %v1431_v54 = vadd.f32 %v1412_v40, %v1383_v0 }
 0x1ff   : > { %v1269_v56 = vpop.f32.mrf.mxu2 }
 0x200   : > { %1439 = vst [vmem:[%s2374_s22 + $0x8] sm:$0xff] %v1431_v54  ;;  %v1446_v39 = vadd.f32 %v1431_v54, %v1430_v53  ;;  %v1461_v36 = vmul.f32 %v1431_v54, %v1431_v54  ;;  %v1286_v33 = vadd.f32 %v1269_v56, %v1234_v1  ;;  %v1422_v1 = vpop.f32.mrf.mxu1  ;;  %v1145_v56 = vadd.f32 %v2355_v61, %v1079_v35 }
 0x201   : > { %v1367_v41 = vpop.f32.mrf.mxu0 }
 0x202   : > { %v1468_v14 = vadd.f32 %v1461_v36, %v1460_v16  ;;  %v1334_v47 = vadd.f32 %v1317_v20, %v1286_v33  ;;  %v1238_v16 = vadd.f32 %v2349_v5, %v1190_v38  ;;  %v1191_v25 = vadd.f32 %v2366_v12, %v1145_v56 }
 0x204   : > { %v1384_v26 = vadd.f32 %v1367_v41, %v1334_v47  ;;  %v1239_v61 = vadd.f32 %v2357_v50, %v1191_v25 }
 0x206   : > { %v1432_v8 = vadd.f32 %v1415_v60, %v1384_v26 }
 0x207   : > { %v1271_v3 = vpop.f32.mrf.mxu2 }
 0x208   : > { %1440 = vst [vmem:[%s2374_s22 + $0x10] sm:$0xff] %v1432_v8  ;;  %v1447_v11 = vadd.f32 %v1446_v39, %v1432_v8  ;;  %v1462_v18 = vmul.f32 %v1432_v8, %v1432_v8  ;;  %v1287_v31 = vadd.f32 %v1271_v3, %v1235_v9  ;;  %v1327_v39 = vpop.f32.mrf.mxu3 }
 0x209   : > { %v1369_v19 = vpop.f32.mrf.mxu0 }
 0x20a   : > { %v1469_v30 = vadd.f32 %v1468_v14, %v1462_v18  ;;  %v1335_v4 = vadd.f32 %v1319_v58, %v1287_v31  ;;  %v1425_v14 = vpop.f32.mrf.mxu1 }
 0x20c   : > { %v1385_v27 = vadd.f32 %v1369_v19, %v1335_v4 }
 0x20e   : > { %v1433_v34 = vadd.f32 %v1417_v15, %v1385_v27 }
 0x20f   : > { %v1274_v40 = vpop.f32.mrf.mxu2 }
 0x210   : > { %1441 = vst [vmem:[%s2374_s22 + $0x18] sm:$0xff] %v1433_v34  ;;  %v1448_v51 = vadd.f32 %v1447_v11, %v1433_v34  ;;  %v1463_v57 = vmul.f32 %v1433_v34, %v1433_v34  ;;  %v1288_v53 = vadd.f32 %v1274_v40, %v1236_v17  ;;  %v1329_v9 = vpop.f32.mrf.mxu3 }
 0x211   : > { %v1372_v29 = vpop.f32.mrf.mxu0 }
 0x212   : > { %v1470_v22 = vadd.f32 %v1469_v30, %v1463_v57  ;;  %v1336_v13 = vadd.f32 %v1322_v23, %v1288_v53  ;;  %v1427_v12 = vpop.f32.mrf.mxu1 }
 0x214   : > { %v1386_v20 = vadd.f32 %v1372_v29, %v1336_v13 }
 0x216   : > { %v1434_v24 = vadd.f32 %v1420_v63, %v1386_v20 }
 0x217   : > { %v1276_v62 = vpop.f32.mrf.mxu2 }
 0x218   : > { %1442 = vst [vmem:[%s2374_s22 + $0x20] sm:$0xff] %v1434_v24  ;;  %v1449_v28 = vadd.f32 %v1448_v51, %v1434_v24  ;;  %v1464_v0 = vmul.f32 %v1434_v24, %v1434_v24  ;;  %v1289_v60 = vadd.f32 %v1276_v62, %v1237_v45 }
 0x219   : > { %v1374_v10 = vpop.f32.mrf.mxu0 }
 0x21a   : > { %v1471_v52 = vadd.f32 %v1470_v22, %v1464_v0  ;;  %v1337_v54 = vadd.f32 %v1324_v37, %v1289_v60 }
 0x21c   : > { %v1387_v48 = vadd.f32 %v1374_v10, %v1337_v54 }
 0x21e   : > { %v1435_v55 = vadd.f32 %v1422_v1, %v1387_v48 }
 0x21f   : > { %v1279_v36 = vpop.f32.mrf.mxu2 }
 0x220   : > { %1443 = vst [vmem:[%s2374_s22 + $0x28] sm:$0xff] %v1435_v55  ;;  %v1450_v33 = vadd.f32 %v1449_v28, %v1435_v55  ;;  %v1465_v41 = vmul.f32 %v1435_v55, %v1435_v55  ;;  %v1290_v46 = vadd.f32 %v1279_v36, %v1238_v16 }
 0x221   : > { %v1377_v7 = vpop.f32.mrf.mxu0 }
 0x222   : > { %v1472_v42 = vadd.f32 %v1471_v52, %v1465_v41  ;;  %v1338_v2 = vadd.f32 %v1327_v39, %v1290_v46 }
 0x224   : > { %v1388_v47 = vadd.f32 %v1377_v7, %v1338_v2 }
 0x226   : > { %v1436_v58 = vadd.f32 %v1425_v14, %v1388_v47 }
 0x227   : > { %v1281_v26 = vpop.f32.mrf.mxu2 }
 0x228   : > { %1444 = vst [vmem:[%s2374_s22 + $0x30] sm:$0xff] %v1436_v58  ;;  %v1451_v5 = vadd.f32 %v1450_v33, %v1436_v58  ;;  %v1466_v43 = vmul.f32 %v1436_v58, %v1436_v58  ;;  %v1291_v8 = vadd.f32 %v1281_v26, %v1239_v61 }
 0x229   : > { %v1379_v11 = vpop.f32.mrf.mxu0 }
 0x22a   : > { %v1473_v15 = vadd.f32 %v1472_v42, %v1466_v43  ;;  %v1339_v3 = vadd.f32 %v1329_v9, %v1291_v8 }
 0x22c   : > { %v1389_v18 = vadd.f32 %v1379_v11, %v1339_v3 }
 0x22e   : > { %v1437_v31 = vadd.f32 %v1427_v12, %v1389_v18 }
 0x230   : > { %1445 = vst [vmem:[%s2374_s22 + $0x38] sm:$0xff] %v1437_v31  ;;  %v1452_v19 = vadd.f32 %v1451_v5, %v1437_v31  ;;  %v1467_v44 = vmul.f32 %v1437_v31, %v1437_v31 }
 0x232   : > { %v1453_v49 = vrot.slane %v1452_v19, 4  ;;  %v1474_v30 = vadd.f32 %v1473_v15, %v1467_v44 }
 0x234   : > { %v1454_v4 = vadd.f32 %v1453_v49, %v1452_v19  ;;  %v1475_v50 = vrot.slane %v1474_v30, 4 }
 0x236   : > { %v1455_v27 = vrot.slane %v1454_v4, 2  ;;  %v1476_v23 = vadd.f32 %v1475_v50, %v1474_v30 }
 0x238   : > { %v1456_v32 = vadd.f32 %v1455_v27, %v1454_v4  ;;  %v1477_v34 = vrot.slane %v1476_v23, 2 }
 0x23a   : > { %v1457_v17 = vrot.slane %v1456_v32, 1  ;;  %v1478_v40 = vadd.f32 %v1477_v34, %v1476_v23 }
 0x23c   : > { %v1458_v51 = vadd.f32 %v1457_v17, %v1456_v32  ;;  %v1479_v57 = vrot.slane %v1478_v40, 1 }
 0x23e   : > { %1459 = vst [vmem:[%s235_s27] sm:$0x1] %v1458_v51  ;;  %v1480_v53 = vadd.f32 %v1479_v57, %v1478_v40 }
 0x240   : > { %1481 = vst [vmem:[%s235_s27 + $0x1] sm:$0x1] %v1480_v53 }
 0x241 PF: > { %s16_s18 = sadd.s32 1, %s1689_s18  }
 0x242   : > { %p13_p4 = scmp.ge.s32.totalorder %s16_s18, 4  }
 0x244   :  { %15 = sbr.rel (!%p13_p4) target bundleno = 1 (0x1), region = 95 }

</bundles_post_ra>
